<compile_context>
chip_gen: v6e
topology: v6e:2x2x1
jax: 0.10.0
libtpu: 0.0.40
codegen_flags: <defaults>
</compile_context>

<pallas_src>
import functools

import jax
import jax.numpy as jnp
import numpy as np
from jax.experimental import pallas as pl
from jax.experimental.pallas import tpu as pltpu


# ----------------------------------------------------------------------------
# Pallas kernels
# ----------------------------------------------------------------------------
def gin_layer_kernel(eps_ref, A_ref, h_ref, w1_ref, b1_ref, w2_ref, b2_ref,
                     s_ref, t_ref, o_ref, acc_ref):
    """One GINConv layer, tiled over (dst-node tiles i, src-node k-tiles).

    A is an exact int8 0/1 matrix (upcast to bf16 in-kernel); the (1+eps)*x
    self-term is added once, exactly, on the diagonal step k == i (tm == tk).
    At the last k step the 2-layer MLP and the folded eval-mode BatchNorm
    (per-channel scale/bias) run as the epilogue.
    """
    i = pl.program_id(0)
    k = pl.program_id(1)

    @pl.when(k == 0)
    def _init():
        acc_ref[...] = jnp.zeros_like(acc_ref)

    # int8 0/1 -> bf16 upcast (VPU filler), bf16 x bf16 -> f32 accumulate (MXU).
    a = A_ref[...].astype(jnp.bfloat16)
    acc_ref[...] += jnp.dot(a, h_ref[...], preferred_element_type=jnp.float32)

    # (1+eps) * x self-term: the src k-tile coincides with the dst tile exactly
    # when k == i (requires tm == tk), so this fires once per dst tile.
    @pl.when(k == i)
    def _self_term():
        acc_ref[...] += (1.0 + eps_ref[0]) * h_ref[...].astype(jnp.float32)

    @pl.when(k == pl.num_programs(1) - 1)
    def _epilogue():
        h = acc_ref[...].astype(w1_ref.dtype)
        h = jnp.dot(h, w1_ref[...], preferred_element_type=jnp.float32) + b1_ref[...]
        h = jnp.maximum(h, 0.0).astype(w2_ref.dtype)
        h = jnp.dot(h, w2_ref[...], preferred_element_type=jnp.float32) + b2_ref[...]
        h = jnp.maximum(h, 0.0)
        # eval-mode BatchNorm folded to a single per-channel scale/bias FMA (f32).
        o_ref[...] = (h * s_ref[...] + t_ref[...]).astype(o_ref.dtype)


def gin_head_kernel(P_ref, invc_ref, w1_ref, b1_ref, w2_ref, b2_ref, *rest,
                    num_classes, hidden):
    """Head: mean-pool each layer's activations (tiled over node k-tiles) into
    column slices of the accumulator (no HBM concat), then lin1 (BN folded in)
    -> ReLU -> dropout(eval = identity) -> lin2 -> masked log_softmax."""
    *h_refs, o_ref, acc_ref = rest
    k = pl.program_id(0)

    @pl.when(k == 0)
    def _init():
        acc_ref[...] = jnp.zeros_like(acc_ref)

    # 0/1 indicator matmul (exact in bf16); divide by counts in the epilogue.
    P = P_ref[...]
    for l, h_ref in enumerate(h_refs):
        acc_ref[:, l * hidden:(l + 1) * hidden] += jnp.dot(
            P, h_ref[...], preferred_element_type=jnp.float32)

    @pl.when(k == pl.num_programs(0) - 1)
    def _epilogue():
        pooled = (acc_ref[...] * invc_ref[...]).astype(w1_ref.dtype)
        h = jnp.dot(pooled, w1_ref[...], preferred_element_type=jnp.float32) + b1_ref[...]
        h = jnp.maximum(h, 0.0).astype(w2_ref.dtype)
        # TODO(synk): dropout(p=0.5) applies only in training; eval mode is identity.
        logits = jnp.dot(h, w2_ref[...], preferred_element_type=jnp.float32) + b2_ref[...]
        col = jax.lax.broadcasted_iota(jnp.int32, logits.shape, 1)
        logits = jnp.where(col < num_classes, logits, -1e30)   # f32 mask, stays f32
        m = jnp.max(logits, axis=-1, keepdims=True)
        lse = m + jnp.log(jnp.sum(jnp.exp(logits - m), axis=-1, keepdims=True))
        o_ref[...] = logits - lse


# ----------------------------------------------------------------------------
# Pallas wrappers
# ----------------------------------------------------------------------------
def gin_layer(A_i8, h_prev, p, *, tm=512, tk=512):
    n_dst, n_src = A_i8.shape
    fin = h_prev.shape[1]
    hidden = p["w2"].shape[1]
    assert tm == tk, "self-term on the diagonal step requires square tiles"
    assert n_dst == n_src and n_dst % tm == 0
    grid = (n_dst // tm, n_src // tk)
    # VMEM @ tm=tk=512: A 256KiB*2 + h 128KiB*2 + acc 256KiB + out 128KiB*2 +
    # weights ~130KiB  ->  ~1.5 MiB: fits scoped defaults on v5e/v6e/v7x.
    return pl.pallas_call(
        gin_layer_kernel,
        out_shape=jax.ShapeDtypeStruct((n_dst, hidden), jnp.bfloat16),
        grid_spec=pltpu.PrefetchScalarGridSpec(
            num_scalar_prefetch=0,
            grid=grid,
            in_specs=[
                pl.BlockSpec(memory_space=pltpu.MemorySpace.SMEM),     # eps (scalar)
                pl.BlockSpec((tm, tk), lambda i, k: (i, k)),           # A int8 tile
                pl.BlockSpec((tk, fin), lambda i, k: (k, 0)),          # h_{l-1} tile
                pl.BlockSpec((fin, hidden), lambda i, k: (0, 0)),      # w1
                pl.BlockSpec((1, hidden), lambda i, k: (0, 0)),        # b1
                pl.BlockSpec((hidden, hidden), lambda i, k: (0, 0)),   # w2
                pl.BlockSpec((1, hidden), lambda i, k: (0, 0)),        # b2
                pl.BlockSpec((1, hidden), lambda i, k: (0, 0)),        # BN scale
                pl.BlockSpec((1, hidden), lambda i, k: (0, 0)),        # BN bias
            ],
            out_specs=pl.BlockSpec((tm, hidden), lambda i, k: (i, 0)),
            scratch_shapes=[pltpu.VMEM((tm, fin), jnp.float32)],
        ),
        compiler_params=pltpu.CompilerParams(
            # dst axis shards across TensorCores (v7x megacore); k is a reduction.
            dimension_semantics=("parallel", "arbitrary")),
    )(p["eps"], A_i8, h_prev, p["w1"], p["b1"], p["w2"], p["b2"],
      p["bn_scale"], p["bn_bias"])


def gin_head(P_ind, h_list, inv_count, hp, num_classes, *, tk=512):
    g_pad, n_pad = P_ind.shape
    hidden = hp["lin2_w"].shape[0]
    c_pad = hp["lin2_w"].shape[1]
    L = len(h_list)
    assert n_pad % tk == 0
    grid = (n_pad // tk,)
    kernel = functools.partial(gin_head_kernel, num_classes=num_classes,
                               hidden=hidden)
    h_specs = [pl.BlockSpec((tk, hidden), lambda k: (k, 0)) for _ in h_list]
    return pl.pallas_call(
        kernel,
        out_shape=jax.ShapeDtypeStruct((g_pad, c_pad), jnp.float32),
        grid_spec=pltpu.PrefetchScalarGridSpec(
            num_scalar_prefetch=0,
            grid=grid,
            in_specs=[
                pl.BlockSpec((g_pad, tk), lambda k: (0, k)),       # pool indicator tile
                pl.BlockSpec((g_pad, 1), lambda k: (0, 0)),        # 1/count (f32)
                pl.BlockSpec((L * hidden, hidden), lambda k: (0, 0)),  # lin1 (BN folded)
                pl.BlockSpec((1, hidden), lambda k: (0, 0)),       # lin1 bias
                pl.BlockSpec((hidden, c_pad), lambda k: (0, 0)),   # lin2
                pl.BlockSpec((1, c_pad), lambda k: (0, 0)),        # lin2 bias
            ] + h_specs,                                           # h_1 .. h_L tiles
            out_specs=pl.BlockSpec((g_pad, c_pad), lambda k: (0, 0)),
            scratch_shapes=[pltpu.VMEM((g_pad, L * hidden), jnp.float32)],
        ),
        compiler_params=pltpu.CompilerParams(
            dimension_semantics=("arbitrary",)),
    )(P_ind, inv_count, hp["lin1_w"], hp["lin1_b"], hp["lin2_w"], hp["lin2_b"],
      *h_list)


def gin_forward(xp, A_i8, P_ind, inv_count, conv_params, head_params,
                num_classes, *, tm=512, tk=512):
    h = xp
    hs = []
    for p in conv_params:
        h = gin_layer(A_i8, h, p, tm=tm, tk=tk)     # Pallas kernel (hot path)
        hs.append(h)
    # No jnp.concatenate: the head reads each layer's activations directly.
    return gin_head(P_ind, hs, inv_count, head_params, num_classes, tk=tk)


# ----------------------------------------------------------------------------
# Parameter init (logical, PyTorch-shaped, f32) and prep (fold / pad / bf16)
# ----------------------------------------------------------------------------
def init_conv_params(key, in_dim, hidden):
    ks = jax.random.split(key, 9)
    return dict(
        w1=jax.random.normal(ks[0], (in_dim, hidden), jnp.float32) / np.sqrt(in_dim),
        b1=jax.random.normal(ks[1], (hidden,), jnp.float32) * 0.01,
        w2=jax.random.normal(ks[2], (hidden, hidden), jnp.float32) / np.sqrt(hidden),
        b2=jax.random.normal(ks[3], (hidden,), jnp.float32) * 0.01,
        gamma=1.0 + 0.1 * jax.random.normal(ks[4], (hidden,), jnp.float32),
        beta=0.1 * jax.random.normal(ks[5], (hidden,), jnp.float32),
        mean=0.1 * jax.random.normal(ks[6], (hidden,), jnp.float32),
        var=jnp.abs(1.0 + 0.1 * jax.random.normal(ks[7], (hidden,), jnp.float32)),
        # GINConv(train_eps=True) initializes eps=0; a small nonzero value here
        # exercises the exact (1+eps)*x self-term path.
        eps=0.05 * jax.random.normal(ks[8], (), jnp.float32),
    )


def init_head_params(key, num_layers, hidden, num_classes):
    ks = jax.random.split(key, 8)
    d = num_layers * hidden
    return dict(
        lin1_w=jax.random.normal(ks[0], (d, hidden), jnp.float32) / np.sqrt(d),
        lin1_b=jax.random.normal(ks[1], (hidden,), jnp.float32) * 0.01,
        gamma=1.0 + 0.1 * jax.random.normal(ks[2], (hidden,), jnp.float32),
        beta=0.1 * jax.random.normal(ks[3], (hidden,), jnp.float32),
        mean=0.1 * jax.random.normal(ks[4], (hidden,), jnp.float32),
        var=jnp.abs(1.0 + 0.1 * jax.random.normal(ks[5], (hidden,), jnp.float32)),
        lin2_w=jax.random.normal(ks[6], (hidden, num_classes), jnp.float32) / np.sqrt(hidden),
        lin2_b=jax.random.normal(ks[7], (num_classes,), jnp.float32) * 0.01,
    )


def prepare_conv_params(p, in_dim_pad):
    """Pad w1's input dim, fold eval-BN into (scale, bias), cast matmul operands
    to bf16, keep eps as a (1,) f32 SMEM scalar."""
    fin, hidden = p["w1"].shape
    w1 = jnp.zeros((in_dim_pad, hidden), jnp.float32).at[:fin, :].set(p["w1"])
    s = p["gamma"] * jax.lax.rsqrt(p["var"] + 1e-5)
    t = p["beta"] - p["mean"] * s
    return dict(
        eps=p["eps"].reshape(1).astype(jnp.float32),
        w1=w1.astype(jnp.bfloat16),
        b1=p["b1"].reshape(1, -1).astype(jnp.float32),
        w2=p["w2"].astype(jnp.bfloat16),
        b2=p["b2"].reshape(1, -1).astype(jnp.float32),
        bn_scale=s.reshape(1, -1).astype(jnp.float32),
        bn_bias=t.reshape(1, -1).astype(jnp.float32),
    )


def prepare_head_params(hp, c_pad):
    """Fold eval-BN exactly into lin1 (BN follows lin1 directly), pad classes to 128 lanes."""
    s = hp["gamma"] * jax.lax.rsqrt(hp["var"] + 1e-5)
    w1 = hp["lin1_w"] * s[None, :]
    b1 = (hp["lin1_b"] - hp["mean"]) * s + hp["beta"]
    hidden, c = hp["lin2_w"].shape
    w2 = jnp.zeros((hidden, c_pad), jnp.float32).at[:, :c].set(hp["lin2_w"])
    b2 = jnp.zeros((c_pad,), jnp.float32).at[:c].set(hp["lin2_b"])
    return dict(
        lin1_w=w1.astype(jnp.bfloat16),
        lin1_b=b1.reshape(1, -1).astype(jnp.float32),
        lin2_w=w2.astype(jnp.bfloat16),
        lin2_b=b2.reshape(1, -1).astype(jnp.float32),
    )


# ----------------------------------------------------------------------------
# Graph glue: padded dense adjacency / pooling from edge_index and batch
# ----------------------------------------------------------------------------
def round_up(n, m):
    return ((n + m - 1) // m) * m


def edge_index_to_adj_i8(edge_index, n_pad):
    src, dst = edge_index[0], edge_index[1]
    A = jnp.zeros((n_pad, n_pad), jnp.float32)
    A = A.at[dst, src].add(1.0)              # dst aggregates messages from src
    return A.astype(jnp.int8)                # exact 0/1, half the HBM bytes of bf16


def prepare_pool(batch, num_nodes, g_pad, n_pad):
    bpad = jnp.full((n_pad,), -1, jnp.int32).at[:num_nodes].set(batch)
    ind = (jnp.arange(g_pad)[:, None] == bpad[None, :]).astype(jnp.float32)
    counts = ind.sum(axis=1, keepdims=True)
    inv_count = (1.0 / jnp.maximum(counts, 1.0)).astype(jnp.float32)
    return ind.astype(jnp.bfloat16), inv_count     # indicator is exact in bf16


def pad_features(x, n_pad, f_pad):
    xp = jnp.zeros((n_pad, f_pad), jnp.float32)
    xp = xp.at[:x.shape[0], :x.shape[1]].set(x)
    return xp.astype(jnp.bfloat16)


def build_ring_edges(graph_sizes):
    src, dst, off = [], [], 0
    for n in graph_sizes:
        for i in range(n):
            j = (i + 1) % n
            src += [off + i, off + j]
            dst += [off + j, off + i]
        off += n
    return jnp.array([src, dst], dtype=jnp.int32)


# ----------------------------------------------------------------------------
# Pure-JAX references
# ----------------------------------------------------------------------------
def _ref_forward_prepared(xp, A_i8, P_ind, inv_count, conv_params,
                          head_params, num_classes):
    """Same int8-A / exact-self-term / folded / padded / bf16 pipeline as the
    kernels (tight equivalence check)."""
    f32, bf16 = jnp.float32, jnp.bfloat16
    A_bf = A_i8.astype(bf16)
    h = xp
    hs = []
    for p in conv_params:
        agg = (jnp.dot(A_bf, h, preferred_element_type=f32)
               + (1.0 + p["eps"][0]) * h.astype(f32))
        z = jnp.dot(agg.astype(bf16), p["w1"], preferred_element_type=f32) + p["b1"]
        z = jnp.maximum(z, 0.0)
        z = jnp.dot(z.astype(bf16), p["w2"], preferred_element_type=f32) + p["b2"]
        z = jnp.maximum(z, 0.0)
        h = (z * p["bn_scale"] + p["bn_bias"]).astype(bf16)
        hs.append(h)
    xcat = jnp.concatenate(hs, axis=1)
    pooled = (jnp.dot(P_ind, xcat, preferred_element_type=f32) * inv_count).astype(bf16)
    hp = head_params
    z = jnp.dot(pooled, hp["lin1_w"], preferred_element_type=f32) + hp["lin1_b"]
    z = jnp.maximum(z, 0.0)
    logits = jnp.dot(z.astype(bf16), hp["lin2_w"], preferred_element_type=f32) + hp["lin2_b"]
    cols = jnp.arange(logits.shape[-1])[None, :]
    logits = jnp.where(cols < num_classes, logits, -1e30)
    return jax.nn.log_softmax(logits, axis=-1)


def _ref_forward_f32(x, edge_index, batch, conv_logical, head_logical, num_graphs):
    """Unpadded, unfolded, f32 HIGHEST-precision reference of the module semantics."""
    hi = jax.lax.Precision.HIGHEST
    n = x.shape[0]
    A = jnp.zeros((n, n), jnp.float32).at[edge_index[1], edge_index[0]].add(1.0)
    h = x
    hs = []
    for p in conv_logical:
        agg = (1.0 + p["eps"]) * h + jnp.dot(A, h, precision=hi)
        z = jnp.maximum(jnp.dot(agg, p["w1"], precision=hi) + p["b1"], 0.0)
        z = jnp.maximum(jnp.dot(z, p["w2"], precision=hi) + p["b2"], 0.0)
        h = (z - p["mean"]) * jax.lax.rsqrt(p["var"] + 1e-5) * p["gamma"] + p["beta"]
        hs.append(h)
    xcat = jnp.concatenate(hs, axis=1)
    onehot = (jnp.arange(num_graphs)[:, None] == batch[None, :]).astype(jnp.float32)
    pooled = jnp.dot(onehot, xcat, precision=hi) / onehot.sum(axis=1, keepdims=True)
    hp = head_logical
    z = jnp.dot(pooled, hp["lin1_w"], precision=hi) + hp["lin1_b"]
    z = (z - hp["mean"]) * jax.lax.rsqrt(hp["var"] + 1e-5) * hp["gamma"] + hp["beta"]
    z = jnp.maximum(z, 0.0)
    logits = jnp.dot(z, hp["lin2_w"], precision=hi) + hp["lin2_b"]
    return jax.nn.log_softmax(logits, axis=-1)


# ----------------------------------------------------------------------------
# Main
# ----------------------------------------------------------------------------
if __name__ == "__main__":
    # Synthetic dataset: 4 ring graphs, 600 nodes total, 4 input features,
    # 3 classes, hidden=128 (lane-aligned), 3 GIN layers.
    graph_sizes = [150, 160, 140, 150]
    num_nodes = sum(graph_sizes)
    num_graphs = len(graph_sizes)
    num_features = 4
    num_classes = 3
    hidden = 128
    num_layers = 3
    # Production default is tm=tk=512 (sweep 256-1024; HBM-bound aggregation).
    # 256 here keeps the toy 600-node graph multi-tile: n_pad=768 -> grid (3,3),
    # which exercises the k-reduction, the diagonal self-term and the pipeline.
    tm = tk = 256

    n_pad = round_up(num_nodes, tm)                  # 768 -> layer grid (3, 3)
    f_pad = round_up(max(num_features, 128), 128)    # 4   -> 128 lanes
    c_pad = round_up(max(num_classes, 128), 128)     # 3   -> 128 lanes
    g_pad = round_up(num_graphs, 8)                  # 4   -> 8 sublanes

    key = jax.random.PRNGKey(0)
    kx, kp = jax.random.split(key)
    x = jax.random.normal(kx, (num_nodes, num_features), jnp.float32)
    edge_index = build_ring_edges(graph_sizes)
    batch = jnp.concatenate(
        [jnp.full((n,), g, jnp.int32) for g, n in enumerate(graph_sizes)])

    pkeys = jax.random.split(kp, num_layers + 1)
    conv_logical = [init_conv_params(pkeys[0], num_features, hidden)]
    for i in range(1, num_layers):
        conv_logical.append(init_conv_params(pkeys[i], hidden, hidden))
    head_logical = init_head_params(pkeys[-1], num_layers, hidden, num_classes)

    # Wrapper-side prep: fold BN, pad to lane-dense shapes, cast matmul operands
    # to bf16; adjacency stored once, exact int8 0/1, shared by all layers.
    conv_params = [prepare_conv_params(conv_logical[0], f_pad)]
    conv_params += [prepare_conv_params(p, hidden) for p in conv_logical[1:]]
    head_params = prepare_head_params(head_logical, c_pad)

    A_i8 = edge_index_to_adj_i8(edge_index, n_pad)
    P_ind, inv_count = prepare_pool(batch, num_nodes, g_pad, n_pad)
    xp = pad_features(x, n_pad, f_pad)

    fwd = jax.jit(functools.partial(gin_forward, num_classes=num_classes, tm=tm, tk=tk))
    out_pad = jax.block_until_ready(
        fwd(xp, A_i8, P_ind, inv_count, conv_params, head_params))
    out = np.asarray(out_pad)[:num_graphs, :num_classes]
    assert out.shape == (num_graphs, num_classes)

    # Tight check: kernel == pure-JAX model of the same int8/bf16/folded pipeline.
    ref_bf16 = _ref_forward_prepared(xp, A_i8, P_ind, inv_count,
                                     conv_params, head_params, num_classes)
    ref_bf16 = np.asarray(jax.block_until_ready(ref_bf16))[:num_graphs, :num_classes]
    np.testing.assert_allclose(out, ref_bf16, rtol=5e-3, atol=5e-3)

    # Sanity check against the unpadded f32 reference semantics (bf16 drift allowed).
    ref_f32 = np.asarray(jax.block_until_ready(
        _ref_forward_f32(x, edge_index, batch, conv_logical, head_logical, num_graphs)))
    np.testing.assert_allclose(out, ref_f32, rtol=5e-2, atol=5e-2)

    # log_softmax rows exponentiate to a valid distribution over the real classes.
    np.testing.assert_allclose(np.exp(out).sum(-1), 1.0, rtol=1e-3, atol=1e-3)

    print("KERNEL_OK")
</pallas_src>

<mosaic_0001>
module attributes {stable_mosaic.version = 11 : i64} {
  func.func @gin_layer_kernel(%arg0: i32, %arg1: i32, %arg2: memref<1xf32, #tpu.memory_space<smem>>, %arg3: memref<256x256xi8, #tpu.memory_space<vmem>>, %arg4: memref<256x128xbf16, #tpu.memory_space<vmem>>, %arg5: memref<128x128xbf16, #tpu.memory_space<vmem>>, %arg6: memref<1x128xf32, #tpu.memory_space<vmem>>, %arg7: memref<128x128xbf16, #tpu.memory_space<vmem>>, %arg8: memref<1x128xf32, #tpu.memory_space<vmem>>, %arg9: memref<1x128xf32, #tpu.memory_space<vmem>>, %arg10: memref<1x128xf32, #tpu.memory_space<vmem>>, %arg11: memref<256x128xbf16, #tpu.memory_space<vmem>>, %arg12: memref<256x128xf32, #tpu.memory_space<vmem>>) attributes {dimension_semantics = [#tpu.dimension_semantics<parallel>, #tpu.dimension_semantics<arbitrary>], iteration_bounds = array<i64: 3, 3>, scalar_prefetch = 0 : i64, scratch_operands = 1 : i64, tpu.core_type = #tpu.core_type<tc>, window_params = [{transform_indices = @transform_0, window_bounds = array<i64: 1>}, {transform_indices = @transform_1, window_bounds = array<i64: 256, 256>}, {transform_indices = @transform_2, window_bounds = array<i64: 256, 128>}, {pipeline_mode = #tpu.pipeline_mode<synchronous>, transform_indices = @transform_3, window_bounds = array<i64: 128, 128>}, {pipeline_mode = #tpu.pipeline_mode<synchronous>, transform_indices = @transform_4, window_bounds = array<i64: 1, 128>}, {pipeline_mode = #tpu.pipeline_mode<synchronous>, transform_indices = @transform_5, window_bounds = array<i64: 128, 128>}, {pipeline_mode = #tpu.pipeline_mode<synchronous>, transform_indices = @transform_6, window_bounds = array<i64: 1, 128>}, {pipeline_mode = #tpu.pipeline_mode<synchronous>, transform_indices = @transform_7, window_bounds = array<i64: 1, 128>}, {pipeline_mode = #tpu.pipeline_mode<synchronous>, transform_indices = @transform_8, window_bounds = array<i64: 1, 128>}, {transform_indices = @transform_9, window_bounds = array<i64: 256, 128>}]} {
    %c0_i32 = arith.constant 0 : i32
    %0 = arith.cmpi eq, %arg1, %c0_i32 : i32
    %1 = arith.extui %0 : i1 to i32
    %c0_i32_0 = arith.constant 0 : i32
    %2 = arith.cmpi ne, %1, %c0_i32_0 : i32
    scf.if %2 {
      %cst_10 = arith.constant 0.000000e+00 : f32
      %16 = vector.broadcast %cst_10 : f32 to vector<256x128xf32>
      %c0_11 = arith.constant 0 : index
      %c0_12 = arith.constant 0 : index
      %17 = vector.load %arg12[%c0_11, %c0_12] : memref<256x128xf32, #tpu.memory_space<vmem>>, vector<256x128xf32>
      tpu.vector_store %arg12[%c0_11, %c0_12], %16 {strides = array<i32>} : memref<256x128xf32, #tpu.memory_space<vmem>>, vector<256x128xf32>,
    } else {
    }
    %c0 = arith.constant 0 : index
    %c0_1 = arith.constant 0 : index
    %3 = vector.load %arg3[%c0, %c0_1] : memref<256x256xi8, #tpu.memory_space<vmem>>, vector<256x256xi8>
    %4 = arith.sitofp %3 : vector<256x256xi8> to vector<256x256xbf16>
    %c0_2 = arith.constant 0 : index
    %c0_3 = arith.constant 0 : index
    %5 = vector.load %arg12[%c0_2, %c0_3] : memref<256x128xf32, #tpu.memory_space<vmem>>, vector<256x128xf32>
    %c0_4 = arith.constant 0 : index
    %c0_5 = arith.constant 0 : index
    %6 = vector.load %arg4[%c0_4, %c0_5] : memref<256x128xbf16, #tpu.memory_space<vmem>>, vector<256x128xbf16>
    %cst = arith.constant dense<0.000000e+00> : vector<256x128xf32>
    %7 = tpu.matmul %4, %6, %cst {dimension_numbers = #tpu.dot_dimension_numbers<[1], [0], [0], [1], [0, 0, 1, 1], [], []>} : vector<256x256xbf16>, vector<256x128xbf16>, vector<256x128xf32> -> vector<256x128xf32>
    %8 = arith.addf %5, %7 : vector<256x128xf32>
    %c0_6 = arith.constant 0 : index
    %c0_7 = arith.constant 0 : index
    %9 = vector.load %arg12[%c0_6, %c0_7] : memref<256x128xf32, #tpu.memory_space<vmem>>, vector<256x128xf32>
    tpu.vector_store %arg12[%c0_6, %c0_7], %8 {strides = array<i32>} : memref<256x128xf32, #tpu.memory_space<vmem>>, vector<256x128xf32>,
    %10 = arith.cmpi eq, %arg1, %arg0 : i32
    %11 = arith.extui %10 : i1 to i32
    %c0_i32_8 = arith.constant 0 : i32
    %12 = arith.cmpi ne, %11, %c0_i32_8 : i32
    scf.if %12 {
      %c0_10 = arith.constant 0 : index
      %c0_11 = arith.constant 0 : index
      %16 = vector.load %arg12[%c0_10, %c0_11] : memref<256x128xf32, #tpu.memory_space<vmem>>, vector<256x128xf32>
      %c0_12 = arith.constant 0 : index
      %17 = memref.load %arg2[%c0_12] : memref<1xf32, #tpu.memory_space<smem>>
      %cst_13 = arith.constant 1.000000e+00 : f32
      %18 = arith.addf %cst_13, %17 : f32
      %c0_14 = arith.constant 0 : index
      %c0_15 = arith.constant 0 : index
      %19 = vector.load %arg4[%c0_14, %c0_15] : memref<256x128xbf16, #tpu.memory_space<vmem>>, vector<256x128xbf16>
      %20 = arith.extf %19 : vector<256x128xbf16> to vector<256x128xf32>
      %21 = vector.broadcast %18 : f32 to vector<256x128xf32>
      %22 = arith.mulf %21, %20 : vector<256x128xf32>
      %23 = arith.addf %16, %22 : vector<256x128xf32>
      %c0_16 = arith.constant 0 : index
      %c0_17 = arith.constant 0 : index
      %24 = vector.load %arg12[%c0_16, %c0_17] : memref<256x128xf32, #tpu.memory_space<vmem>>, vector<256x128xf32>
      tpu.vector_store %arg12[%c0_16, %c0_17], %23 {strides = array<i32>} : memref<256x128xf32, #tpu.memory_space<vmem>>, vector<256x128xf32>,
    } else {
    }
    %c2_i32 = arith.constant 2 : i32
    %13 = arith.cmpi eq, %arg1, %c2_i32 : i32
    %14 = arith.extui %13 : i1 to i32
    %c0_i32_9 = arith.constant 0 : i32
    %15 = arith.cmpi ne, %14, %c0_i32_9 : i32
    scf.if %15 {
      %c0_10 = arith.constant 0 : index
      %c0_11 = arith.constant 0 : index
      %16 = vector.load %arg12[%c0_10, %c0_11] : memref<256x128xf32, #tpu.memory_space<vmem>>, vector<256x128xf32>
      %17 = arith.truncf %16 : vector<256x128xf32> to vector<256x128xbf16>
      %c0_12 = arith.constant 0 : index
      %c0_13 = arith.constant 0 : index
      %18 = vector.load %arg5[%c0_12, %c0_13] : memref<128x128xbf16, #tpu.memory_space<vmem>>, vector<128x128xbf16>
      %cst_14 = arith.constant dense<0.000000e+00> : vector<256x128xf32>
      %19 = tpu.matmul %17, %18, %cst_14 {dimension_numbers = #tpu.dot_dimension_numbers<[1], [0], [0], [1], [0, 0, 1, 1], [], []>} : vector<256x128xbf16>, vector<128x128xbf16>, vector<256x128xf32> -> vector<256x128xf32>
      %c0_15 = arith.constant 0 : index
      %c0_16 = arith.constant 0 : index
      %20 = vector.load %arg6[%c0_15, %c0_16] : memref<1x128xf32, #tpu.memory_space<vmem>>, vector<1x128xf32>
      %21 = vector.broadcast %20 : vector<1x128xf32> to vector<256x128xf32>
      %22 = arith.addf %19, %21 : vector<256x128xf32>
      %cst_17 = arith.constant 0.000000e+00 : f32
      %23 = vector.broadcast %cst_17 : f32 to vector<256x128xf32>
      %24 = arith.maximumf %22, %23 : vector<256x128xf32>
      %25 = arith.truncf %24 : vector<256x128xf32> to vector<256x128xbf16>
      %c0_18 = arith.constant 0 : index
      %c0_19 = arith.constant 0 : index
      %26 = vector.load %arg7[%c0_18, %c0_19] : memref<128x128xbf16, #tpu.memory_space<vmem>>, vector<128x128xbf16>
      %cst_20 = arith.constant dense<0.000000e+00> : vector<256x128xf32>
      %27 = tpu.matmul %25, %26, %cst_20 {dimension_numbers = #tpu.dot_dimension_numbers<[1], [0], [0], [1], [0, 0, 1, 1], [], []>} : vector<256x128xbf16>, vector<128x128xbf16>, vector<256x128xf32> -> vector<256x128xf32>
      %c0_21 = arith.constant 0 : index
      %c0_22 = arith.constant 0 : index
      %28 = vector.load %arg8[%c0_21, %c0_22] : memref<1x128xf32, #tpu.memory_space<vmem>>, vector<1x128xf32>
      %29 = vector.broadcast %28 : vector<1x128xf32> to vector<256x128xf32>
      %30 = arith.addf %27, %29 : vector<256x128xf32>
      %cst_23 = arith.constant 0.000000e+00 : f32
      %31 = vector.broadcast %cst_23 : f32 to vector<256x128xf32>
      %32 = arith.maximumf %30, %31 : vector<256x128xf32>
      %c0_24 = arith.constant 0 : index
      %c0_25 = arith.constant 0 : index
      %33 = vector.load %arg9[%c0_24, %c0_25] : memref<1x128xf32, #tpu.memory_space<vmem>>, vector<1x128xf32>
      %34 = vector.broadcast %33 : vector<1x128xf32> to vector<256x128xf32>
      %35 = arith.mulf %32, %34 : vector<256x128xf32>
      %c0_26 = arith.constant 0 : index
      %c0_27 = arith.constant 0 : index
      %36 = vector.load %arg10[%c0_26, %c0_27] : memref<1x128xf32, #tpu.memory_space<vmem>>, vector<1x128xf32>
      %37 = vector.broadcast %36 : vector<1x128xf32> to vector<256x128xf32>
      %38 = arith.addf %35, %37 : vector<256x128xf32>
      %39 = arith.truncf %38 : vector<256x128xf32> to vector<256x128xbf16>
      %c0_28 = arith.constant 0 : index
      %c0_29 = arith.constant 0 : index
      %40 = vector.load %arg11[%c0_28, %c0_29] : memref<256x128xbf16, #tpu.memory_space<vmem>>, vector<256x128xbf16>
      tpu.vector_store %arg11[%c0_28, %c0_29], %39 {strides = array<i32>} : memref<256x128xbf16, #tpu.memory_space<vmem>>, vector<256x128xbf16>,
    } else {
    }
    return
  }
  func.func @transform_0(%arg0: i32, %arg1: i32) -> i32 {
    %c0_i32 = arith.constant 0 : i32
    %c0_i32_0 = arith.constant 0 : i32
    return %c0_i32 : i32
  }
  func.func @transform_1(%arg0: i32, %arg1: i32) -> (i32, i32) {
    %c0_i32 = arith.constant 0 : i32
    return %arg0, %arg1 : i32, i32
  }
  func.func @transform_2(%arg0: i32, %arg1: i32) -> (i32, i32) {
    %c0_i32 = arith.constant 0 : i32
    %c0_i32_0 = arith.constant 0 : i32
    return %arg1, %c0_i32 : i32, i32
  }
  func.func @transform_3(%arg0: i32, %arg1: i32) -> (i32, i32) {
    %c0_i32 = arith.constant 0 : i32
    %c0_i32_0 = arith.constant 0 : i32
    %c0_i32_1 = arith.constant 0 : i32
    return %c0_i32, %c0_i32_0 : i32, i32
  }
  func.func @transform_4(%arg0: i32, %arg1: i32) -> (i32, i32) {
    %c0_i32 = arith.constant 0 : i32
    %c0_i32_0 = arith.constant 0 : i32
    %c0_i32_1 = arith.constant 0 : i32
    return %c0_i32, %c0_i32_0 : i32, i32
  }
  func.func @transform_5(%arg0: i32, %arg1: i32) -> (i32, i32) {
    %c0_i32 = arith.constant 0 : i32
    %c0_i32_0 = arith.constant 0 : i32
    %c0_i32_1 = arith.constant 0 : i32
    return %c0_i32, %c0_i32_0 : i32, i32
  }
  func.func @transform_6(%arg0: i32, %arg1: i32) -> (i32, i32) {
    %c0_i32 = arith.constant 0 : i32
    %c0_i32_0 = arith.constant 0 : i32
    %c0_i32_1 = arith.constant 0 : i32
    return %c0_i32, %c0_i32_0 : i32, i32
  }
  func.func @transform_7(%arg0: i32, %arg1: i32) -> (i32, i32) {
    %c0_i32 = arith.constant 0 : i32
    %c0_i32_0 = arith.constant 0 : i32
    %c0_i32_1 = arith.constant 0 : i32
    return %c0_i32, %c0_i32_0 : i32, i32
  }
  func.func @transform_8(%arg0: i32, %arg1: i32) -> (i32, i32) {
    %c0_i32 = arith.constant 0 : i32
    %c0_i32_0 = arith.constant 0 : i32
    %c0_i32_1 = arith.constant 0 : i32
    return %c0_i32, %c0_i32_0 : i32, i32
  }
  func.func @transform_9(%arg0: i32, %arg1: i32) -> (i32, i32) {
    %c0_i32 = arith.constant 0 : i32
    %c0_i32_0 = arith.constant 0 : i32
    return %arg0, %c0_i32 : i32, i32
  }
}

module attributes {stable_mosaic.version = 11 : i64} {
  func.func @gin_head_kernel(%arg0: i32, %arg1: memref<8x256xbf16, #tpu.memory_space<vmem>>, %arg2: memref<8x1xf32, #tpu.memory_space<vmem>>, %arg3: memref<384x128xbf16, #tpu.memory_space<vmem>>, %arg4: memref<1x128xf32, #tpu.memory_space<vmem>>, %arg5: memref<128x128xbf16, #tpu.memory_space<vmem>>, %arg6: memref<1x128xf32, #tpu.memory_space<vmem>>, %arg7: memref<256x128xbf16, #tpu.memory_space<vmem>>, %arg8: memref<256x128xbf16, #tpu.memory_space<vmem>>, %arg9: memref<256x128xbf16, #tpu.memory_space<vmem>>, %arg10: memref<8x128xf32, #tpu.memory_space<vmem>>, %arg11: memref<8x384xf32, #tpu.memory_space<vmem>>) attributes {dimension_semantics = [#tpu.dimension_semantics<arbitrary>], iteration_bounds = array<i64: 3>, scalar_prefetch = 0 : i64, scratch_operands = 1 : i64, tpu.core_type = #tpu.core_type<tc>, window_params = [{transform_indices = @transform_0, window_bounds = array<i64: 8, 256>}, {pipeline_mode = #tpu.pipeline_mode<synchronous>, transform_indices = @transform_1, window_bounds = array<i64: 8, 1>}, {pipeline_mode = #tpu.pipeline_mode<synchronous>, transform_indices = @transform_2, window_bounds = array<i64: 384, 128>}, {pipeline_mode = #tpu.pipeline_mode<synchronous>, transform_indices = @transform_3, window_bounds = array<i64: 1, 128>}, {pipeline_mode = #tpu.pipeline_mode<synchronous>, transform_indices = @transform_4, window_bounds = array<i64: 128, 128>}, {pipeline_mode = #tpu.pipeline_mode<synchronous>, transform_indices = @transform_5, window_bounds = array<i64: 1, 128>}, {transform_indices = @transform_6, window_bounds = array<i64: 256, 128>}, {transform_indices = @transform_7, window_bounds = array<i64: 256, 128>}, {transform_indices = @transform_8, window_bounds = array<i64: 256, 128>}, {pipeline_mode = #tpu.pipeline_mode<synchronous>, transform_indices = @transform_9, window_bounds = array<i64: 8, 128>}]} {
    %c0_i32 = arith.constant 0 : i32
    %0 = arith.cmpi eq, %arg0, %c0_i32 : i32
    %1 = arith.extui %0 : i1 to i32
    %c0_i32_0 = arith.constant 0 : i32
    %2 = arith.cmpi ne, %1, %c0_i32_0 : i32
    scf.if %2 {
      %cst_21 = arith.constant 0.000000e+00 : f32
      %22 = vector.broadcast %cst_21 : f32 to vector<8x384xf32>
      %c0_22 = arith.constant 0 : index
      %c0_23 = arith.constant 0 : index
      %23 = vector.load %arg11[%c0_22, %c0_23] : memref<8x384xf32, #tpu.memory_space<vmem>>, vector<8x384xf32>
      tpu.vector_store %arg11[%c0_22, %c0_23], %22 {strides = array<i32>} : memref<8x384xf32, #tpu.memory_space<vmem>>, vector<8x384xf32>,
    } else {
    }
    %c0 = arith.constant 0 : index
    %c0_1 = arith.constant 0 : index
    %3 = vector.load %arg1[%c0, %c0_1] : memref<8x256xbf16, #tpu.memory_space<vmem>>, vector<8x256xbf16>
    %c0_2 = arith.constant 0 : index
    %c0_3 = arith.constant 0 : index
    %4 = vector.load %arg11[%c0_2, %c0_3] : memref<8x384xf32, #tpu.memory_space<vmem>>, vector<8x128xf32>
    %c0_4 = arith.constant 0 : index
    %c0_5 = arith.constant 0 : index
    %5 = vector.load %arg7[%c0_4, %c0_5] : memref<256x128xbf16, #tpu.memory_space<vmem>>, vector<256x128xbf16>
    %cst = arith.constant dense<0.000000e+00> : vector<8x128xf32>
    %6 = tpu.matmul %3, %5, %cst {dimension_numbers = #tpu.dot_dimension_numbers<[1], [0], [0], [1], [0, 0, 1, 1], [], []>} : vector<8x256xbf16>, vector<256x128xbf16>, vector<8x128xf32> -> vector<8x128xf32>
    %7 = arith.addf %4, %6 : vector<8x128xf32>
    %c0_6 = arith.constant 0 : index
    %c0_7 = arith.constant 0 : index
    %8 = vector.load %arg11[%c0_6, %c0_7] : memref<8x384xf32, #tpu.memory_space<vmem>>, vector<8x128xf32>
    tpu.vector_store %arg11[%c0_6, %c0_7], %7 {strides = array<i32>} : memref<8x384xf32, #tpu.memory_space<vmem>>, vector<8x128xf32>,
    %c0_8 = arith.constant 0 : index
    %c128 = arith.constant 128 : index
    %9 = vector.load %arg11[%c0_8, %c128] : memref<8x384xf32, #tpu.memory_space<vmem>>, vector<8x128xf32>
    %c0_9 = arith.constant 0 : index
    %c0_10 = arith.constant 0 : index
    %10 = vector.load %arg8[%c0_9, %c0_10] : memref<256x128xbf16, #tpu.memory_space<vmem>>, vector<256x128xbf16>
    %cst_11 = arith.constant dense<0.000000e+00> : vector<8x128xf32>
    %11 = tpu.matmul %3, %10, %cst_11 {dimension_numbers = #tpu.dot_dimension_numbers<[1], [0], [0], [1], [0, 0, 1, 1], [], []>} : vector<8x256xbf16>, vector<256x128xbf16>, vector<8x128xf32> -> vector<8x128xf32>
    %12 = arith.addf %9, %11 : vector<8x128xf32>
    %c0_12 = arith.constant 0 : index
    %c128_13 = arith.constant 128 : index
    %13 = vector.load %arg11[%c0_12, %c128_13] : memref<8x384xf32, #tpu.memory_space<vmem>>, vector<8x128xf32>
    tpu.vector_store %arg11[%c0_12, %c128_13], %12 {strides = array<i32>} : memref<8x384xf32, #tpu.memory_space<vmem>>, vector<8x128xf32>,
    %c0_14 = arith.constant 0 : index
    %c256 = arith.constant 256 : index
    %14 = vector.load %arg11[%c0_14, %c256] : memref<8x384xf32, #tpu.memory_space<vmem>>, vector<8x128xf32>
    %c0_15 = arith.constant 0 : index
    %c0_16 = arith.constant 0 : index
    %15 = vector.load %arg9[%c0_15, %c0_16] : memref<256x128xbf16, #tpu.memory_space<vmem>>, vector<256x128xbf16>
    %cst_17 = arith.constant dense<0.000000e+00> : vector<8x128xf32>
    %16 = tpu.matmul %3, %15, %cst_17 {dimension_numbers = #tpu.dot_dimension_numbers<[1], [0], [0], [1], [0, 0, 1, 1], [], []>} : vector<8x256xbf16>, vector<256x128xbf16>, vector<8x128xf32> -> vector<8x128xf32>
    %17 = arith.addf %14, %16 : vector<8x128xf32>
    %c0_18 = arith.constant 0 : index
    %c256_19 = arith.constant 256 : index
    %18 = vector.load %arg11[%c0_18, %c256_19] : memref<8x384xf32, #tpu.memory_space<vmem>>, vector<8x128xf32>
    tpu.vector_store %arg11[%c0_18, %c256_19], %17 {strides = array<i32>} : memref<8x384xf32, #tpu.memory_space<vmem>>, vector<8x128xf32>,
    %c2_i32 = arith.constant 2 : i32
    %19 = arith.cmpi eq, %arg0, %c2_i32 : i32
    %20 = arith.extui %19 : i1 to i32
    %c0_i32_20 = arith.constant 0 : i32
    %21 = arith.cmpi ne, %20, %c0_i32_20 : i32
    scf.if %21 {
      %c0_21 = arith.constant 0 : index
      %c0_22 = arith.constant 0 : index
      %22 = vector.load %arg11[%c0_21, %c0_22] : memref<8x384xf32, #tpu.memory_space<vmem>>, vector<8x384xf32>
      %c0_23 = arith.constant 0 : index
      %c0_24 = arith.constant 0 : index
      %23 = vector.load %arg2[%c0_23, %c0_24] : memref<8x1xf32, #tpu.memory_space<vmem>>, vector<8x1xf32>
      %24 = vector.broadcast %23 : vector<8x1xf32> to vector<8x384xf32>
      %25 = arith.mulf %22, %24 : vector<8x384xf32>
      %26 = arith.truncf %25 : vector<8x384xf32> to vector<8x384xbf16>
      %c0_25 = arith.constant 0 : index
      %c0_26 = arith.constant 0 : index
      %27 = vector.load %arg3[%c0_25, %c0_26] : memref<384x128xbf16, #tpu.memory_space<vmem>>, vector<384x128xbf16>
      %cst_27 = arith.constant dense<0.000000e+00> : vector<8x128xf32>
      %28 = tpu.matmul %26, %27, %cst_27 {dimension_numbers = #tpu.dot_dimension_numbers<[1], [0], [0], [1], [0, 0, 1, 1], [], []>} : vector<8x384xbf16>, vector<384x128xbf16>, vector<8x128xf32> -> vector<8x128xf32>
      %c0_28 = arith.constant 0 : index
      %c0_29 = arith.constant 0 : index
      %29 = vector.load %arg4[%c0_28, %c0_29] : memref<1x128xf32, #tpu.memory_space<vmem>>, vector<1x128xf32>
      %30 = vector.broadcast %29 : vector<1x128xf32> to vector<8x128xf32>
      %31 = arith.addf %28, %30 : vector<8x128xf32>
      %cst_30 = arith.constant 0.000000e+00 : f32
      %32 = vector.broadcast %cst_30 : f32 to vector<8x128xf32>
      %33 = arith.maximumf %31, %32 : vector<8x128xf32>
      %34 = arith.truncf %33 : vector<8x128xf32> to vector<8x128xbf16>
      %c0_31 = arith.constant 0 : index
      %c0_32 = arith.constant 0 : index
      %35 = vector.load %arg5[%c0_31, %c0_32] : memref<128x128xbf16, #tpu.memory_space<vmem>>, vector<128x128xbf16>
      %cst_33 = arith.constant dense<0.000000e+00> : vector<8x128xf32>
      %36 = tpu.matmul %34, %35, %cst_33 {dimension_numbers = #tpu.dot_dimension_numbers<[1], [0], [0], [1], [0, 0, 1, 1], [], []>} : vector<8x128xbf16>, vector<128x128xbf16>, vector<8x128xf32> -> vector<8x128xf32>
      %c0_34 = arith.constant 0 : index
      %c0_35 = arith.constant 0 : index
      %37 = vector.load %arg6[%c0_34, %c0_35] : memref<1x128xf32, #tpu.memory_space<vmem>>, vector<1x128xf32>
      %38 = vector.broadcast %37 : vector<1x128xf32> to vector<8x128xf32>
      %39 = arith.addf %36, %38 : vector<8x128xf32>
      %40 = tpu.iota {dimensions = array<i32: 1>} : vector<8x128xi32>
      %c3_i32 = arith.constant 3 : i32
      %41 = vector.broadcast %c3_i32 : i32 to vector<8x128xi32>
      %42 = arith.cmpi slt, %40, %41 : vector<8x128xi32>
      %cst_36 = arith.constant -1.000000e+30 : f32
      %43 = vector.broadcast %cst_36 : f32 to vector<8x128xf32>
      %44 = arith.select %42, %39, %43 : vector<8x128xi1>, vector<8x128xf32>
      %cst_37 = arith.constant dense<0xFF800000> : vector<8xf32>
      %45 = vector.multi_reduction <maximumf>, %44, %cst_37 [1] : vector<8x128xf32> to vector<8xf32>
      %46 = vector.shape_cast %45 : vector<8xf32> to vector<8x1xf32>
      %47 = vector.broadcast %46 : vector<8x1xf32> to vector<8x128xf32>
      %48 = arith.subf %44, %47 : vector<8x128xf32>
      %49 = math.exp %48 : vector<8x128xf32>
      %cst_38 = arith.constant dense<0.000000e+00> : vector<8xf32>
      %50 = vector.multi_reduction <add>, %49, %cst_38 [1] : vector<8x128xf32> to vector<8xf32>
      %51 = vector.shape_cast %50 : vector<8xf32> to vector<8x1xf32>
      %52 = math.log %51 : vector<8x1xf32>
      %53 = arith.addf %46, %52 : vector<8x1xf32>
      %54 = vector.broadcast %53 : vector<8x1xf32> to vector<8x128xf32>
      %55 = arith.subf %44, %54 : vector<8x128xf32>
      %c0_39 = arith.constant 0 : index
      %c0_40 = arith.constant 0 : index
      %56 = vector.load %arg10[%c0_39, %c0_40] : memref<8x128xf32, #tpu.memory_space<vmem>>, vector<8x128xf32>
      tpu.vector_store %arg10[%c0_39, %c0_40], %55 {strides = array<i32>} : memref<8x128xf32, #tpu.memory_space<vmem>>, vector<8x128xf32>,
    } else {
    }
    return
  }
  func.func @transform_0(%arg0: i32) -> (i32, i32) {
    %c0_i32 = arith.constant 0 : i32
    %c0_i32_0 = arith.constant 0 : i32
    return %c0_i32, %arg0 : i32, i32
  }
  func.func @transform_1(%arg0: i32) -> (i32, i32) {
    %c0_i32 = arith.constant 0 : i32
    %c0_i32_0 = arith.constant 0 : i32
    %c0_i32_1 = arith.constant 0 : i32
    return %c0_i32, %c0_i32_0 : i32, i32
  }
  func.func @transform_2(%arg0: i32) -> (i32, i32) {
    %c0_i32 = arith.constant 0 : i32
    %c0_i32_0 = arith.constant 0 : i32
    %c0_i32_1 = arith.constant 0 : i32
    return %c0_i32, %c0_i32_0 : i32, i32
  }
  func.func @transform_3(%arg0: i32) -> (i32, i32) {
    %c0_i32 = arith.constant 0 : i32
    %c0_i32_0 = arith.constant 0 : i32
    %c0_i32_1 = arith.constant 0 : i32
    return %c0_i32, %c0_i32_0 : i32, i32
  }
  func.func @transform_4(%arg0: i32) -> (i32, i32) {
    %c0_i32 = arith.constant 0 : i32
    %c0_i32_0 = arith.constant 0 : i32
    %c0_i32_1 = arith.constant 0 : i32
    return %c0_i32, %c0_i32_0 : i32, i32
  }
  func.func @transform_5(%arg0: i32) -> (i32, i32) {
    %c0_i32 = arith.constant 0 : i32
    %c0_i32_0 = arith.constant 0 : i32
    %c0_i32_1 = arith.constant 0 : i32
    return %c0_i32, %c0_i32_0 : i32, i32
  }
  func.func @transform_6(%arg0: i32) -> (i32, i32) {
    %c0_i32 = arith.constant 0 : i32
    %c0_i32_0 = arith.constant 0 : i32
    return %arg0, %c0_i32 : i32, i32
  }
  func.func @transform_7(%arg0: i32) -> (i32, i32) {
    %c0_i32 = arith.constant 0 : i32
    %c0_i32_0 = arith.constant 0 : i32
    return %arg0, %c0_i32 : i32, i32
  }
  func.func @transform_8(%arg0: i32) -> (i32, i32) {
    %c0_i32 = arith.constant 0 : i32
    %c0_i32_0 = arith.constant 0 : i32
    return %arg0, %c0_i32 : i32, i32
  }
  func.func @transform_9(%arg0: i32) -> (i32, i32) {
    %c0_i32 = arith.constant 0 : i32
    %c0_i32_0 = arith.constant 0 : i32
    %c0_i32_1 = arith.constant 0 : i32
    return %c0_i32, %c0_i32_0 : i32, i32
  }
}

module attributes {stable_mosaic.version = 11 : i64} {
  func.func @gin_layer_kernel(%arg0: i32, %arg1: i32, %arg2: memref<1xf32, #tpu.memory_space<smem>>, %arg3: memref<256x256xi8, #tpu.memory_space<vmem>>, %arg4: memref<256x128xbf16, #tpu.memory_space<vmem>>, %arg5: memref<128x128xbf16, #tpu.memory_space<vmem>>, %arg6: memref<1x128xf32, #tpu.memory_space<vmem>>, %arg7: memref<128x128xbf16, #tpu.memory_space<vmem>>, %arg8: memref<1x128xf32, #tpu.memory_space<vmem>>, %arg9: memref<1x128xf32, #tpu.memory_space<vmem>>, %arg10: memref<1x128xf32, #tpu.memory_space<vmem>>, %arg11: memref<256x128xbf16, #tpu.memory_space<vmem>>, %arg12: memref<256x128xf32, #tpu.memory_space<vmem>>) attributes {dimension_semantics = [#tpu.dimension_semantics<parallel>, #tpu.dimension_semantics<arbitrary>], iteration_bounds = array<i64: 3, 3>, scalar_prefetch = 0 : i64, scratch_operands = 1 : i64, tpu.core_type = #tpu.core_type<tc>, window_params = [{transform_indices = @transform_0, window_bounds = array<i64: 1>}, {transform_indices = @transform_1, window_bounds = array<i64: 256, 256>}, {transform_indices = @transform_2, window_bounds = array<i64: 256, 128>}, {pipeline_mode = #tpu.pipeline_mode<synchronous>, transform_indices = @transform_3, window_bounds = array<i64: 128, 128>}, {pipeline_mode = #tpu.pipeline_mode<synchronous>, transform_indices = @transform_4, window_bounds = array<i64: 1, 128>}, {pipeline_mode = #tpu.pipeline_mode<synchronous>, transform_indices = @transform_5, window_bounds = array<i64: 128, 128>}, {pipeline_mode = #tpu.pipeline_mode<synchronous>, transform_indices = @transform_6, window_bounds = array<i64: 1, 128>}, {pipeline_mode = #tpu.pipeline_mode<synchronous>, transform_indices = @transform_7, window_bounds = array<i64: 1, 128>}, {pipeline_mode = #tpu.pipeline_mode<synchronous>, transform_indices = @transform_8, window_bounds = array<i64: 1, 128>}, {transform_indices = @transform_9, window_bounds = array<i64: 256, 128>}]} {
    %c0_i32 = arith.constant 0 : i32
    %0 = arith.cmpi eq, %arg1, %c0_i32 : i32
    %1 = arith.extui %0 : i1 to i32
    %c0_i32_0 = arith.constant 0 : i32
    %2 = arith.cmpi ne, %1, %c0_i32_0 : i32
    scf.if %2 {
      %cst_10 = arith.constant 0.000000e+00 : f32
      %16 = vector.broadcast %cst_10 : f32 to vector<256x128xf32>
      %c0_11 = arith.constant 0 : index
      %c0_12 = arith.constant 0 : index
      %17 = vector.load %arg12[%c0_11, %c0_12] : memref<256x128xf32, #tpu.memory_space<vmem>>, vector<256x128xf32>
      tpu.vector_store %arg12[%c0_11, %c0_12], %16 {strides = array<i32>} : memref<256x128xf32, #tpu.memory_space<vmem>>, vector<256x128xf32>,
    } else {
    }
    %c0 = arith.constant 0 : index
    %c0_1 = arith.constant 0 : index
    %3 = vector.load %arg3[%c0, %c0_1] : memref<256x256xi8, #tpu.memory_space<vmem>>, vector<256x256xi8>
    %4 = arith.sitofp %3 : vector<256x256xi8> to vector<256x256xbf16>
    %c0_2 = arith.constant 0 : index
    %c0_3 = arith.constant 0 : index
    %5 = vector.load %arg12[%c0_2, %c0_3] : memref<256x128xf32, #tpu.memory_space<vmem>>, vector<256x128xf32>
    %c0_4 = arith.constant 0 : index
    %c0_5 = arith.constant 0 : index
    %6 = vector.load %arg4[%c0_4, %c0_5] : memref<256x128xbf16, #tpu.memory_space<vmem>>, vector<256x128xbf16>
    %cst = arith.constant dense<0.000000e+00> : vector<256x128xf32>
    %7 = tpu.matmul %4, %6, %cst {dimension_numbers = #tpu.dot_dimension_numbers<[1], [0], [0], [1], [0, 0, 1, 1], [], []>} : vector<256x256xbf16>, vector<256x128xbf16>, vector<256x128xf32> -> vector<256x128xf32>
    %8 = arith.addf %5, %7 : vector<256x128xf32>
    %c0_6 = arith.constant 0 : index
    %c0_7 = arith.constant 0 : index
    %9 = vector.load %arg12[%c0_6, %c0_7] : memref<256x128xf32, #tpu.memory_space<vmem>>, vector<256x128xf32>
    tpu.vector_store %arg12[%c0_6, %c0_7], %8 {strides = array<i32>} : memref<256x128xf32, #tpu.memory_space<vmem>>, vector<256x128xf32>,
    %10 = arith.cmpi eq, %arg1, %arg0 : i32
    %11 = arith.extui %10 : i1 to i32
    %c0_i32_8 = arith.constant 0 : i32
    %12 = arith.cmpi ne, %11, %c0_i32_8 : i32
    scf.if %12 {
      %c0_10 = arith.constant 0 : index
      %c0_11 = arith.constant 0 : index
      %16 = vector.load %arg12[%c0_10, %c0_11] : memref<256x128xf32, #tpu.memory_space<vmem>>, vector<256x128xf32>
      %c0_12 = arith.constant 0 : index
      %17 = memref.load %arg2[%c0_12] : memref<1xf32, #tpu.memory_space<smem>>
      %cst_13 = arith.constant 1.000000e+00 : f32
      %18 = arith.addf %cst_13, %17 : f32
      %c0_14 = arith.constant 0 : index
      %c0_15 = arith.constant 0 : index
      %19 = vector.load %arg4[%c0_14, %c0_15] : memref<256x128xbf16, #tpu.memory_space<vmem>>, vector<256x128xbf16>
      %20 = arith.extf %19 : vector<256x128xbf16> to vector<256x128xf32>
      %21 = vector.broadcast %18 : f32 to vector<256x128xf32>
      %22 = arith.mulf %21, %20 : vector<256x128xf32>
      %23 = arith.addf %16, %22 : vector<256x128xf32>
      %c0_16 = arith.constant 0 : index
      %c0_17 = arith.constant 0 : index
      %24 = vector.load %arg12[%c0_16, %c0_17] : memref<256x128xf32, #tpu.memory_space<vmem>>, vector<256x128xf32>
      tpu.vector_store %arg12[%c0_16, %c0_17], %23 {strides = array<i32>} : memref<256x128xf32, #tpu.memory_space<vmem>>, vector<256x128xf32>,
    } else {
    }
    %c2_i32 = arith.constant 2 : i32
    %13 = arith.cmpi eq, %arg1, %c2_i32 : i32
    %14 = arith.extui %13 : i1 to i32
    %c0_i32_9 = arith.constant 0 : i32
    %15 = arith.cmpi ne, %14, %c0_i32_9 : i32
    scf.if %15 {
      %c0_10 = arith.constant 0 : index
      %c0_11 = arith.constant 0 : index
      %16 = vector.load %arg12[%c0_10, %c0_11] : memref<256x128xf32, #tpu.memory_space<vmem>>, vector<256x128xf32>
      %17 = arith.truncf %16 : vector<256x128xf32> to vector<256x128xbf16>
      %c0_12 = arith.constant 0 : index
      %c0_13 = arith.constant 0 : index
      %18 = vector.load %arg5[%c0_12, %c0_13] : memref<128x128xbf16, #tpu.memory_space<vmem>>, vector<128x128xbf16>
      %cst_14 = arith.constant dense<0.000000e+00> : vector<256x128xf32>
      %19 = tpu.matmul %17, %18, %cst_14 {dimension_numbers = #tpu.dot_dimension_numbers<[1], [0], [0], [1], [0, 0, 1, 1], [], []>} : vector<256x128xbf16>, vector<128x128xbf16>, vector<256x128xf32> -> vector<256x128xf32>
      %c0_15 = arith.constant 0 : index
      %c0_16 = arith.constant 0 : index
      %20 = vector.load %arg6[%c0_15, %c0_16] : memref<1x128xf32, #tpu.memory_space<vmem>>, vector<1x128xf32>
      %21 = vector.broadcast %20 : vector<1x128xf32> to vector<256x128xf32>
      %22 = arith.addf %19, %21 : vector<256x128xf32>
      %cst_17 = arith.constant 0.000000e+00 : f32
      %23 = vector.broadcast %cst_17 : f32 to vector<256x128xf32>
      %24 = arith.maximumf %22, %23 : vector<256x128xf32>
      %25 = arith.truncf %24 : vector<256x128xf32> to vector<256x128xbf16>
      %c0_18 = arith.constant 0 : index
      %c0_19 = arith.constant 0 : index
      %26 = vector.load %arg7[%c0_18, %c0_19] : memref<128x128xbf16, #tpu.memory_space<vmem>>, vector<128x128xbf16>
      %cst_20 = arith.constant dense<0.000000e+00> : vector<256x128xf32>
      %27 = tpu.matmul %25, %26, %cst_20 {dimension_numbers = #tpu.dot_dimension_numbers<[1], [0], [0], [1], [0, 0, 1, 1], [], []>} : vector<256x128xbf16>, vector<128x128xbf16>, vector<256x128xf32> -> vector<256x128xf32>
      %c0_21 = arith.constant 0 : index
      %c0_22 = arith.constant 0 : index
      %28 = vector.load %arg8[%c0_21, %c0_22] : memref<1x128xf32, #tpu.memory_space<vmem>>, vector<1x128xf32>
      %29 = vector.broadcast %28 : vector<1x128xf32> to vector<256x128xf32>
      %30 = arith.addf %27, %29 : vector<256x128xf32>
      %cst_23 = arith.constant 0.000000e+00 : f32
      %31 = vector.broadcast %cst_23 : f32 to vector<256x128xf32>
      %32 = arith.maximumf %30, %31 : vector<256x128xf32>
      %c0_24 = arith.constant 0 : index
      %c0_25 = arith.constant 0 : index
      %33 = vector.load %arg9[%c0_24, %c0_25] : memref<1x128xf32, #tpu.memory_space<vmem>>, vector<1x128xf32>
      %34 = vector.broadcast %33 : vector<1x128xf32> to vector<256x128xf32>
      %35 = arith.mulf %32, %34 : vector<256x128xf32>
      %c0_26 = arith.constant 0 : index
      %c0_27 = arith.constant 0 : index
      %36 = vector.load %arg10[%c0_26, %c0_27] : memref<1x128xf32, #tpu.memory_space<vmem>>, vector<1x128xf32>
      %37 = vector.broadcast %36 : vector<1x128xf32> to vector<256x128xf32>
      %38 = arith.addf %35, %37 : vector<256x128xf32>
      %39 = arith.truncf %38 : vector<256x128xf32> to vector<256x128xbf16>
      %c0_28 = arith.constant 0 : index
      %c0_29 = arith.constant 0 : index
      %40 = vector.load %arg11[%c0_28, %c0_29] : memref<256x128xbf16, #tpu.memory_space<vmem>>, vector<256x128xbf16>
      tpu.vector_store %arg11[%c0_28, %c0_29], %39 {strides = array<i32>} : memref<256x128xbf16, #tpu.memory_space<vmem>>, vector<256x128xbf16>,
    } else {
    }
    return
  }
  func.func @transform_0(%arg0: i32, %arg1: i32) -> i32 {
    %c0_i32 = arith.constant 0 : i32
    %c0_i32_0 = arith.constant 0 : i32
    return %c0_i32 : i32
  }
  func.func @transform_1(%arg0: i32, %arg1: i32) -> (i32, i32) {
    %c0_i32 = arith.constant 0 : i32
    return %arg0, %arg1 : i32, i32
  }
  func.func @transform_2(%arg0: i32, %arg1: i32) -> (i32, i32) {
    %c0_i32 = arith.constant 0 : i32
    %c0_i32_0 = arith.constant 0 : i32
    return %arg1, %c0_i32 : i32, i32
  }
  func.func @transform_3(%arg0: i32, %arg1: i32) -> (i32, i32) {
    %c0_i32 = arith.constant 0 : i32
    %c0_i32_0 = arith.constant 0 : i32
    %c0_i32_1 = arith.constant 0 : i32
    return %c0_i32, %c0_i32_0 : i32, i32
  }
  func.func @transform_4(%arg0: i32, %arg1: i32) -> (i32, i32) {
    %c0_i32 = arith.constant 0 : i32
    %c0_i32_0 = arith.constant 0 : i32
    %c0_i32_1 = arith.constant 0 : i32
    return %c0_i32, %c0_i32_0 : i32, i32
  }
  func.func @transform_5(%arg0: i32, %arg1: i32) -> (i32, i32) {
    %c0_i32 = arith.constant 0 : i32
    %c0_i32_0 = arith.constant 0 : i32
    %c0_i32_1 = arith.constant 0 : i32
    return %c0_i32, %c0_i32_0 : i32, i32
  }
  func.func @transform_6(%arg0: i32, %arg1: i32) -> (i32, i32) {
    %c0_i32 = arith.constant 0 : i32
    %c0_i32_0 = arith.constant 0 : i32
    %c0_i32_1 = arith.constant 0 : i32
    return %c0_i32, %c0_i32_0 : i32, i32
  }
  func.func @transform_7(%arg0: i32, %arg1: i32) -> (i32, i32) {
    %c0_i32 = arith.constant 0 : i32
    %c0_i32_0 = arith.constant 0 : i32
    %c0_i32_1 = arith.constant 0 : i32
    return %c0_i32, %c0_i32_0 : i32, i32
  }
  func.func @transform_8(%arg0: i32, %arg1: i32) -> (i32, i32) {
    %c0_i32 = arith.constant 0 : i32
    %c0_i32_0 = arith.constant 0 : i32
    %c0_i32_1 = arith.constant 0 : i32
    return %c0_i32, %c0_i32_0 : i32, i32
  }
  func.func @transform_9(%arg0: i32, %arg1: i32) -> (i32, i32) {
    %c0_i32 = arith.constant 0 : i32
    %c0_i32_0 = arith.constant 0 : i32
    return %arg0, %c0_i32 : i32, i32
  }
}

</mosaic_0001>

<bundles_post_ra>
// kernel: gin_forward.7
= control target key start
LH: loop header
LB: loop body
LE: loop exit
PB: predicated region body
PF: predicated region fallthrough
CT: control target
= control target key end

     0   :  { %14 = vsyncpa [#allocation4], 0  ;;  %s1870_s30 = smov 0   ;;  %s2093_s0 = inlined_call_operand.vmem [shape: bf16[8,768], index: 0, kind: input, shape index: {}]   ;;  %s2094_s1 = inlined_call_operand.vmem [shape: f32[8,1], index: 1, kind: input, shape index: {}]   ;;  %s2095_s2 = inlined_call_operand.vmem [shape: bf16[384,128], index: 2, kind: input, shape index: {}]   ;;  %s2096_s3 = inlined_call_operand.vmem [shape: f32[1,128], index: 3, kind: input, shape index: {}]   ;;  %s2097_s4 = inlined_call_operand.vmem [shape: bf16[128,128], index: 4, kind: input, shape index: {}]   ;;  %s2098_s5 = inlined_call_operand.vmem [shape: f32[1,128], index: 5, kind: input, shape index: {}]   ;;  %s2099_s6 = inlined_call_operand.vmem [shape: bf16[768,128], index: 6, kind: input, shape index: {}]   ;;  %s2100_s7 = inlined_call_operand.vmem [shape: bf16[768,128], index: 7, kind: input, shape index: {}]   ;;  %s2101_s8 = inlined_call_operand.vmem [shape: bf16[768,128], index: 8, kind: input, shape index: {}]   ;;  %s2102_s9 = inlined_call_operand.hbm [shape: f32[8,128], index: 9, kind: output, shape index: {}]  }
   0x1 LB: > { %s1876_s10 = sadd.s32 4294967295, %s1813_s30   ;;  %p1428_p0 = scmp.ge.s32.totalorder %s1813_s30, 1  ;;  %s1813_s30 = sphi %s1870_s30, %s20_s30  }
   0x2   : > { %p317_p1 = scmp.lt.s32.totalorder %s1813_s30, 4 }
   0x4   : > { %p318_p2 = pnand %p1428_p0, %p317_p1 }
   0x5   : > { %s1429_s11 = sshll.u32 (!%p318_p2), %s1876_s10, 1  ;;  %s1431_s12 = sshll.u32 (!%p318_p2), %s1876_s10, 5 }
   0x6   : > { %321 = sbr.rel (%p318_p2) target bundleno = 1150 (0x47e), region = 56  ;;  %p364_p3 = scmp.lt.s32.totalorder (!%p318_p2), %s1429_s11, 5 }
   0x7   : > { %p370_p4 = scmp.lt.s32.totalorder (!%p318_p2), %s1431_s12, 95  ;;  %p1437_p5 = scmp.ne.s32.totalorder (!%p318_p2), %s1876_s10, 0 }
   0xb   : > { %s2104_s11 = smov (!%p364_p3, %s1429_s11), 5  ;;  %s2106_s12 = smov (!%p370_p4, %s1431_s12), 95 }
   0xc   : > { %s1430_s13 = sshll.u32 %s2104_s11, 2  ;;  %s1432_s17 = sshll.u32 %s2106_s12, 2 }
   0xd   : > { %s1885_s16 = scalar_lea.vmem %s2093_s0, %s1430_s13  ;;  %s1890_s20 = scalar_lea.vmem %s2099_s6, %s1432_s17 }
   0xe   : > { %s1895_s23 = scalar_lea.vmem %s2100_s7, %s1432_s17  ;;  %s1900_s26 = scalar_lea.vmem %s2101_s8, %s1432_s17 }
   0xf   : > { %391 = sbr.rel (%p1437_p5) target bundleno = 23 (0x17), region = 60 }
  0x14   : > { %v1815_v0 = vmov 0.0  }
  0x15   : > { %392 = vst [vmem:[#allocation2 + $0x10] sm:$0xff] %v1815_v0  ;;  %393 = vst [vmem:[#allocation2] sm:$0xff] %v1815_v0 }
  0x16   : > { %394 = vst [vmem:[#allocation2 + $0x8] sm:$0xff] %v1815_v0 }
  0x17 PF: > { %v1692_v1 = vld [vmem:[%s1890_s20 + $0x78] sm:$0xff]   ;;  %v1694_v3 = vld [vmem:[%s1890_s20 + $0x70] sm:$0xff]   ;;  %v1696_v5 = vld [vmem:[%s1890_s20 + $0x68] sm:$0xff]   ;;  %p1488_p6 = scmp.ne.s32.totalorder %s1876_s10, 2 }
  0x18   : > { %v1693_v2 = vld [vmem:[%s1890_s20 + $0x38] sm:$0xff]   ;;  %1527 = vmatprep.subr.bf16.mxu0 %v1692_v1  ;;  %v1695_v4 = vld [vmem:[%s1890_s20 + $0x30] sm:$0xff]   ;;  %v1697_v6 = vld [vmem:[%s1890_s20 + $0x28] sm:$0xff]  }
  0x19   : > { %1528 = vmatpush3.bf16.msra.mxu0 %v1693_v2  ;;  %v1698_v7 = vld [vmem:[%s1890_s20 + $0x60] sm:$0xff]   ;;  %v1700_v9 = vld [vmem:[%s1890_s20 + $0x58] sm:$0xff]   ;;  %v1702_v13 = vld [vmem:[%s1890_s20 + $0x50] sm:$0xff]  }
  0x1a   : > { %1529 = vmatprep.subr.bf16.mxu0 %v1694_v3  ;;  %v1699_v8 = vld [vmem:[%s1890_s20 + $0x20] sm:$0xff]   ;;  %v1701_v10 = vld [vmem:[%s1890_s20 + $0x18] sm:$0xff]   ;;  %v1703_v14 = vld [vmem:[%s1890_s20 + $0x10] sm:$0xff]  }
  0x1b   : > { %v1706_v11 = vld [vmem:[%s1895_s23 + $0x78] sm:$0xff]   ;;  %v1704_v15 = vld [vmem:[%s1890_s20 + $0x48] sm:$0xff]   ;;  %v1710_v16 = vld [vmem:[%s1895_s23 + $0x70] sm:$0xff]  }
  0x1c   : > { %v1707_v12 = vld [vmem:[%s1895_s23 + $0x38] sm:$0xff]   ;;  %1549 = vmatprep.subr.bf16.mxu1 %v1706_v11  ;;  %v395_v17 = vld [vmem:[%s1885_s16] sm:$0xff]  ;;  %v1712_v19 = vld [vmem:[%s1895_s23 + $0x30] sm:$0xff]  }
  0x1d   : > { %1530 = vmatpush3.bf16.msra.mxu0 %v1695_v4  ;;  %1550 = vmatpush3.bf16.msra.mxu1 %v1707_v12  ;;  %v1439_v18 = vcombine.high %v395_v17, %v395_v17  ;;  %v1705_v20 = vld [vmem:[%s1890_s20 + $0x8] sm:$0xff]   ;;  %v1708_v21 = vld [vmem:[%s1890_s20 + $0x40] sm:$0xff]   ;;  %v1714_v25 = vld [vmem:[%s1900_s26 + $0x78] sm:$0xff]   ;;  %v1438_v29 = vcombine.low %v395_v17, %v395_v17 }
  0x1e   : > { %1531 = vmatprep.subr.bf16.mxu0 %v1696_v5  ;;  %1551 = vmatprep.subr.bf16.mxu1 %v1710_v16  ;;  %v1716_v22 = vld [vmem:[%s1895_s23 + $0x68] sm:$0xff]   ;;  %v1709_v24 = vld [vmem:[%s1890_s20] sm:$0xff]   ;;  %v1715_v28 = vld [vmem:[%s1900_s26 + $0x38] sm:$0xff]  }
  0x1f   : > { %564 = vmatprep.mubr.bf16.mxu0 %v1439_v18  ;;  %735 = vmatprep.mubr.bf16.mxu1 %v1439_v18  ;;  %v1717_v23 = vld [vmem:[%s1895_s23 + $0x28] sm:$0xff]   ;;  %v1720_v26 = vld [vmem:[%s1895_s23 + $0x60] sm:$0xff]   ;;  %v1718_v30 = vld [vmem:[%s1900_s26 + $0x70] sm:$0xff]  }
  0x20   : > { %v1721_v27 = vld [vmem:[%s1895_s23 + $0x20] sm:$0xff]   ;;  %v1724_v31 = vld [vmem:[%s1895_s23 + $0x58] sm:$0xff]   ;;  %v1719_v33 = vld [vmem:[%s1900_s26 + $0x30] sm:$0xff]  }
  0x21   : > { %1532 = vmatpush3.bf16.msra.mxu0 %v1697_v6  ;;  %1552 = vmatpush3.bf16.msra.mxu1 %v1712_v19  ;;  %v1725_v32 = vld [vmem:[%s1895_s23 + $0x18] sm:$0xff]   ;;  %v1722_v34 = vld [vmem:[%s1900_s26 + $0x68] sm:$0xff]   ;;  %v1728_v35 = vld [vmem:[%s1895_s23 + $0x50] sm:$0xff]  }
  0x22   : > { %1533 = vmatprep.subr.bf16.mxu0 %v1698_v7  ;;  %1553 = vmatprep.subr.bf16.mxu1 %v1716_v22  ;;  %v1729_v36 = vld [vmem:[%s1895_s23 + $0x10] sm:$0xff]   ;;  %v1723_v37 = vld [vmem:[%s1900_s26 + $0x28] sm:$0xff]   ;;  %v1726_v38 = vld [vmem:[%s1900_s26 + $0x60] sm:$0xff]  }
  0x23   : > { %v1732_v39 = vld [vmem:[%s1895_s23 + $0x48] sm:$0xff]   ;;  %v1727_v41 = vld [vmem:[%s1900_s26 + $0x20] sm:$0xff]   ;;  %v1730_v42 = vld [vmem:[%s1900_s26 + $0x58] sm:$0xff]  }
  0x24   : > { %v1733_v40 = vld [vmem:[%s1895_s23 + $0x8] sm:$0xff]   ;;  %v1736_v43 = vld [vmem:[%s1895_s23 + $0x40] sm:$0xff]   ;;  %v1731_v45 = vld [vmem:[%s1900_s26 + $0x18] sm:$0xff]  }
  0x25   : > { %1534 = vmatpush3.bf16.msra.mxu0 %v1699_v8  ;;  %1554 = vmatpush3.bf16.msra.mxu1 %v1717_v23  ;;  %v1737_v44 = vld [vmem:[%s1895_s23] sm:$0xff]   ;;  %v1734_v46 = vld [vmem:[%s1900_s26 + $0x50] sm:$0xff]   ;;  %v1738_v48 = vld [vmem:[%s1900_s26 + $0x48] sm:$0xff]  }
  0x26   : > { %1535 = vmatprep.subr.bf16.mxu0 %v1700_v9  ;;  %1555 = vmatprep.subr.bf16.mxu1 %v1720_v26  ;;  %v1735_v47 = vld [vmem:[%s1900_s26 + $0x10] sm:$0xff]   ;;  %v1739_v49 = vld [vmem:[%s1900_s26 + $0x8] sm:$0xff]   ;;  %v1740_v50 = vld [vmem:[%s1900_s26 + $0x40] sm:$0xff]  }
  0x27   : > { %v1741_v51 = vld [vmem:[%s1900_s26] sm:$0xff]   ;;  %v396_v53 = vld [vmem:[#allocation2 + $0x10] sm:$0xff]  ;;  %v745_v3 = vld [vmem:[#allocation2 + $0x8] sm:$0xff] }
  0x28   : > { %v574_v60 = vld [vmem:[#allocation2] sm:$0xff] }
  0x29   : > { %1536 = vmatpush3.bf16.msra.mxu0 %v1701_v10  ;;  %1556 = vmatpush3.bf16.msra.mxu1 %v1721_v27 }
  0x2a   : > { %1537 = vmatprep.subr.bf16.mxu0 %v1702_v13  ;;  %1557 = vmatprep.subr.bf16.mxu1 %v1724_v31 }
  0x2d   : > { %1538 = vmatpush3.bf16.msra.mxu0 %v1703_v14  ;;  %1558 = vmatpush3.bf16.msra.mxu1 %v1725_v32 }
  0x2e   : > { %1539 = vmatprep.subr.bf16.mxu0 %v1704_v15  ;;  %1559 = vmatprep.subr.bf16.mxu1 %v1728_v35 }
  0x31   : > { %1540 = vmatpush3.bf16.msra.mxu0 %v1705_v20  ;;  %1560 = vmatpush3.bf16.msra.mxu1 %v1729_v36 }
  0x32   : > { %1541 = vmatprep.subr.bf16.mxu0 %v1708_v21  ;;  %1561 = vmatprep.subr.bf16.mxu1 %v1732_v39 }
  0x35   : > { %1542 = vmatpush3.bf16.msra.mxu0 %v1709_v24  ;;  %1562 = vmatpush3.bf16.msra.mxu1 %v1733_v40 }
  0x36   : > { %1571 = vmatprep.subr.bf16.mxu0 %v1714_v25  ;;  %1563 = vmatprep.subr.bf16.mxu1 %v1736_v43 }
  0x38   : > { %565 = vmatmul.mubr.bf16.vlgmr.msra.gmra.mxu0 %v1438_v29 }
  0x39   : > { %1572 = vmatpush3.bf16.msra.mxu0 %v1715_v28  ;;  %906 = vmatprep.mubr.bf16.mxu0 %v1439_v18 }
  0x3a   : > { %1573 = vmatprep.subr.bf16.mxu0 %v1718_v30  ;;  %1564 = vmatpush3.bf16.msra.mxu1 %v1737_v44 }
  0x3d   : > { %1574 = vmatpush3.bf16.msra.mxu0 %v1719_v33  ;;  %736 = vmatmul.mubr.bf16.vlgmr.msra.gmra.mxu1 %v1438_v29 }
  0x3e   : > { %1575 = vmatprep.subr.bf16.mxu0 %v1722_v34 }
  0x41   : > { %1576 = vmatpush3.bf16.msra.mxu0 %v1723_v37 }
  0x42   : > { %1577 = vmatprep.subr.bf16.mxu0 %v1726_v38 }
  0x45   : > { %1578 = vmatpush3.bf16.msra.mxu0 %v1727_v41 }
  0x46   : > { %1579 = vmatprep.subr.bf16.mxu0 %v1730_v42 }
  0x49   : > { %1580 = vmatpush3.bf16.msra.mxu0 %v1731_v45 }
  0x4a   : > { %1581 = vmatprep.subr.bf16.mxu0 %v1734_v46 }
  0x4d   : > { %1582 = vmatpush3.bf16.msra.mxu0 %v1735_v47 }
  0x4e   : > { %1583 = vmatprep.subr.bf16.mxu0 %v1738_v48 }
  0x51   : > { %1584 = vmatpush3.bf16.msra.mxu0 %v1739_v49 }
  0x52   : > { %1585 = vmatprep.subr.bf16.mxu0 %v1740_v50 }
  0x55   : > { %1586 = vmatpush3.bf16.msra.mxu0 %v1741_v51 }
  0x58   : > { %907 = vmatmul.mubr.bf16.vlgmr.msra.gmra.mxu0 %v1438_v29 }
  0xf8   : > { %v1543_v52 = vpop.f32.mrf.mxu0 }
  0xfa   : > { %v1544_v54 = vpop.f32.mrf.mxu0 }
  0xfb   : > { %v1545_v55 = vadd.f32 %v1544_v54, %v1543_v52 }
  0xfc   : > { %v1546_v56 = vpop.f32.mrf.mxu0 }
  0xfd   : > { %v572_v57 = vadd.f32 %v1545_v55, %v396_v53  ;;  %v1565_v59 = vpop.f32.mrf.mxu1 }
  0xfe   : > { %v1547_v58 = vpop.f32.mrf.mxu0 }
  0xff   : > { %573 = vst [vmem:[#allocation2 + $0x10] sm:$0xff] %v572_v57  ;;  %v1566_v61 = vpop.f32.mrf.mxu1 }
 0x100   : > { %v1567_v62 = vadd.f32 %v1566_v61, %v1565_v59 }
 0x101   : > { %v1568_v63 = vpop.f32.mrf.mxu1 }
 0x102   : > { %v743_v0 = vadd.f32 %v1567_v62, %v574_v60 }
 0x103   : > { %v1569_v1 = vpop.f32.mrf.mxu1 }
 0x104   : > { %744 = vst [vmem:[#allocation2] sm:$0xff] %v743_v0 }
 0x118   : > { %v1587_v2 = vpop.f32.mrf.mxu0 }
 0x11a   : > { %v1588_v4 = vpop.f32.mrf.mxu0 }
 0x11b   : > { %v1589_v5 = vadd.f32 %v1588_v4, %v1587_v2  ;;  %919 = sbr.rel (%p1488_p6) target bundleno = 1135 (0x46f), region = 64 }
 0x11c   : > { %v1590_v6 = vpop.f32.mrf.mxu0 }
 0x11d   : > { %v914_v7 = vadd.f32 %v1589_v5, %v745_v3 }
 0x11e   : > { %v1591_v8 = vpop.f32.mrf.mxu0 }
 0x11f   : > { %915 = vst [vmem:[#allocation2 + $0x8] sm:$0xff] %v914_v7 }
 0x120   : > { %v923_v9 = vld [vmem:[%s2094_s1] sm:$0xff]  ;;  %v1743_v10 = vld [vmem:[%s2095_s2 + $0x78] sm:$0xff]   ;;  %v1816_v11 = vmov 0   ;;  %v1817_v12 = vmov 0.0   ;;  %vm1818_vm0 = vmmov 0   ;;  %v1746_v15 = vld [vmem:[%s2095_s2 + $0x70] sm:$0xff]   ;;  %v1327_v4 = vlaneseq }
 0x121   : > { %1742 = vset.pattern.permute.xlu0 %v1816_v11  ;;  %1633 = vmatprep.subr.bf16.mxu1 %v1817_v12  ;;  %v1744_v13 = vld [vmem:[%s2095_s2 + $0xb8] sm:$0xff]   ;;  %v1747_v16 = vld [vmem:[%s2095_s2 + $0xb0] sm:$0xff]   ;;  %v1749_v18 = vld [vmem:[%s2095_s2 + $0x68] sm:$0xff]  }
 0x122   : > { %926 = vperm.xlu0 %1742, %v923_v9   ;;  %1593 = vmatprep.subr.bf16.mxu0 %v1743_v10  ;;  %v1745_v14 = vld [vmem:[%s2095_s2 + $0x38] sm:$0xff]   ;;  %v1748_v17 = vld [vmem:[%s2095_s2 + $0x30] sm:$0xff]   ;;  %v1750_v19 = vld [vmem:[%s2095_s2 + $0xa8] sm:$0xff]   ;;  %v1328_v5 = vand.u32 127, %v1327_v4 }
 0x123   : > { %1649 = vmatprep.mubr.msk.bf16.mxu1 %vm1818_vm0, %v1817_v12  ;;  %1634 = vmatpush3.bf16.msra.mxu1 %v1744_v13  ;;  %v1751_v20 = vld [vmem:[%s2095_s2 + $0x28] sm:$0xff]   ;;  %v1752_v21 = vld [vmem:[%s2095_s2 + $0x60] sm:$0xff]   ;;  %v1755_v24 = vld [vmem:[%s2095_s2 + $0x58] sm:$0xff]  }
 0x124   : > { %1594 = vmatpush3.bf16.msra.mxu0 %v1745_v14  ;;  %1635 = vmatprep.subr.bf16.mxu1 %v1817_v12  ;;  %v1753_v22 = vld [vmem:[%s2095_s2 + $0xa0] sm:$0xff]   ;;  %v1756_v25 = vld [vmem:[%s2095_s2 + $0x98] sm:$0xff]   ;;  %v1758_v27 = vld [vmem:[%s2095_s2 + $0x50] sm:$0xff]   ;;  %vm1329_vm1 = vcmp.lt.s32.totalorder %v1328_v5, 3 }
 0x125   : > { %1595 = vmatprep.subr.bf16.mxu0 %v1746_v15  ;;  %v1754_v23 = vld [vmem:[%s2095_s2 + $0x20] sm:$0xff]   ;;  %v1757_v26 = vld [vmem:[%s2095_s2 + $0x18] sm:$0xff]   ;;  %v1759_v28 = vld [vmem:[%s2095_s2 + $0x90] sm:$0xff]  }
 0x126   : > { %v1760_v29 = vld [vmem:[%s2095_s2 + $0x10] sm:$0xff]   ;;  %v1761_v30 = vld [vmem:[%s2095_s2 + $0x48] sm:$0xff]   ;;  %v1764_v33 = vld [vmem:[%s2095_s2 + $0x40] sm:$0xff]  }
 0x127   : > { %1636 = vmatpush3.bf16.msra.mxu1 %v1747_v16  ;;  %v1762_v31 = vld [vmem:[%s2095_s2 + $0x88] sm:$0xff]   ;;  %v1765_v34 = vld [vmem:[%s2095_s2 + $0x80] sm:$0xff]   ;;  %v920_v36 = vld [vmem:[#allocation2 + $0x10] sm:$0xff] }
 0x128   : > { %1596 = vmatpush3.bf16.msra.mxu0 %v1748_v17  ;;  %1637 = vmatprep.subr.bf16.mxu1 %v1817_v12  ;;  %v1763_v32 = vld [vmem:[%s2095_s2 + $0x8] sm:$0xff]   ;;  %v1766_v35 = vld [vmem:[%s2095_s2] sm:$0xff]   ;;  %v1767_v46 = vld [vmem:[%s2097_s4 + $0x38] sm:$0xff]  }
 0x129   : > { %1597 = vmatprep.subr.bf16.mxu0 %v1749_v18  ;;  %v922_v37 = vld [vmem:[#allocation2 + $0x8] sm:$0xff]  ;;  %v921_v38 = vld [vmem:[#allocation2] sm:$0xff]  ;;  %v1768_v47 = vld [vmem:[%s2097_s4 + $0x30] sm:$0xff]  }
 0x12a   : > { %v1769_v48 = vld [vmem:[%s2097_s4 + $0x28] sm:$0xff]   ;;  %v1770_v49 = vld [vmem:[%s2097_s4 + $0x20] sm:$0xff]   ;;  %v1771_v50 = vld [vmem:[%s2097_s4 + $0x18] sm:$0xff]  }
 0x12b   : > { %1638 = vmatpush3.bf16.msra.mxu1 %v1750_v19  ;;  %v1772_v51 = vld [vmem:[%s2097_s4 + $0x10] sm:$0xff]   ;;  %v1773_v52 = vld [vmem:[%s2097_s4 + $0x8] sm:$0xff]   ;;  %v1774_v53 = vld [vmem:[%s2097_s4] sm:$0xff]  }
 0x12c   : > { %1598 = vmatpush3.bf16.msra.mxu0 %v1751_v20  ;;  %1639 = vmatprep.subr.bf16.mxu1 %v1817_v12  ;;  %v1489_v57 = vld [vmem:[%s2096_s3] ss:$0 sm:$0xff] }
 0x12d   : > { %1599 = vmatprep.subr.bf16.mxu0 %v1752_v21  ;;  %v1514_v6 = vld [vmem:[%s2098_s5] ss:$0 sm:$0xff] }
 0x12f   : > { %1640 = vmatpush3.bf16.msra.mxu1 %v1753_v22 }
 0x130   : > { %1600 = vmatpush3.bf16.msra.mxu0 %v1754_v23  ;;  %1641 = vmatprep.subr.bf16.mxu1 %v1817_v12 }
 0x131   : > { %1601 = vmatprep.subr.bf16.mxu0 %v1755_v24 }
 0x133   : > { %1642 = vmatpush3.bf16.msra.mxu1 %v1756_v25 }
 0x134   : > { %1602 = vmatpush3.bf16.msra.mxu0 %v1757_v26  ;;  %1643 = vmatprep.subr.bf16.mxu1 %v1817_v12 }
 0x135   : > { %1603 = vmatprep.subr.bf16.mxu0 %v1758_v27 }
 0x137   : > { %1644 = vmatpush3.bf16.msra.mxu1 %v1759_v28 }
 0x138   : > { %1604 = vmatpush3.bf16.msra.mxu0 %v1760_v29  ;;  %1645 = vmatprep.subr.bf16.mxu1 %v1817_v12 }
 0x139   : > { %1605 = vmatprep.subr.bf16.mxu0 %v1761_v30 }
 0x13b   : > { %1646 = vmatpush3.bf16.msra.mxu1 %v1762_v31 }
 0x13c   : > { %1606 = vmatpush3.bf16.msra.mxu0 %v1763_v32  ;;  %1647 = vmatprep.subr.bf16.mxu1 %v1817_v12 }
 0x13d   : > { %1607 = vmatprep.subr.bf16.mxu0 %v1764_v33 }
 0x13f   : > { %1648 = vmatpush3.bf16.msra.mxu1 %v1765_v34 }
 0x140   : > { %1608 = vmatpush3.bf16.msra.mxu0 %v1766_v35 }
 0x141   : > { %1653 = vmatprep.subr.bf16.mxu0 %v1817_v12 }
 0x19d   : > { %v927_v39 = vpop.permute.xlu0 %926 }
 0x19e   : > { %v929_v40 = vmul.f32 %v927_v39, %v920_v36  ;;  %v931_v41 = vmul.f32 %v927_v39, %v922_v37  ;;  %v930_v42 = vmul.f32 %v927_v39, %v921_v38 }
 0x1a0   : > { %v933_v43 = vpack.c.bf16 %v930_v42, %v930_v42  ;;  %v934_v44 = vpack.c.bf16 %v931_v41, %v931_v41  ;;  %v932_v45 = vpack.c.bf16 %v929_v40, %v929_v40 }
 0x1a2   : > { %1166 = vmatprep.mubr.bf16.mxu0 %v933_v43  ;;  %1650 = vmatmul.mubr.bf16.vlgmr.msra.gmra.mxu1 %v934_v44 }
 0x1a3   : > { %1167 = vmatmul.mubr.bf16.vlgmr.msra.gmra.mxu0 %v932_v45 }
 0x1a4   : > { %1654 = vmatpush3.bf16.msra.mxu0 %v1767_v46  ;;  %1669 = vmatprep.mubr.msk.bf16.mxu0 %vm1818_vm0, %v1817_v12 }
 0x1a5   : > { %1655 = vmatprep.subr.bf16.mxu0 %v1817_v12 }
 0x1a8   : > { %1656 = vmatpush3.bf16.msra.mxu0 %v1768_v47 }
 0x1a9   : > { %1657 = vmatprep.subr.bf16.mxu0 %v1817_v12 }
 0x1ac   : > { %1658 = vmatpush3.bf16.msra.mxu0 %v1769_v48 }
 0x1ad   : > { %1659 = vmatprep.subr.bf16.mxu0 %v1817_v12 }
 0x1b0   : > { %1660 = vmatpush3.bf16.msra.mxu0 %v1770_v49 }
 0x1b1   : > { %1661 = vmatprep.subr.bf16.mxu0 %v1817_v12 }
 0x1b4   : > { %1662 = vmatpush3.bf16.msra.mxu0 %v1771_v50 }
 0x1b5   : > { %1663 = vmatprep.subr.bf16.mxu0 %v1817_v12 }
 0x1b8   : > { %1664 = vmatpush3.bf16.msra.mxu0 %v1772_v51 }
 0x1b9   : > { %1665 = vmatprep.subr.bf16.mxu0 %v1817_v12 }
 0x1bc   : > { %1666 = vmatpush3.bf16.msra.mxu0 %v1773_v52 }
 0x1bd   : > { %1667 = vmatprep.subr.bf16.mxu0 %v1817_v12 }
 0x1c0   : > { %1668 = vmatpush3.bf16.msra.mxu0 %v1774_v53 }
 0x262   : > { %v1208_v54 = vpop.f32.mrf.mxu1 }
 0x263   : > { %v1609_v55 = vpop.f32.mrf.mxu0 }
 0x264   : > { %v1651_v56 = vpop.f32.mrf.mxu1 }
 0x265   : > { %v1610_v58 = vpop.f32.mrf.mxu0 }
 0x266   : > { %v1611_v59 = vadd.f32 %v1610_v58, %v1609_v55  ;;  %v1211_v60 = vpop.f32.mrf.mxu1 }
 0x267   : > { %v1612_v61 = vpop.f32.mrf.mxu0 }
 0x268   : > { %v1169_v62 = vadd.f32 %v1611_v59, %v1489_v57  ;;  %v1652_v63 = vpop.f32.mrf.mxu1 }
 0x269   : > { %v1613_v0 = vpop.f32.mrf.mxu0 }
 0x26a   : > { %v1209_v1 = vadd.f32 %v1208_v54, %v1169_v62 }
 0x26c   : > { %v1214_v2 = vmax.f32 %v1209_v1, 0.0 }
 0x26e   : > { %v1215_v3 = vpack.c.bf16 %v1214_v2, %v1214_v2 }
 0x270   : > { %1670 = vmatmul.mubr.bf16.vlgmr.msra.gmra.mxu0 %v1215_v3 }
 0x330   : > { %v1321_v7 = vpop.f32.mrf.mxu0 }
 0x331   : > { %v1322_v8 = vadd.f32 %v1514_v6, %v1321_v7 }
 0x332   : > { %v1671_v9 = vpop.f32.mrf.mxu0 }
 0x333   : > { %v1330_v10 = vsel %vm1329_vm1, %v1322_v8, -1e+30 }
 0x334   : > { %1331 = vmax.xlane.f32.xlu0 %v1330_v10  ;;  %v1324_v11 = vpop.f32.mrf.mxu0 }
 0x336   : > { %v1672_v12 = vpop.f32.mrf.mxu0 }
 0x3bd   : > { %v1332_v13 = vpop.xlane.xlu0 %1331 }
 0x3be   : > { %v1333_v14 = vsub.f32 %v1330_v10, %v1332_v13 }
 0x3c0   : > { %v1334_v15 = vmul.f32 1.442695, %v1333_v14 }
 0x3c2   : > { %1775 = vpow2.f32 %v1334_v15 }
 0x3cf   : > { %v1776_v16 = vpop.eup %1775 }
 0x3d0   : > { %1336 = vadd.xlane.f32.xlu1 %v1776_v16 }
 0x459   : > { %v1337_v17 = vpop.xlane.xlu1 %1336 }
 0x45a   : > { %1777 = vlog2.f32 %v1337_v17 }
 0x467   : > { %v1778_v18 = vpop.eup %1777 }
 0x468   : > { %v1339_v19 = vmul.f32 0.6931472, %v1778_v18 }
 0x46a   : > { %v1340_v20 = vadd.f32 %v1339_v19, %v1332_v13 }
 0x46c   : > { %v1341_v21 = vsub.f32 %v1330_v10, %v1340_v20 }
 0x46e   : > { %1342 = vst [vmem:[#allocation3] sm:$0xff] %v1341_v21 }
 0x46f PF: > { %p1677_p7 = scmp.eq.s32.totalorder %s1876_s10, 2  ;;  %s1819_s21 = smov [#allocation3]  }
 0x470   : > { %s1350_s22 = sshll.u32 %s1819_s21, 4  ;;  %s1351_s22 = int_to_ptr.vmem [resolvable:$true] %s1350_s22 }
 0x471   : > { %s1779_s23 = scalar_lea.vmem %s1351_s22, 128  ;;  %p1786_p11 = scmp.lt.s32.totalorder %s1351_s22, %s1351_s22 }
 0x472   : > { %p1780_p8 = scmp.ne.s32.totalorder %s1351_s22, %s1779_s23  ;;  %p1787_p12 = scmp.lt.s32.totalorder %s1779_s23, %s1779_s23 }
 0x474   : > { %p1781_p9 = pnand %p1780_p8, %p1677_p7  ;;  %p1788_p13 = por %p1787_p12, %p1786_p11 }
 0x476   : > { %p1782_p10 = pneg %p1781_p9 }
 0x478   : > { %p1789_p0 = pnand %p1788_p13, %p1782_p10 }
 0x47a   : > { %1792 = shalt.err (!%p1789_p0)
}
 0x47b   : > { %1674 = dma.vmem_to_hbm [thread:$0]  (%p1677_p7), %s1351_s22, 128, %s2102_s9, [#allocation4]  }
 0x47c   : > { %1808 = dma.done.wait (%p1677_p7), [#allocation4], 128  }
 0x47d   : > { %1810 = vsyncadd (%p1677_p7), [#allocation4], 4294967168 }
 0x47e PF: > { %s20_s30 = sadd.s32 1, %s1813_s30  }
 0x47f   : > { %p17_p1 = scmp.ge.s32.totalorder %s20_s30, 5  }
 0x481   :  { %19 = sbr.rel (!%p17_p1) target bundleno = 1 (0x1), region = 100 }
 0x486   :  { %1363 = vsyncpa [#allocation4], 1 }
 0x487   :  { %1365 = vsyncpa [#allocation4 + $0x1], 1 }

// kernel: gin_forward.5
= control target key start
LH: loop header
LB: loop body
LE: loop exit
PB: predicated region body
PF: predicated region fallthrough
CT: control target
= control target key end

     0   :  { %s3198_s0 = inlined_call_operand.<no memory space> [shape: f32[1], index: 0, kind: input, shape index: {}]   ;;  %s3199_s1 = inlined_call_operand.vmem [shape: s8[768,768], index: 1, kind: input, shape index: {}]   ;;  %s3200_s2 = inlined_call_operand.vmem [shape: bf16[768,128], index: 2, kind: input, shape index: {}]   ;;  %s3201_s3 = inlined_call_operand.vmem [shape: bf16[128,128], index: 3, kind: input, shape index: {}]   ;;  %s3202_s4 = inlined_call_operand.vmem [shape: f32[1,128], index: 4, kind: input, shape index: {}]   ;;  %s3203_s5 = inlined_call_operand.vmem [shape: bf16[128,128], index: 5, kind: input, shape index: {}]   ;;  %s3204_s6 = inlined_call_operand.vmem [shape: f32[1,128], index: 6, kind: input, shape index: {}]   ;;  %s3205_s7 = inlined_call_operand.vmem [shape: f32[1,128], index: 7, kind: input, shape index: {}]   ;;  %s3206_s8 = inlined_call_operand.vmem [shape: f32[1,128], index: 8, kind: input, shape index: {}]   ;;  %s3207_s9 = inlined_call_operand.vmem [shape: bf16[768,128], index: 9, kind: output, shape index: {}]  }
   0x1   :  { %14 = sst [smem:[#allocation3]] %s3198_s0 }
   0x2   :  { %s2784_s11 = smov 0   ;;  %s2786_s12 = smov 0  }
   0x3   :  { %s2788_s13 = smov 0   ;;  %s2790_s14 = smov 0  }
   0x4   :  { %s2792_s15 = smov 0   ;;  %s2794_s16 = smov 0  }
   0x5   :  { %s2796_s17 = smov 0  }
   0x6 LB: > { %s29_s0 = sadd.s32 1, %s2720_s15  ;;  %s32_s18 = sadd.s32 1, %s2724_s16  ;;  %s2728_s17 = sphi %s2796_s17, %s20_s17   ;;  %s2724_s16 = sphi %s2794_s16, %s3213_s16   ;;  %s2720_s15 = sphi %s2792_s15, %s3212_s15   ;;  %s2716_s14 = sphi %s2790_s14, %s3211_s14   ;;  %s2712_s13 = sphi %s2788_s13, %s3210_s13   ;;  %s2708_s12 = sphi %s2786_s12, %s3209_s12   ;;  %s2704_s11 = sphi %s2784_s11, %s3208_s11  }
   0x7   : > { %p30_p0 = scmp.ge.s32.totalorder %s29_s0, 3  ;;  %p69_p1 = scmp.ne.s32.totalorder %s2708_s12, %s2704_s11 }
   0x8   : > { %p70_p2 = scmp.eq.s32.totalorder %s2728_s17, 0  ;;  %s62_s22 = sadd.s32 1, %s2708_s12 }
   0x9   : > { %s3215_s0 = smov (%p30_p0, %s29_s0), 0  ;;  %s3217_s18 = smov (!%p30_p0, %s32_s18), %s2724_s16 }
   0xa   : > { %p71_p3 = por %p70_p2, %p69_p1  ;;  %p34_p4 = scmp.ge.s32.totalorder %s3217_s18, 3 }
   0xb   : > { %s58_s19 = ssub.s32 %s2720_s15, %s3215_s0  ;;  %p2021_p6 = scmp.ge.s32.totalorder %s2728_s17, 9 }
   0xc   : > { %s3219_s18 = smov (%p34_p4, %s3217_s18), 0 }
   0xd   : > { %s57_s20 = ssub.s32 %s2724_s16, %s3219_s18  ;;  %294 = sbr.rel (%p2021_p6) target bundleno = 34 (0x22), region = 44 }
   0xe   : > { %s59_s21 = sor.u32 %s58_s19, %s57_s20 }
   0xf   : > { %p60_p5 = scmp.eq.s32.totalorder %s59_s21, 0 }
  0x11   : > { %s2835_s23 = scalar_select %p60_p5, %s2708_s12, %s62_s22  }
  0x12   : > { %297 = sbr.rel (!%p71_p3) target bundleno = 34 (0x22), region = 48  ;;  %s299_s24 = sand.u32 (%p71_p3), 1, %s2708_s12  }
  0x13   : > { %s2024_s25 = sshll.u32 (%p71_p3), %s2720_s15, 1  ;;  %s2022_s26 = sshll.u32 (%p71_p3), %s299_s24, 7 }
  0x14   : > { %s2584_s27 = smul.u32 (%p71_p3), 48, %s2724_s16  ;;  %s301_s20 = scalar_lea.vmem (%p71_p3), [#allocation4], %s2022_s26 }
  0x16   : > { %s305_s28 = sadd.s32 (%p71_p3), %s2584_s27, %s2024_s25 }
  0x17   : > { %s2026_s29 = sshll.u32 %s305_s28, 3 }
  0x18   : > { %s2844_s19 = scalar_lea.vmem %s3199_s1, %s2026_s29 }
  0x19   : > { %v320_v0 = vld [vmem:[%s2844_s19] sm:$0xff]  ;;  %v322_v1 = vld [vmem:[%s2844_s19 + $0x8] sm:$0xff]  ;;  %v324_v2 = vld [vmem:[%s2844_s19 + $0x30] sm:$0xff] }
  0x1a   : > { %321 = vst [vmem:[%s301_s20] sm:$0xff] %v320_v0  ;;  %323 = vst [vmem:[%s301_s20 + $0x8] sm:$0xff] %v322_v1  ;;  %v326_v3 = vld [vmem:[%s2844_s19 + $0x38] sm:$0xff]  ;;  %v328_v4 = vld [vmem:[%s2844_s19 + $0x60] sm:$0xff] }
  0x1b   : > { %325 = vst [vmem:[%s301_s20 + $0x10] sm:$0xff] %v324_v2  ;;  %v330_v5 = vld [vmem:[%s2844_s19 + $0x68] sm:$0xff]  ;;  %327 = vst [vmem:[%s301_s20 + $0x18] sm:$0xff] %v326_v3  ;;  %v332_v6 = vld [vmem:[%s2844_s19 + $0x90] sm:$0xff] }
  0x1c   : > { %329 = vst [vmem:[%s301_s20 + $0x20] sm:$0xff] %v328_v4  ;;  %331 = vst [vmem:[%s301_s20 + $0x28] sm:$0xff] %v330_v5  ;;  %v334_v7 = vld [vmem:[%s2844_s19 + $0x98] sm:$0xff]  ;;  %v336_v8 = vld [vmem:[%s2844_s19 + $0xc0] sm:$0xff] }
  0x1d   : > { %333 = vst [vmem:[%s301_s20 + $0x30] sm:$0xff] %v332_v6  ;;  %335 = vst [vmem:[%s301_s20 + $0x38] sm:$0xff] %v334_v7  ;;  %v338_v9 = vld [vmem:[%s2844_s19 + $0xc8] sm:$0xff]  ;;  %v340_v10 = vld [vmem:[%s2844_s19 + $0xf0] sm:$0xff] }
  0x1e   : > { %337 = vst [vmem:[%s301_s20 + $0x40] sm:$0xff] %v336_v8  ;;  %v342_v11 = vld [vmem:[%s2844_s19 + $0xf8] sm:$0xff]  ;;  %339 = vst [vmem:[%s301_s20 + $0x48] sm:$0xff] %v338_v9  ;;  %v344_v12 = vld [vmem:[%s2844_s19 + $0x120] sm:$0xff] }
  0x1f   : > { %341 = vst [vmem:[%s301_s20 + $0x50] sm:$0xff] %v340_v10  ;;  %343 = vst [vmem:[%s301_s20 + $0x58] sm:$0xff] %v342_v11  ;;  %v346_v13 = vld [vmem:[%s2844_s19 + $0x128] sm:$0xff]  ;;  %v348_v14 = vld [vmem:[%s2844_s19 + $0x150] sm:$0xff] }
  0x20   : > { %345 = vst [vmem:[%s301_s20 + $0x60] sm:$0xff] %v344_v12  ;;  %347 = vst [vmem:[%s301_s20 + $0x68] sm:$0xff] %v346_v13  ;;  %v350_v15 = vld [vmem:[%s2844_s19 + $0x158] sm:$0xff] }
  0x21   : > { %349 = vst [vmem:[%s301_s20 + $0x70] sm:$0xff] %v348_v14  ;;  %351 = vst [vmem:[%s301_s20 + $0x78] sm:$0xff] %v350_v15 }
  0x22 PF: > { %p2027_p7 = scmp.ge.s32.totalorder %s2728_s17, 1  ;;  %p365_p8 = scmp.lt.s32.totalorder %s2728_s17, 10 }
  0x24   : > { %p366_p9 = pnand %p2027_p7, %p365_p8 }
  0x25   : > { %s372_s21 = sand.u32 (!%p366_p9), 1, %s2704_s11   ;;  %s2029_s22 = sshll.u32 (!%p366_p9), %s2712_s13, 5 }
  0x26   : > { %369 = sbr.rel (%p366_p9) target bundleno = 902 (0x386), region = 75  ;;  %s2028_s24 = sshll.u32 (!%p366_p9), %s372_s21, 7 }
  0x27   : > { %p415_p10 = scmp.lt.s32.totalorder (!%p366_p9), %s2029_s22, 95  ;;  %s2031_s25 = sshll.u32 (!%p366_p9), %s2716_s14, 5 }
  0x28   : > { %p421_p11 = scmp.lt.s32.totalorder (!%p366_p9), %s2031_s25, 95  ;;  %s2877_s11 = scalar_lea.vmem (!%p366_p9), [#allocation4], %s2028_s24 }
  0x29   : > { %p2033_p12 = scmp.ne.s32.totalorder (!%p366_p9), %s2712_s13, 0 }
  0x2b   : > { %s3221_s22 = smov (!%p415_p10, %s2029_s22), 95  ;;  %s3223_s25 = smov (!%p421_p11, %s2031_s25), 95 }
  0x2c   : > { %s2030_s26 = sshll.u32 %s3221_s22, 2  ;;  %s2032_s30 = sshll.u32 %s3223_s25, 2 }
  0x2d   : > { %s2870_s29 = scalar_lea.vmem %s3200_s2, %s2030_s26  ;;  %s2875_s20 = scalar_lea.vmem %s3207_s9, %s2032_s30 }
  0x2e   : > { %430 = sbr.rel (%p2033_p12) target bundleno = 68 (0x44), region = 83 }
  0x33   : > { %v2730_v16 = vmov 0.0  }
  0x34   : > { %431 = vst [vmem:[#allocation2 + $0xb0] sm:$0xff] %v2730_v16  ;;  %432 = vst [vmem:[#allocation2] sm:$0xff] %v2730_v16 }
  0x35   : > { %433 = vst [vmem:[#allocation2 + $0xd8] sm:$0xff] %v2730_v16  ;;  %434 = vst [vmem:[#allocation2 + $0x18] sm:$0xff] %v2730_v16 }
  0x36   : > { %435 = vst [vmem:[#allocation2 + $0x50] sm:$0xff] %v2730_v16  ;;  %436 = vst [vmem:[#allocation2 + $0x68] sm:$0xff] %v2730_v16 }
  0x37   : > { %437 = vst [vmem:[#allocation2 + $0x30] sm:$0xff] %v2730_v16  ;;  %438 = vst [vmem:[#allocation2 + $0x48] sm:$0xff] %v2730_v16 }
  0x38   : > { %439 = vst [vmem:[#allocation2 + $0x80] sm:$0xff] %v2730_v16  ;;  %440 = vst [vmem:[#allocation2 + $0x88] sm:$0xff] %v2730_v16 }
  0x39   : > { %441 = vst [vmem:[#allocation2 + $0xe8] sm:$0xff] %v2730_v16  ;;  %442 = vst [vmem:[#allocation2 + $0xb8] sm:$0xff] %v2730_v16 }
  0x3a   : > { %443 = vst [vmem:[#allocation2 + $0x60] sm:$0xff] %v2730_v16  ;;  %444 = vst [vmem:[#allocation2 + $0xf0] sm:$0xff] %v2730_v16 }
  0x3b   : > { %445 = vst [vmem:[#allocation2 + $0x8] sm:$0xff] %v2730_v16  ;;  %446 = vst [vmem:[#allocation2 + $0x78] sm:$0xff] %v2730_v16 }
  0x3c   : > { %447 = vst [vmem:[#allocation2 + $0x38] sm:$0xff] %v2730_v16  ;;  %448 = vst [vmem:[#allocation2 + $0x58] sm:$0xff] %v2730_v16 }
  0x3d   : > { %449 = vst [vmem:[#allocation2 + $0x40] sm:$0xff] %v2730_v16  ;;  %450 = vst [vmem:[#allocation2 + $0xc8] sm:$0xff] %v2730_v16 }
  0x3e   : > { %451 = vst [vmem:[#allocation2 + $0xe0] sm:$0xff] %v2730_v16  ;;  %452 = vst [vmem:[#allocation2 + $0x90] sm:$0xff] %v2730_v16 }
  0x3f   : > { %453 = vst [vmem:[#allocation2 + $0x70] sm:$0xff] %v2730_v16  ;;  %454 = vst [vmem:[#allocation2 + $0xc0] sm:$0xff] %v2730_v16 }
  0x40   : > { %455 = vst [vmem:[#allocation2 + $0xa8] sm:$0xff] %v2730_v16  ;;  %456 = vst [vmem:[#allocation2 + $0xd0] sm:$0xff] %v2730_v16 }
  0x41   : > { %457 = vst [vmem:[#allocation2 + $0x10] sm:$0xff] %v2730_v16  ;;  %458 = vst [vmem:[#allocation2 + $0x28] sm:$0xff] %v2730_v16 }
  0x42   : > { %459 = vst [vmem:[#allocation2 + $0xa0] sm:$0xff] %v2730_v16  ;;  %460 = vst [vmem:[#allocation2 + $0xf8] sm:$0xff] %v2730_v16 }
  0x43   : > { %461 = vst [vmem:[#allocation2 + $0x20] sm:$0xff] %v2730_v16  ;;  %462 = vst [vmem:[#allocation2 + $0x98] sm:$0xff] %v2730_v16 }
  0x44 PF: > { %v2642_v17 = vld [vmem:[%s2870_s29 + $0x78] sm:$0xff]   ;;  %v2644_v19 = vld [vmem:[%s2870_s29 + $0x70] sm:$0xff]   ;;  %v2646_v21 = vld [vmem:[%s2870_s29 + $0x68] sm:$0xff]   ;;  %p2050_p13 = scmp.ne.s32.totalorder %s2712_s13, %s2716_s14 }
  0x45   : > { %v2643_v18 = vld [vmem:[%s2870_s29 + $0x38] sm:$0xff]   ;;  %2312 = vmatprep.subr.bf16.mxu0 %v2642_v17  ;;  %2568 = vmatprep.subr.bf16.mxu1 %v2642_v17  ;;  %v2645_v20 = vld [vmem:[%s2870_s29 + $0x30] sm:$0xff]   ;;  %v2647_v22 = vld [vmem:[%s2870_s29 + $0x28] sm:$0xff]   ;;  %s932_s21 = sld [smem:[#allocation3]] (!%p2050_p13) }
  0x46   : > { %2313 = vmatpush3.bf16.msra.mxu0 %v2643_v18  ;;  %2576 = vmatpush3.bf16.msra.mxu1 %v2643_v18  ;;  %v2648_v23 = vld [vmem:[%s2870_s29 + $0x60] sm:$0xff]   ;;  %v2650_v25 = vld [vmem:[%s2870_s29 + $0x58] sm:$0xff]   ;;  %v2652_v27 = vld [vmem:[%s2870_s29 + $0x50] sm:$0xff]  }
  0x47   : > { %2314 = vmatprep.subr.bf16.mxu0 %v2644_v19  ;;  %2569 = vmatprep.subr.bf16.mxu1 %v2644_v19  ;;  %v2649_v24 = vld [vmem:[%s2870_s29 + $0x20] sm:$0xff]   ;;  %v2651_v26 = vld [vmem:[%s2870_s29 + $0x18] sm:$0xff]   ;;  %v464_v28 = vld [vmem:[%s2877_s11 + $0x8] sm:$0xff] }
  0x48   : > { %v472_v29 = vld [vmem:[%s2877_s11 + $0x48] sm:$0xff]  ;;  %v480_v30 = vunpack.c.l.s8.bf16 %v464_v28  ;;  %v2653_v32 = vld [vmem:[%s2870_s29 + $0x10] sm:$0xff]   ;;  %v2656_v35 = vld [vmem:[%s2870_s29 + $0x40] sm:$0xff]   ;;  %v482_v41 = vunpack.c.h.s8.bf16 %v464_v28 }
  0x49   : > { %v496_v31 = vunpack.c.l.s8.bf16 %v472_v29  ;;  %v2654_v33 = vld [vmem:[%s2870_s29 + $0x48] sm:$0xff]   ;;  %v2657_v36 = vld [vmem:[%s2870_s29] sm:$0xff]   ;;  %v498_v42 = vunpack.c.h.s8.bf16 %v472_v29  ;;  %v466_v43 = vld [vmem:[%s2877_s11 + $0x18] sm:$0xff] }
  0x4a   : > { %2315 = vmatpush3.bf16.msra.mxu0 %v2645_v20  ;;  %2577 = vmatpush3.bf16.msra.mxu1 %v2645_v20  ;;  %v2655_v34 = vld [vmem:[%s2870_s29 + $0x8] sm:$0xff]   ;;  %v463_v37 = vld [vmem:[%s2877_s11] sm:$0xff]  ;;  %v474_v44 = vld [vmem:[%s2877_s11 + $0x58] sm:$0xff]  ;;  %v484_v47 = vunpack.c.l.s8.bf16 %v466_v43  ;;  %v486_v53 = vunpack.c.h.s8.bf16 %v466_v43 }
  0x4b   : > { %2316 = vmatprep.subr.bf16.mxu0 %v2646_v21  ;;  %2570 = vmatprep.subr.bf16.mxu1 %v2646_v21  ;;  %v471_v38 = vld [vmem:[%s2877_s11 + $0x40] sm:$0xff]  ;;  %v479_v39 = vunpack.c.l.s8.bf16 %v463_v37  ;;  %v481_v45 = vunpack.c.h.s8.bf16 %v463_v37  ;;  %v500_v48 = vunpack.c.l.s8.bf16 %v474_v44  ;;  %v465_v49 = vld [vmem:[%s2877_s11 + $0x10] sm:$0xff]  ;;  %v502_v54 = vunpack.c.h.s8.bf16 %v474_v44  ;;  %v468_v55 = vld [vmem:[%s2877_s11 + $0x28] sm:$0xff]  ;;  %s933_s14 = sadd.f32 (!%p2050_p13), 1.0, %s932_s21 }
  0x4c   : > { %703 = vmatprep.mubr.bf16.mxu0 %v480_v30  ;;  %767 = vmatprep.mubr.bf16.mxu1 %v496_v31  ;;  %v495_v40 = vunpack.c.l.s8.bf16 %v471_v38  ;;  %v497_v46 = vunpack.c.h.s8.bf16 %v471_v38  ;;  %v473_v50 = vld [vmem:[%s2877_s11 + $0x50] sm:$0xff]  ;;  %v483_v51 = vunpack.c.l.s8.bf16 %v465_v49  ;;  %v476_v56 = vld [vmem:[%s2877_s11 + $0x68] sm:$0xff]  ;;  %v485_v57 = vunpack.c.h.s8.bf16 %v465_v49  ;;  %v467_v61 = vld [vmem:[%s2877_s11 + $0x20] sm:$0xff] }
  0x4d   : > { %v499_v52 = vunpack.c.l.s8.bf16 %v473_v50  ;;  %v501_v58 = vunpack.c.h.s8.bf16 %v473_v50  ;;  %v488_v59 = vunpack.c.l.s8.bf16 %v468_v55  ;;  %v504_v60 = vunpack.c.l.s8.bf16 %v476_v56  ;;  %v475_v62 = vld [vmem:[%s2877_s11 + $0x60] sm:$0xff]  ;;  %v470_v3 = vld [vmem:[%s2877_s11 + $0x38] sm:$0xff]  ;;  %v469_v9 = vld [vmem:[%s2877_s11 + $0x30] sm:$0xff] }
  0x4e   : > { %2317 = vmatpush3.bf16.msra.mxu0 %v2647_v22  ;;  %2578 = vmatpush3.bf16.msra.mxu1 %v2647_v22  ;;  %v487_v63 = vunpack.c.l.s8.bf16 %v467_v61  ;;  %v503_v0 = vunpack.c.l.s8.bf16 %v475_v62  ;;  %v490_v1 = vunpack.c.h.s8.bf16 %v468_v55  ;;  %v506_v2 = vunpack.c.h.s8.bf16 %v476_v56  ;;  %v478_v4 = vld [vmem:[%s2877_s11 + $0x78] sm:$0xff]  ;;  %v477_v10 = vld [vmem:[%s2877_s11 + $0x70] sm:$0xff]  ;;  %v512_v29 = vld [vmem:[#allocation2] sm:$0xff] }
  0x4f   : > { %2318 = vmatprep.subr.bf16.mxu0 %v2648_v23  ;;  %2571 = vmatprep.subr.bf16.mxu1 %v2648_v23  ;;  %v489_v5 = vunpack.c.h.s8.bf16 %v467_v61  ;;  %v505_v6 = vunpack.c.h.s8.bf16 %v475_v62  ;;  %v492_v7 = vunpack.c.l.s8.bf16 %v470_v3  ;;  %v508_v8 = vunpack.c.l.s8.bf16 %v478_v4  ;;  %v511_v19 = vld [vmem:[#allocation2 + $0xb0] sm:$0xff]  ;;  %v527_v21 = vld [vmem:[#allocation2 + $0x38] sm:$0xff]  ;;  %v531_v61 = vld [vmem:[#allocation2 + $0xe0] sm:$0xff] }
  0x50   : > { %v491_v11 = vunpack.c.l.s8.bf16 %v469_v9  ;;  %v507_v12 = vunpack.c.l.s8.bf16 %v477_v10  ;;  %v494_v13 = vunpack.c.h.s8.bf16 %v470_v3  ;;  %v510_v14 = vunpack.c.h.s8.bf16 %v478_v4  ;;  %v528_v31 = vld [vmem:[#allocation2 + $0x58] sm:$0xff] }
  0x51   : > { %v493_v15 = vunpack.c.h.s8.bf16 %v469_v9  ;;  %v509_v16 = vunpack.c.h.s8.bf16 %v477_v10  ;;  %v514_v49 = vld [vmem:[#allocation2 + $0x18] sm:$0xff] }
  0x52   : > { %2319 = vmatpush3.bf16.msra.mxu0 %v2649_v24  ;;  %2579 = vmatpush3.bf16.msra.mxu1 %v2649_v24 }
  0x53   : > { %2320 = vmatprep.subr.bf16.mxu0 %v2650_v25  ;;  %2572 = vmatprep.subr.bf16.mxu1 %v2650_v25 }
  0x56   : > { %2321 = vmatpush3.bf16.msra.mxu0 %v2651_v26  ;;  %2580 = vmatpush3.bf16.msra.mxu1 %v2651_v26 }
  0x57   : > { %2322 = vmatprep.subr.bf16.mxu0 %v2652_v27  ;;  %2573 = vmatprep.subr.bf16.mxu1 %v2652_v27 }
  0x5a   : > { %2323 = vmatpush3.bf16.msra.mxu0 %v2653_v32  ;;  %2581 = vmatpush3.bf16.msra.mxu1 %v2653_v32 }
  0x5b   : > { %2324 = vmatprep.subr.bf16.mxu0 %v2654_v33  ;;  %2574 = vmatprep.subr.bf16.mxu1 %v2654_v33 }
  0x5e   : > { %2325 = vmatpush3.bf16.msra.mxu0 %v2655_v34  ;;  %2582 = vmatpush3.bf16.msra.mxu1 %v2655_v34 }
  0x5f   : > { %2326 = vmatprep.subr.bf16.mxu0 %v2656_v35  ;;  %2575 = vmatprep.subr.bf16.mxu1 %v2656_v35 }
  0x62   : > { %2327 = vmatpush3.bf16.msra.mxu0 %v2657_v36  ;;  %2583 = vmatpush3.bf16.msra.mxu1 %v2657_v36 }
  0x65   : > { %704 = vmatmul.mubr.bf16.vlgmr.msra.gmra.mxu0 %v479_v39  ;;  %768 = vmatmul.mubr.bf16.vlgmr.msra.gmra.mxu1 %v495_v40  ;;  %v513_v39 = vld [vmem:[#allocation2 + $0xd8] sm:$0xff] }
  0x66   : > { %711 = vmatprep.mubr.bf16.mxu0 %v482_v41  ;;  %775 = vmatprep.mubr.bf16.mxu1 %v498_v42  ;;  %v529_v41 = vld [vmem:[#allocation2 + $0x40] sm:$0xff] }
  0x6d   : > { %712 = vmatmul.mubr.bf16.gmra.mxu0 %v481_v45  ;;  %776 = vmatmul.mubr.bf16.gmra.mxu1 %v497_v46 }
  0x6e   : > { %719 = vmatprep.mubr.bf16.mxu0 %v484_v47  ;;  %783 = vmatprep.mubr.bf16.mxu1 %v500_v48 }
  0x75   : > { %720 = vmatmul.mubr.bf16.gmra.mxu0 %v483_v51  ;;  %784 = vmatmul.mubr.bf16.gmra.mxu1 %v499_v52  ;;  %v530_v51 = vld [vmem:[#allocation2 + $0xc8] sm:$0xff] }
  0x76   : > { %727 = vmatprep.mubr.bf16.mxu0 %v486_v53  ;;  %791 = vmatprep.mubr.bf16.mxu1 %v502_v54 }
  0x7d   : > { %728 = vmatmul.mubr.bf16.gmra.mxu0 %v485_v57  ;;  %792 = vmatmul.mubr.bf16.gmra.mxu1 %v501_v58 }
  0x7e   : > { %735 = vmatprep.mubr.bf16.mxu0 %v488_v59  ;;  %799 = vmatprep.mubr.bf16.mxu1 %v504_v60  ;;  %v515_v59 = vld [vmem:[#allocation2 + $0x50] sm:$0xff] }
  0x85   : > { %736 = vmatmul.mubr.bf16.gmra.mxu0 %v487_v63  ;;  %800 = vmatmul.mubr.bf16.gmra.mxu1 %v503_v0 }
  0x86   : > { %743 = vmatprep.mubr.bf16.mxu0 %v490_v1  ;;  %807 = vmatprep.mubr.bf16.mxu1 %v506_v2 }
  0x8d   : > { %744 = vmatmul.mubr.bf16.gmra.mxu0 %v489_v5  ;;  %808 = vmatmul.mubr.bf16.gmra.mxu1 %v505_v6  ;;  %v516_v5 = vld [vmem:[#allocation2 + $0x68] sm:$0xff] }
  0x8e   : > { %751 = vmatprep.mubr.bf16.mxu0 %v492_v7  ;;  %815 = vmatprep.mubr.bf16.mxu1 %v508_v8  ;;  %v532_v7 = vld [vmem:[#allocation2 + $0x90] sm:$0xff] }
  0x95   : > { %752 = vmatmul.mubr.bf16.gmra.mxu0 %v491_v11  ;;  %816 = vmatmul.mubr.bf16.gmra.mxu1 %v507_v12 }
  0x96   : > { %759 = vmatprep.mubr.bf16.mxu0 %v494_v13  ;;  %823 = vmatprep.mubr.bf16.mxu1 %v510_v14 }
  0x9d   : > { %760 = vmatmul.mubr.bf16.gmra.mxu0 %v493_v15  ;;  %824 = vmatmul.mubr.bf16.gmra.mxu1 %v509_v16  ;;  %v517_v15 = vld [vmem:[#allocation2 + $0x30] sm:$0xff] }
 0x125   : > { %v2328_v17 = vpop.f32.mrf.mxu0  ;;  %v2376_v18 = vpop.f32.mrf.mxu1 }
 0x127   : > { %v2329_v20 = vpop.f32.mrf.mxu0  ;;  %v2377_v22 = vpop.f32.mrf.mxu1 }
 0x128   : > { %v2330_v23 = vadd.f32 %v2329_v20, %v2328_v17  ;;  %v2378_v24 = vadd.f32 %v2377_v22, %v2376_v18  ;;  %v533_v17 = vld [vmem:[#allocation2 + $0x70] sm:$0xff] }
 0x129   : > { %v2331_v25 = vpop.f32.mrf.mxu0  ;;  %v2379_v26 = vpop.f32.mrf.mxu1 }
 0x12a   : > { %v832_v27 = vadd.f32 %v2330_v23, %v511_v19  ;;  %v848_v28 = vadd.f32 %v2378_v24, %v527_v21 }
 0x12b   : > { %v2332_v30 = vpop.f32.mrf.mxu0  ;;  %v2380_v32 = vpop.f32.mrf.mxu1 }
 0x12c   : > { %864 = vst [vmem:[#allocation2 + $0xb0] sm:$0xff] %v832_v27  ;;  %880 = vst [vmem:[#allocation2 + $0x38] sm:$0xff] %v848_v28  ;;  %v2333_v33 = vadd.f32 %v2332_v30, %v2331_v25  ;;  %v2381_v34 = vadd.f32 %v2380_v32, %v2379_v26  ;;  %v518_v25 = vld [vmem:[#allocation2 + $0x48] sm:$0xff]  ;;  %v534_v27 = vld [vmem:[#allocation2 + $0xc0] sm:$0xff] }
 0x12d   : > { %v2334_v35 = vpop.f32.mrf.mxu0  ;;  %v2382_v36 = vpop.f32.mrf.mxu1 }
 0x12e   : > { %v833_v37 = vadd.f32 %v2333_v33, %v512_v29  ;;  %v849_v38 = vadd.f32 %v2381_v34, %v528_v31 }
 0x12f   : > { %v2335_v40 = vpop.f32.mrf.mxu0  ;;  %v2383_v42 = vpop.f32.mrf.mxu1 }
 0x130   : > { %865 = vst [vmem:[#allocation2] sm:$0xff] %v833_v37  ;;  %881 = vst [vmem:[#allocation2 + $0x58] sm:$0xff] %v849_v38  ;;  %v2336_v43 = vadd.f32 %v2335_v40, %v2334_v35  ;;  %v2384_v44 = vadd.f32 %v2383_v42, %v2382_v36  ;;  %v519_v35 = vld [vmem:[#allocation2 + $0x80] sm:$0xff]  ;;  %v535_v37 = vld [vmem:[#allocation2 + $0xa8] sm:$0xff] }
 0x131   : > { %v2337_v45 = vpop.f32.mrf.mxu0  ;;  %v2385_v46 = vpop.f32.mrf.mxu1 }
 0x132   : > { %v834_v47 = vadd.f32 %v2336_v43, %v513_v39  ;;  %v850_v48 = vadd.f32 %v2384_v44, %v529_v41 }
 0x133   : > { %v2338_v50 = vpop.f32.mrf.mxu0  ;;  %v2386_v52 = vpop.f32.mrf.mxu1 }
 0x134   : > { %866 = vst [vmem:[#allocation2 + $0xd8] sm:$0xff] %v834_v47  ;;  %882 = vst [vmem:[#allocation2 + $0x40] sm:$0xff] %v850_v48  ;;  %v2339_v53 = vadd.f32 %v2338_v50, %v2337_v45  ;;  %v2387_v54 = vadd.f32 %v2386_v52, %v2385_v46  ;;  %v520_v45 = vld [vmem:[#allocation2 + $0x88] sm:$0xff]  ;;  %v536_v47 = vld [vmem:[#allocation2 + $0xd0] sm:$0xff] }
 0x135   : > { %v2340_v55 = vpop.f32.mrf.mxu0  ;;  %v2388_v56 = vpop.f32.mrf.mxu1 }
 0x136   : > { %v835_v57 = vadd.f32 %v2339_v53, %v514_v49  ;;  %v851_v58 = vadd.f32 %v2387_v54, %v530_v51 }
 0x137   : > { %v2341_v60 = vpop.f32.mrf.mxu0  ;;  %v2389_v62 = vpop.f32.mrf.mxu1 }
 0x138   : > { %867 = vst [vmem:[#allocation2 + $0x18] sm:$0xff] %v835_v57  ;;  %883 = vst [vmem:[#allocation2 + $0xc8] sm:$0xff] %v851_v58  ;;  %v2342_v63 = vadd.f32 %v2341_v60, %v2340_v55  ;;  %v2390_v0 = vadd.f32 %v2389_v62, %v2388_v56  ;;  %v521_v55 = vld [vmem:[#allocation2 + $0xe8] sm:$0xff]  ;;  %v537_v57 = vld [vmem:[#allocation2 + $0x10] sm:$0xff] }
 0x139   : > { %v2343_v1 = vpop.f32.mrf.mxu0  ;;  %v2391_v2 = vpop.f32.mrf.mxu1 }
 0x13a   : > { %v836_v3 = vadd.f32 %v2342_v63, %v515_v59  ;;  %v852_v4 = vadd.f32 %v2390_v0, %v531_v61 }
 0x13b   : > { %v2344_v6 = vpop.f32.mrf.mxu0  ;;  %v2392_v8 = vpop.f32.mrf.mxu1 }
 0x13c   : > { %868 = vst [vmem:[#allocation2 + $0x50] sm:$0xff] %v836_v3  ;;  %884 = vst [vmem:[#allocation2 + $0xe0] sm:$0xff] %v852_v4  ;;  %v2345_v9 = vadd.f32 %v2344_v6, %v2343_v1  ;;  %v2393_v10 = vadd.f32 %v2392_v8, %v2391_v2  ;;  %v522_v1 = vld [vmem:[#allocation2 + $0xb8] sm:$0xff]  ;;  %v538_v3 = vld [vmem:[#allocation2 + $0x28] sm:$0xff] }
 0x13d   : > { %v2346_v11 = vpop.f32.mrf.mxu0  ;;  %v2394_v12 = vpop.f32.mrf.mxu1 }
 0x13e   : > { %v837_v13 = vadd.f32 %v2345_v9, %v516_v5  ;;  %v853_v14 = vadd.f32 %v2393_v10, %v532_v7 }
 0x13f   : > { %v2347_v16 = vpop.f32.mrf.mxu0  ;;  %v2395_v18 = vpop.f32.mrf.mxu1 }
 0x140   : > { %869 = vst [vmem:[#allocation2 + $0x68] sm:$0xff] %v837_v13  ;;  %885 = vst [vmem:[#allocation2 + $0x90] sm:$0xff] %v853_v14  ;;  %v2348_v19 = vadd.f32 %v2347_v16, %v2346_v11  ;;  %v2396_v20 = vadd.f32 %v2395_v18, %v2394_v12  ;;  %v523_v11 = vld [vmem:[#allocation2 + $0x60] sm:$0xff] }
 0x141   : > { %v2349_v21 = vpop.f32.mrf.mxu0  ;;  %v2397_v22 = vpop.f32.mrf.mxu1  ;;  %v539_v13 = vld [vmem:[#allocation2 + $0xa0] sm:$0xff] }
 0x142   : > { %v838_v23 = vadd.f32 %v2348_v19, %v517_v15  ;;  %v854_v24 = vadd.f32 %v2396_v20, %v533_v17 }
 0x143   : > { %v2350_v26 = vpop.f32.mrf.mxu0  ;;  %v2398_v28 = vpop.f32.mrf.mxu1 }
 0x144   : > { %870 = vst [vmem:[#allocation2 + $0x30] sm:$0xff] %v838_v23  ;;  %886 = vst [vmem:[#allocation2 + $0x70] sm:$0xff] %v854_v24  ;;  %v2351_v29 = vadd.f32 %v2350_v26, %v2349_v21  ;;  %v2399_v30 = vadd.f32 %v2398_v28, %v2397_v22  ;;  %v524_v21 = vld [vmem:[#allocation2 + $0xf0] sm:$0xff]  ;;  %v540_v23 = vld [vmem:[#allocation2 + $0xf8] sm:$0xff] }
 0x145   : > { %v2352_v31 = vpop.f32.mrf.mxu0  ;;  %v2400_v32 = vpop.f32.mrf.mxu1 }
 0x146   : > { %v839_v33 = vadd.f32 %v2351_v29, %v518_v25  ;;  %v855_v34 = vadd.f32 %v2399_v30, %v534_v27 }
 0x147   : > { %v2353_v36 = vpop.f32.mrf.mxu0  ;;  %v2401_v38 = vpop.f32.mrf.mxu1 }
 0x148   : > { %871 = vst [vmem:[#allocation2 + $0x48] sm:$0xff] %v839_v33  ;;  %887 = vst [vmem:[#allocation2 + $0xc0] sm:$0xff] %v855_v34  ;;  %v2354_v39 = vadd.f32 %v2353_v36, %v2352_v31  ;;  %v2402_v40 = vadd.f32 %v2401_v38, %v2400_v32  ;;  %v525_v31 = vld [vmem:[#allocation2 + $0x8] sm:$0xff]  ;;  %v541_v33 = vld [vmem:[#allocation2 + $0x20] sm:$0xff] }
 0x149   : > { %v2355_v41 = vpop.f32.mrf.mxu0  ;;  %v2403_v42 = vpop.f32.mrf.mxu1 }
 0x14a   : > { %v840_v43 = vadd.f32 %v2354_v39, %v519_v35  ;;  %v856_v44 = vadd.f32 %v2402_v40, %v535_v37 }
 0x14b   : > { %v2356_v46 = vpop.f32.mrf.mxu0  ;;  %v2404_v48 = vpop.f32.mrf.mxu1 }
 0x14c   : > { %872 = vst [vmem:[#allocation2 + $0x80] sm:$0xff] %v840_v43  ;;  %888 = vst [vmem:[#allocation2 + $0xa8] sm:$0xff] %v856_v44  ;;  %v2357_v49 = vadd.f32 %v2356_v46, %v2355_v41  ;;  %v2405_v50 = vadd.f32 %v2404_v48, %v2403_v42  ;;  %v526_v41 = vld [vmem:[#allocation2 + $0x78] sm:$0xff] }
 0x14d   : > { %v2358_v51 = vpop.f32.mrf.mxu0  ;;  %v2406_v52 = vpop.f32.mrf.mxu1  ;;  %v542_v43 = vld [vmem:[#allocation2 + $0x98] sm:$0xff] }
 0x14e   : > { %v841_v53 = vadd.f32 %v2357_v49, %v520_v45  ;;  %v857_v54 = vadd.f32 %v2405_v50, %v536_v47 }
 0x14f   : > { %v2359_v56 = vpop.f32.mrf.mxu0  ;;  %v2407_v58 = vpop.f32.mrf.mxu1 }
 0x150   : > { %873 = vst [vmem:[#allocation2 + $0x88] sm:$0xff] %v841_v53  ;;  %889 = vst [vmem:[#allocation2 + $0xd0] sm:$0xff] %v857_v54  ;;  %v2360_v59 = vadd.f32 %v2359_v56, %v2358_v51  ;;  %v2408_v60 = vadd.f32 %v2407_v58, %v2406_v52 }
 0x151   : > { %v2361_v61 = vpop.f32.mrf.mxu0  ;;  %v2409_v62 = vpop.f32.mrf.mxu1 }
 0x152   : > { %v842_v63 = vadd.f32 %v2360_v59, %v521_v55  ;;  %v858_v0 = vadd.f32 %v2408_v60, %v537_v57 }
 0x153   : > { %v2362_v2 = vpop.f32.mrf.mxu0  ;;  %v2410_v4 = vpop.f32.mrf.mxu1 }
 0x154   : > { %874 = vst [vmem:[#allocation2 + $0xe8] sm:$0xff] %v842_v63  ;;  %890 = vst [vmem:[#allocation2 + $0x10] sm:$0xff] %v858_v0  ;;  %v2363_v5 = vadd.f32 %v2362_v2, %v2361_v61  ;;  %v2411_v6 = vadd.f32 %v2410_v4, %v2409_v62 }
 0x155   : > { %v2364_v7 = vpop.f32.mrf.mxu0  ;;  %v2412_v8 = vpop.f32.mrf.mxu1 }
 0x156   : > { %v843_v9 = vadd.f32 %v2363_v5, %v522_v1  ;;  %v859_v10 = vadd.f32 %v2411_v6, %v538_v3 }
 0x157   : > { %v2365_v12 = vpop.f32.mrf.mxu0  ;;  %v2413_v14 = vpop.f32.mrf.mxu1 }
 0x158   : > { %875 = vst [vmem:[#allocation2 + $0xb8] sm:$0xff] %v843_v9  ;;  %891 = vst [vmem:[#allocation2 + $0x28] sm:$0xff] %v859_v10  ;;  %v2366_v15 = vadd.f32 %v2365_v12, %v2364_v7  ;;  %v2414_v16 = vadd.f32 %v2413_v14, %v2412_v8 }
 0x159   : > { %v2367_v17 = vpop.f32.mrf.mxu0  ;;  %v2415_v18 = vpop.f32.mrf.mxu1 }
 0x15a   : > { %v844_v19 = vadd.f32 %v2366_v15, %v523_v11  ;;  %v860_v20 = vadd.f32 %v2414_v16, %v539_v13 }
 0x15b   : > { %v2368_v22 = vpop.f32.mrf.mxu0  ;;  %v2416_v24 = vpop.f32.mrf.mxu1 }
 0x15c   : > { %876 = vst [vmem:[#allocation2 + $0x60] sm:$0xff] %v844_v19  ;;  %892 = vst [vmem:[#allocation2 + $0xa0] sm:$0xff] %v860_v20  ;;  %v2369_v25 = vadd.f32 %v2368_v22, %v2367_v17  ;;  %v2417_v26 = vadd.f32 %v2416_v24, %v2415_v18 }
 0x15d   : > { %v2370_v27 = vpop.f32.mrf.mxu0  ;;  %v2418_v28 = vpop.f32.mrf.mxu1 }
 0x15e   : > { %v845_v29 = vadd.f32 %v2369_v25, %v524_v21  ;;  %v861_v30 = vadd.f32 %v2417_v26, %v540_v23 }
 0x15f   : > { %v2371_v32 = vpop.f32.mrf.mxu0  ;;  %v2419_v34 = vpop.f32.mrf.mxu1 }
 0x160   : > { %877 = vst [vmem:[#allocation2 + $0xf0] sm:$0xff] %v845_v29  ;;  %893 = vst [vmem:[#allocation2 + $0xf8] sm:$0xff] %v861_v30  ;;  %v2372_v35 = vadd.f32 %v2371_v32, %v2370_v27  ;;  %v2420_v36 = vadd.f32 %v2419_v34, %v2418_v28 }
 0x161   : > { %v2373_v37 = vpop.f32.mrf.mxu0  ;;  %v2421_v38 = vpop.f32.mrf.mxu1 }
 0x162   : > { %v846_v39 = vadd.f32 %v2372_v35, %v525_v31  ;;  %v862_v40 = vadd.f32 %v2420_v36, %v541_v33 }
 0x163   : > { %v2374_v42 = vpop.f32.mrf.mxu0  ;;  %v2422_v44 = vpop.f32.mrf.mxu1 }
 0x164   : > { %878 = vst [vmem:[#allocation2 + $0x8] sm:$0xff] %v846_v39  ;;  %894 = vst [vmem:[#allocation2 + $0x20] sm:$0xff] %v862_v40  ;;  %v2375_v45 = vadd.f32 %v2374_v42, %v2373_v37  ;;  %v2423_v46 = vadd.f32 %v2422_v44, %v2421_v38  ;;  %899 = sbr.rel (%p2050_p13) target bundleno = 390 (0x186), region = 87 }
 0x166   : > { %v847_v47 = vadd.f32 %v2375_v45, %v526_v41  ;;  %v863_v48 = vadd.f32 %v2423_v46, %v542_v43 }
 0x168   : > { %879 = vst [vmem:[#allocation2 + $0x78] sm:$0xff] %v847_v47  ;;  %895 = vst [vmem:[#allocation2 + $0x98] sm:$0xff] %v863_v48 }
 0x169   : > { %v2139_v49 = vld [vmem:[%s2870_s29] sm:$0xff]   ;;  %v2282_v50 = vld [vmem:[%s2870_s29 + $0x8] sm:$0xff]   ;;  %v2283_v51 = vld [vmem:[%s2870_s29 + $0x10] sm:$0xff]   ;;  %v2922_v8 = vstv %s933_s14 }
 0x16a   : > { %v2284_v52 = vld [vmem:[%s2870_s29 + $0x18] sm:$0xff]   ;;  %v2140_v53 = vunpack.c.l.bf16 %v2139_v49  ;;  %v2285_v54 = vld [vmem:[%s2870_s29 + $0x20] sm:$0xff]   ;;  %v2141_v55 = vunpack.c.h.bf16 %v2139_v49  ;;  %v2144_v56 = vunpack.c.l.bf16 %v2282_v50  ;;  %v2145_v57 = vunpack.c.h.bf16 %v2282_v50  ;;  %v2286_v59 = vld [vmem:[%s2870_s29 + $0x28] sm:$0xff]  }
 0x16b   : > { %v2148_v58 = vunpack.c.l.bf16 %v2283_v51  ;;  %v2149_v60 = vunpack.c.h.bf16 %v2283_v51  ;;  %v2152_v61 = vunpack.c.l.bf16 %v2284_v52  ;;  %v2153_v62 = vunpack.c.h.bf16 %v2284_v52  ;;  %v2287_v0 = vld [vmem:[%s2870_s29 + $0x30] sm:$0xff]   ;;  %v901_v2 = vld [vmem:[#allocation2] sm:$0xff]  ;;  %v2288_v7 = vld [vmem:[%s2870_s29 + $0x38] sm:$0xff]  }
 0x16c   : > { %v2156_v63 = vunpack.c.l.bf16 %v2285_v54  ;;  %v900_v1 = vld [vmem:[#allocation2 + $0xb0] sm:$0xff]  ;;  %v2157_v3 = vunpack.c.h.bf16 %v2285_v54  ;;  %v2160_v4 = vunpack.c.l.bf16 %v2286_v59  ;;  %v2161_v5 = vunpack.c.h.bf16 %v2286_v59  ;;  %v902_v9 = vld [vmem:[#allocation2 + $0xd8] sm:$0xff]  ;;  %v905_v19 = vld [vmem:[#allocation2 + $0x68] sm:$0xff] }
 0x16d   : > { %v2164_v6 = vunpack.c.l.bf16 %v2287_v0  ;;  %v903_v10 = vld [vmem:[#allocation2 + $0x18] sm:$0xff]  ;;  %v904_v11 = vld [vmem:[#allocation2 + $0x50] sm:$0xff]  ;;  %v2165_v12 = vunpack.c.h.bf16 %v2287_v0  ;;  %v2168_v13 = vunpack.c.l.bf16 %v2288_v7  ;;  %v2169_v14 = vunpack.c.h.bf16 %v2288_v7  ;;  %v907_v21 = vld [vmem:[#allocation2 + $0x48] sm:$0xff] }
 0x16e   : > { %v999_v15 = vmul.f32 %v2140_v53, %v2922_v8  ;;  %v1000_v16 = vmul.f32 %v2141_v55, %v2922_v8  ;;  %v1001_v17 = vmul.f32 %v2144_v56, %v2922_v8  ;;  %v1002_v18 = vmul.f32 %v2145_v57, %v2922_v8  ;;  %v906_v20 = vld [vmem:[#allocation2 + $0x30] sm:$0xff]  ;;  %v908_v30 = vld [vmem:[#allocation2 + $0x80] sm:$0xff]  ;;  %v909_v31 = vld [vmem:[#allocation2 + $0x88] sm:$0xff] }
 0x16f   : > { %v1003_v22 = vmul.f32 %v2148_v58, %v2922_v8  ;;  %v1004_v23 = vmul.f32 %v2149_v60, %v2922_v8  ;;  %v1005_v24 = vmul.f32 %v2152_v61, %v2922_v8  ;;  %v1006_v25 = vmul.f32 %v2153_v62, %v2922_v8  ;;  %v910_v36 = vld [vmem:[#allocation2 + $0xe8] sm:$0xff]  ;;  %v911_v37 = vld [vmem:[#allocation2 + $0xb8] sm:$0xff]  ;;  %v912_v38 = vld [vmem:[#allocation2 + $0x60] sm:$0xff] }
 0x170   : > { %v1031_v26 = vadd.f32 %v999_v15, %v900_v1  ;;  %v1032_v27 = vadd.f32 %v1000_v16, %v901_v2  ;;  %v1033_v28 = vadd.f32 %v1001_v17, %v902_v9  ;;  %v1034_v29 = vadd.f32 %v1002_v18, %v903_v10  ;;  %v913_v43 = vld [vmem:[#allocation2 + $0xf0] sm:$0xff]  ;;  %v914_v44 = vld [vmem:[#allocation2 + $0x8] sm:$0xff]  ;;  %v915_v45 = vld [vmem:[#allocation2 + $0x78] sm:$0xff] }
 0x171   : > { %v1035_v32 = vadd.f32 %v1003_v22, %v904_v11  ;;  %v1036_v33 = vadd.f32 %v1004_v23, %v905_v19  ;;  %v1037_v34 = vadd.f32 %v1005_v24, %v906_v20  ;;  %v1038_v35 = vadd.f32 %v1006_v25, %v907_v21  ;;  %v2289_v50 = vld [vmem:[%s2870_s29 + $0x40] sm:$0xff]   ;;  %v2290_v51 = vld [vmem:[%s2870_s29 + $0x48] sm:$0xff]   ;;  %v2291_v56 = vld [vmem:[%s2870_s29 + $0x50] sm:$0xff]  }
 0x172   : > { %1063 = vst [vmem:[#allocation2 + $0xb0] sm:$0xff] %v1031_v26  ;;  %1064 = vst [vmem:[#allocation2] sm:$0xff] %v1032_v27  ;;  %v1007_v39 = vmul.f32 %v2156_v63, %v2922_v8  ;;  %v1008_v40 = vmul.f32 %v2157_v3, %v2922_v8  ;;  %v1009_v41 = vmul.f32 %v2160_v4, %v2922_v8  ;;  %v2292_v57 = vld [vmem:[%s2870_s29 + $0x58] sm:$0xff]   ;;  %v2172_v63 = vunpack.c.l.bf16 %v2289_v50  ;;  %v918_v4 = vld [vmem:[#allocation2 + $0x40] sm:$0xff] }
 0x173   : > { %1065 = vst [vmem:[#allocation2 + $0xd8] sm:$0xff] %v1033_v28  ;;  %1066 = vst [vmem:[#allocation2 + $0x18] sm:$0xff] %v1034_v29  ;;  %v1010_v42 = vmul.f32 %v2161_v5, %v2922_v8  ;;  %v1011_v46 = vmul.f32 %v2164_v6, %v2922_v8  ;;  %v1012_v47 = vmul.f32 %v2165_v12, %v2922_v8  ;;  %v916_v62 = vld [vmem:[#allocation2 + $0x38] sm:$0xff]  ;;  %v2173_v1 = vunpack.c.h.bf16 %v2289_v50  ;;  %v919_v5 = vld [vmem:[#allocation2 + $0xc8] sm:$0xff] }
 0x174   : > { %1067 = vst [vmem:[#allocation2 + $0x50] sm:$0xff] %v1035_v32  ;;  %1068 = vst [vmem:[#allocation2 + $0x68] sm:$0xff] %v1036_v33  ;;  %v1013_v48 = vmul.f32 %v2168_v13, %v2922_v8  ;;  %v1014_v49 = vmul.f32 %v2169_v14, %v2922_v8  ;;  %v1039_v52 = vadd.f32 %v1007_v39, %v908_v30  ;;  %v917_v0 = vld [vmem:[#allocation2 + $0x58] sm:$0xff]  ;;  %v2176_v2 = vunpack.c.l.bf16 %v2290_v51  ;;  %v920_v6 = vld [vmem:[#allocation2 + $0xe0] sm:$0xff] }
 0x175   : > { %1069 = vst [vmem:[#allocation2 + $0x30] sm:$0xff] %v1037_v34  ;;  %1070 = vst [vmem:[#allocation2 + $0x48] sm:$0xff] %v1038_v35  ;;  %v1040_v53 = vadd.f32 %v1008_v40, %v909_v31  ;;  %v1041_v54 = vadd.f32 %v1009_v41, %v910_v36  ;;  %v1042_v55 = vadd.f32 %v1010_v42, %v911_v37  ;;  %v2177_v3 = vunpack.c.h.bf16 %v2290_v51  ;;  %v921_v16 = vld [vmem:[#allocation2 + $0x90] sm:$0xff]  ;;  %v923_v18 = vld [vmem:[#allocation2 + $0xc0] sm:$0xff] }
 0x176   : > { %v1043_v58 = vadd.f32 %v1011_v46, %v912_v38  ;;  %v1044_v59 = vadd.f32 %v1012_v47, %v913_v43  ;;  %v1045_v60 = vadd.f32 %v1013_v48, %v914_v44  ;;  %v1046_v61 = vadd.f32 %v1014_v49, %v915_v45  ;;  %1071 = vst [vmem:[#allocation2 + $0x80] sm:$0xff] %v1039_v52  ;;  %v922_v17 = vld [vmem:[#allocation2 + $0x70] sm:$0xff]  ;;  %v2293_v23 = vld [vmem:[%s2870_s29 + $0x60] sm:$0xff]   ;;  %v2294_v24 = vld [vmem:[%s2870_s29 + $0x68] sm:$0xff]  }
 0x177   : > { %1072 = vst [vmem:[#allocation2 + $0x88] sm:$0xff] %v1040_v53  ;;  %1073 = vst [vmem:[#allocation2 + $0xe8] sm:$0xff] %v1041_v54  ;;  %v2180_v7 = vunpack.c.l.bf16 %v2291_v56  ;;  %v2181_v9 = vunpack.c.h.bf16 %v2291_v56  ;;  %v2184_v10 = vunpack.c.l.bf16 %v2292_v57  ;;  %v2185_v11 = vunpack.c.h.bf16 %v2292_v57  ;;  %v2295_v29 = vld [vmem:[%s2870_s29 + $0x70] sm:$0xff]   ;;  %v2296_v30 = vld [vmem:[%s2870_s29 + $0x78] sm:$0xff]  }
 0x178   : > { %1074 = vst [vmem:[#allocation2 + $0xb8] sm:$0xff] %v1042_v55  ;;  %1075 = vst [vmem:[#allocation2 + $0x60] sm:$0xff] %v1043_v58  ;;  %v1015_v12 = vmul.f32 %v2172_v63, %v2922_v8  ;;  %v1016_v13 = vmul.f32 %v2173_v1, %v2922_v8  ;;  %v1017_v14 = vmul.f32 %v2176_v2, %v2922_v8  ;;  %v924_v35 = vld [vmem:[#allocation2 + $0xa8] sm:$0xff]  ;;  %v2188_v36 = vunpack.c.l.bf16 %v2293_v23  ;;  %v925_v37 = vld [vmem:[#allocation2 + $0xd0] sm:$0xff] }
 0x179   : > { %1076 = vst [vmem:[#allocation2 + $0xf0] sm:$0xff] %v1044_v59  ;;  %1077 = vst [vmem:[#allocation2 + $0x8] sm:$0xff] %v1045_v60  ;;  %v1018_v15 = vmul.f32 %v2177_v3, %v2922_v8  ;;  %v1019_v19 = vmul.f32 %v2180_v7, %v2922_v8  ;;  %v1020_v20 = vmul.f32 %v2181_v9, %v2922_v8  ;;  %v2189_v38 = vunpack.c.h.bf16 %v2293_v23  ;;  %v926_v41 = vld [vmem:[#allocation2 + $0x10] sm:$0xff]  ;;  %v927_v42 = vld [vmem:[#allocation2 + $0x28] sm:$0xff] }
 0x17a   : > { %1078 = vst [vmem:[#allocation2 + $0x78] sm:$0xff] %v1046_v61  ;;  %v1021_v21 = vmul.f32 %v2184_v10, %v2922_v8  ;;  %v1022_v22 = vmul.f32 %v2185_v11, %v2922_v8  ;;  %v1047_v25 = vadd.f32 %v1015_v12, %v916_v62  ;;  %v1048_v26 = vadd.f32 %v1016_v13, %v917_v0  ;;  %v928_v43 = vld [vmem:[#allocation2 + $0xa0] sm:$0xff]  ;;  %v929_v52 = vld [vmem:[#allocation2 + $0xf8] sm:$0xff] }
 0x17b   : > { %v1049_v27 = vadd.f32 %v1017_v14, %v918_v4  ;;  %v1050_v28 = vadd.f32 %v1018_v15, %v919_v5  ;;  %v1051_v31 = vadd.f32 %v1019_v19, %v920_v6  ;;  %v1052_v32 = vadd.f32 %v1020_v20, %v921_v16  ;;  %v930_v53 = vld [vmem:[#allocation2 + $0x20] sm:$0xff]  ;;  %v931_v54 = vld [vmem:[#allocation2 + $0x98] sm:$0xff] }
 0x17c   : > { %v1053_v33 = vadd.f32 %v1021_v21, %v922_v17  ;;  %v1054_v34 = vadd.f32 %v1022_v22, %v923_v18  ;;  %1079 = vst [vmem:[#allocation2 + $0x38] sm:$0xff] %v1047_v25  ;;  %1080 = vst [vmem:[#allocation2 + $0x58] sm:$0xff] %v1048_v26  ;;  %v2192_v39 = vunpack.c.l.bf16 %v2294_v24  ;;  %v2193_v40 = vunpack.c.h.bf16 %v2294_v24 }
 0x17d   : > { %1081 = vst [vmem:[#allocation2 + $0x40] sm:$0xff] %v1049_v27  ;;  %1082 = vst [vmem:[#allocation2 + $0xc8] sm:$0xff] %v1050_v28  ;;  %v2196_v44 = vunpack.c.l.bf16 %v2295_v29  ;;  %v2197_v45 = vunpack.c.h.bf16 %v2295_v29  ;;  %v2200_v46 = vunpack.c.l.bf16 %v2296_v30  ;;  %v2201_v47 = vunpack.c.h.bf16 %v2296_v30 }
 0x17e   : > { %1083 = vst [vmem:[#allocation2 + $0xe0] sm:$0xff] %v1051_v31  ;;  %1084 = vst [vmem:[#allocation2 + $0x90] sm:$0xff] %v1052_v32  ;;  %v1023_v48 = vmul.f32 %v2188_v36, %v2922_v8  ;;  %v1024_v49 = vmul.f32 %v2189_v38, %v2922_v8  ;;  %v1025_v50 = vmul.f32 %v2192_v39, %v2922_v8 }
 0x17f   : > { %1085 = vst [vmem:[#allocation2 + $0x70] sm:$0xff] %v1053_v33  ;;  %1086 = vst [vmem:[#allocation2 + $0xc0] sm:$0xff] %v1054_v34  ;;  %v1026_v51 = vmul.f32 %v2193_v40, %v2922_v8  ;;  %v1027_v55 = vmul.f32 %v2196_v44, %v2922_v8  ;;  %v1028_v56 = vmul.f32 %v2197_v45, %v2922_v8 }
 0x180   : > { %v1029_v57 = vmul.f32 %v2200_v46, %v2922_v8  ;;  %v1030_v58 = vmul.f32 %v2201_v47, %v2922_v8  ;;  %v1055_v59 = vadd.f32 %v1023_v48, %v924_v35  ;;  %v1056_v60 = vadd.f32 %v1024_v49, %v925_v37 }
 0x181   : > { %v1057_v61 = vadd.f32 %v1025_v50, %v926_v41  ;;  %v1058_v62 = vadd.f32 %v1026_v51, %v927_v42  ;;  %v1059_v63 = vadd.f32 %v1027_v55, %v928_v43  ;;  %v1060_v0 = vadd.f32 %v1028_v56, %v929_v52 }
 0x182   : > { %v1061_v1 = vadd.f32 %v1029_v57, %v930_v53  ;;  %v1062_v2 = vadd.f32 %v1030_v58, %v931_v54  ;;  %1087 = vst [vmem:[#allocation2 + $0xa8] sm:$0xff] %v1055_v59  ;;  %1088 = vst [vmem:[#allocation2 + $0xd0] sm:$0xff] %v1056_v60 }
 0x183   : > { %1089 = vst [vmem:[#allocation2 + $0x10] sm:$0xff] %v1057_v61  ;;  %1090 = vst [vmem:[#allocation2 + $0x28] sm:$0xff] %v1058_v62 }
 0x184   : > { %1091 = vst [vmem:[#allocation2 + $0xa0] sm:$0xff] %v1059_v63  ;;  %1092 = vst [vmem:[#allocation2 + $0xf8] sm:$0xff] %v1060_v0 }
 0x185   : > { %1093 = vst [vmem:[#allocation2 + $0x20] sm:$0xff] %v1061_v1  ;;  %1094 = vst [vmem:[#allocation2 + $0x98] sm:$0xff] %v1062_v2 }
 0x186 PF: > { %p2051_p0 = scmp.ne.s32.totalorder %s2712_s13, 2 }
 0x188   : > { %1098 = sbr.rel (%p2051_p0) target bundleno = 902 (0x386), region = 91 }
 0x18d   : > { %v2658_v8 = vld [vmem:[%s3201_s3 + $0x38] sm:$0xff]   ;;  %v2659_v3 = vld [vmem:[%s3201_s3 + $0x30] sm:$0xff]   ;;  %v2660_v4 = vld [vmem:[%s3201_s3 + $0x28] sm:$0xff]  }
 0x18e   : > { %2472 = vmatprep.subr.bf16.mxu0 %v2658_v8  ;;  %v2661_v5 = vld [vmem:[%s3201_s3 + $0x20] sm:$0xff]   ;;  %v1099_v6 = vld [vmem:[#allocation2 + $0xb0] sm:$0xff]  ;;  %v2662_v10 = vld [vmem:[%s3201_s3 + $0x18] sm:$0xff]  }
 0x18f   : > { %2473 = vmatpush3.bf16.msra.mxu0 %v2658_v8  ;;  %v1100_v7 = vld [vmem:[#allocation2] sm:$0xff]  ;;  %v2663_v11 = vld [vmem:[%s3201_s3 + $0x10] sm:$0xff]   ;;  %v2664_v12 = vld [vmem:[%s3201_s3 + $0x8] sm:$0xff]  }
 0x190   : > { %2474 = vmatprep.subr.bf16.mxu0 %v2659_v3  ;;  %v1131_v9 = vpack.c.bf16 %v1100_v7, %v1099_v6  ;;  %v2666_v13 = vld [vmem:[%s3203_s5 + $0x38] sm:$0xff]   ;;  %v2667_v14 = vld [vmem:[%s3203_s5 + $0x30] sm:$0xff]   ;;  %v2665_v15 = vld [vmem:[%s3201_s3] sm:$0xff]  }
 0x191   : > { %2520 = vmatprep.subr.bf16.mxu1 %v2666_v13  ;;  %v2668_v16 = vld [vmem:[%s3203_s5 + $0x28] sm:$0xff]   ;;  %v1101_v17 = vld [vmem:[#allocation2 + $0xd8] sm:$0xff]  ;;  %v2669_v19 = vld [vmem:[%s3203_s5 + $0x20] sm:$0xff]  }
 0x192   : > { %2488 = vmatprep.mubr.bf16.mxu0 %v1131_v9  ;;  %2521 = vmatpush3.bf16.msra.mxu1 %v2666_v13  ;;  %v1102_v18 = vld [vmem:[#allocation2 + $0x18] sm:$0xff]  ;;  %v1103_v20 = vld [vmem:[#allocation2 + $0x50] sm:$0xff]  ;;  %v1104_v21 = vld [vmem:[#allocation2 + $0x68] sm:$0xff] }
 0x193   : > { %2475 = vmatpush3.bf16.msra.mxu0 %v2659_v3  ;;  %2522 = vmatprep.subr.bf16.mxu1 %v2667_v14  ;;  %v1132_v22 = vpack.c.bf16 %v1102_v18, %v1101_v17  ;;  %v1133_v23 = vpack.c.bf16 %v1104_v21, %v1103_v20  ;;  %v2670_v24 = vld [vmem:[%s3203_s5 + $0x18] sm:$0xff]   ;;  %v1105_v25 = vld [vmem:[#allocation2 + $0x30] sm:$0xff]  ;;  %v1106_v26 = vld [vmem:[#allocation2 + $0x48] sm:$0xff] }
 0x194   : > { %2476 = vmatprep.subr.bf16.mxu0 %v2660_v4  ;;  %v1107_v27 = vld [vmem:[#allocation2 + $0x80] sm:$0xff]  ;;  %v1108_v28 = vld [vmem:[#allocation2 + $0x88] sm:$0xff]  ;;  %v1134_v29 = vpack.c.bf16 %v1106_v26, %v1105_v25  ;;  %v1110_v32 = vld [vmem:[#allocation2 + $0xb8] sm:$0xff] }
 0x195   : > { %v1135_v30 = vpack.c.bf16 %v1108_v28, %v1107_v27  ;;  %v1109_v31 = vld [vmem:[#allocation2 + $0xe8] sm:$0xff]  ;;  %v1111_v33 = vld [vmem:[#allocation2 + $0x60] sm:$0xff]  ;;  %v1112_v34 = vld [vmem:[#allocation2 + $0xf0] sm:$0xff] }
 0x196   : > { %2523 = vmatpush3.bf16.msra.mxu1 %v2667_v14  ;;  %v1136_v35 = vpack.c.bf16 %v1110_v32, %v1109_v31  ;;  %v1137_v36 = vpack.c.bf16 %v1112_v34, %v1111_v33  ;;  %v1113_v37 = vld [vmem:[#allocation2 + $0x8] sm:$0xff]  ;;  %v1114_v38 = vld [vmem:[#allocation2 + $0x78] sm:$0xff]  ;;  %v1117_v43 = vld [vmem:[#allocation2 + $0x40] sm:$0xff] }
 0x197   : > { %2477 = vmatpush3.bf16.msra.mxu0 %v2660_v4  ;;  %2524 = vmatprep.subr.bf16.mxu1 %v2668_v16  ;;  %v1115_v39 = vld [vmem:[#allocation2 + $0x38] sm:$0xff]  ;;  %v1138_v41 = vpack.c.bf16 %v1114_v38, %v1113_v37  ;;  %v1118_v44 = vld [vmem:[#allocation2 + $0xc8] sm:$0xff]  ;;  %v1119_v45 = vld [vmem:[#allocation2 + $0xe0] sm:$0xff] }
 0x198   : > { %2478 = vmatprep.subr.bf16.mxu0 %v2661_v5  ;;  %v1116_v40 = vld [vmem:[#allocation2 + $0x58] sm:$0xff]  ;;  %v1120_v46 = vld [vmem:[#allocation2 + $0x90] sm:$0xff]  ;;  %v1140_v47 = vpack.c.bf16 %v1118_v44, %v1117_v43  ;;  %v1122_v50 = vld [vmem:[#allocation2 + $0xc0] sm:$0xff] }
 0x199   : > { %v1139_v42 = vpack.c.bf16 %v1116_v40, %v1115_v39  ;;  %v1141_v48 = vpack.c.bf16 %v1120_v46, %v1119_v45  ;;  %v1121_v49 = vld [vmem:[#allocation2 + $0x70] sm:$0xff]  ;;  %v1123_v51 = vld [vmem:[#allocation2 + $0xa8] sm:$0xff]  ;;  %v1127_v57 = vld [vmem:[#allocation2 + $0xa0] sm:$0xff] }
 0x19a   : > { %2525 = vmatpush3.bf16.msra.mxu1 %v2668_v16  ;;  %v1124_v52 = vld [vmem:[#allocation2 + $0xd0] sm:$0xff]  ;;  %v1142_v53 = vpack.c.bf16 %v1122_v50, %v1121_v49  ;;  %v1126_v56 = vld [vmem:[#allocation2 + $0x28] sm:$0xff]  ;;  %v1128_v58 = vld [vmem:[#allocation2 + $0xf8] sm:$0xff] }
 0x19b   : > { %2479 = vmatpush3.bf16.msra.mxu0 %v2661_v5  ;;  %2526 = vmatprep.subr.bf16.mxu1 %v2669_v19  ;;  %v1143_v54 = vpack.c.bf16 %v1124_v52, %v1123_v51  ;;  %v1125_v55 = vld [vmem:[#allocation2 + $0x10] sm:$0xff]  ;;  %v1145_v60 = vpack.c.bf16 %v1128_v58, %v1127_v57  ;;  %v1129_v61 = vld [vmem:[#allocation2 + $0x20] sm:$0xff]  ;;  %v1130_v62 = vld [vmem:[#allocation2 + $0x98] sm:$0xff] }
 0x19c   : > { %2480 = vmatprep.subr.bf16.mxu0 %v2662_v10  ;;  %v1144_v59 = vpack.c.bf16 %v1126_v56, %v1125_v55  ;;  %v1146_v63 = vpack.c.bf16 %v1130_v62, %v1129_v61  ;;  %v2671_v0 = vld [vmem:[%s3203_s5 + $0x10] sm:$0xff]   ;;  %v2672_v1 = vld [vmem:[%s3203_s5 + $0x8] sm:$0xff]   ;;  %v2673_v2 = vld [vmem:[%s3203_s5] sm:$0xff]  }
 0x19d   : > { %v3016_v4 = vld [vmem:[%s3202_s4] ss:$0 sm:$0xff] }
 0x19e   : > { %2527 = vmatpush3.bf16.msra.mxu1 %v2669_v19 }
 0x19f   : > { %2481 = vmatpush3.bf16.msra.mxu0 %v2662_v10  ;;  %2528 = vmatprep.subr.bf16.mxu1 %v2670_v24 }
 0x1a0   : > { %2482 = vmatprep.subr.bf16.mxu0 %v2663_v11 }
 0x1a2   : > { %2529 = vmatpush3.bf16.msra.mxu1 %v2670_v24 }
 0x1a3   : > { %2483 = vmatpush3.bf16.msra.mxu0 %v2663_v11  ;;  %2530 = vmatprep.subr.bf16.mxu1 %v2671_v0 }
 0x1a4   : > { %2484 = vmatprep.subr.bf16.mxu0 %v2664_v12 }
 0x1a6   : > { %2531 = vmatpush3.bf16.msra.mxu1 %v2671_v0 }
 0x1a7   : > { %2485 = vmatpush3.bf16.msra.mxu0 %v2664_v12  ;;  %2532 = vmatprep.subr.bf16.mxu1 %v2672_v1 }
 0x1a8   : > { %2486 = vmatprep.subr.bf16.mxu0 %v2665_v15 }
 0x1aa   : > { %2533 = vmatpush3.bf16.msra.mxu1 %v2672_v1 }
 0x1ab   : > { %2487 = vmatpush3.bf16.msra.mxu0 %v2665_v15  ;;  %2534 = vmatprep.subr.bf16.mxu1 %v2673_v2 }
 0x1ae   : > { %2489 = vmatmul.mubr.bf16.vlgmr.msra.gmra.mxu0 %v1132_v22  ;;  %2535 = vmatpush3.bf16.msra.mxu1 %v2673_v2 }
 0x1af   : > { %2492 = vmatprep.mubr.bf16.mxu0 %v1133_v23 }
 0x1b6   : > { %2493 = vmatmul.mubr.bf16.gmra.mxu0 %v1134_v29 }
 0x1b7   : > { %2496 = vmatprep.mubr.bf16.mxu0 %v1135_v30 }
 0x1be   : > { %2497 = vmatmul.mubr.bf16.gmra.mxu0 %v1136_v35 }
 0x1bf   : > { %2500 = vmatprep.mubr.bf16.mxu0 %v1137_v36 }
 0x1c6   : > { %2501 = vmatmul.mubr.bf16.gmra.mxu0 %v1138_v41 }
 0x1c7   : > { %2504 = vmatprep.mubr.bf16.mxu0 %v1139_v42 }
 0x1ce   : > { %2505 = vmatmul.mubr.bf16.gmra.mxu0 %v1140_v47 }
 0x1cf   : > { %2508 = vmatprep.mubr.bf16.mxu0 %v1141_v48 }
 0x1d6   : > { %2509 = vmatmul.mubr.bf16.gmra.mxu0 %v1142_v53 }
 0x1d7   : > { %2512 = vmatprep.mubr.bf16.mxu0 %v1143_v54 }
 0x1de   : > { %2513 = vmatmul.mubr.bf16.gmra.mxu0 %v1144_v59 }
 0x1df   : > { %2516 = vmatprep.mubr.bf16.mxu0 %v1145_v60 }
 0x1e6   : > { %2517 = vmatmul.mubr.bf16.gmra.mxu0 %v1146_v63 }
 0x26e   : > { %v2490_v8 = vpop.f32.mrf.mxu0 }
 0x26f   : > { %v1261_v9 = vadd.f32 %v2490_v8, %v3016_v4 }
 0x270   : > { %v1252_v3 = vpop.f32.mrf.mxu0 }
 0x271   : > { %v1253_v6 = vadd.f32 %v3016_v4, %v1252_v3  ;;  %v1381_v16 = vmax.f32 %v1261_v9, 0.0 }
 0x272   : > { %v2491_v5 = vpop.f32.mrf.mxu0 }
 0x273   : > { %v1264_v7 = vadd.f32 %v2491_v5, %v3016_v4  ;;  %v1379_v14 = vmax.f32 %v1253_v6, 0.0 }
 0x274   : > { %v1255_v10 = vpop.f32.mrf.mxu0 }
 0x275   : > { %v1256_v11 = vadd.f32 %v3016_v4, %v1255_v10  ;;  %v1382_v12 = vmax.f32 %v1264_v7, 0.0 }
 0x276   : > { %v2494_v13 = vpop.f32.mrf.mxu0 }
 0x277   : > { %v1380_v15 = vmax.f32 %v1256_v11, 0.0  ;;  %v1412_v19 = vpack.c.bf16 %v1382_v12, %v1381_v16  ;;  %v1277_v23 = vadd.f32 %v2494_v13, %v3016_v4 }
 0x278   : > { %v1268_v17 = vpop.f32.mrf.mxu0 }
 0x279   : > { %v1411_v18 = vpack.c.bf16 %v1380_v15, %v1379_v14  ;;  %v1269_v21 = vadd.f32 %v3016_v4, %v1268_v17  ;;  %v1385_v30 = vmax.f32 %v1277_v23, 0.0 }
 0x27a   : > { %v2495_v20 = vpop.f32.mrf.mxu0 }
 0x27b   : > { %v1280_v22 = vadd.f32 %v2495_v20, %v3016_v4  ;;  %2536 = vmatprep.mubr.bf16.mxu1 %v1411_v18  ;;  %v1383_v28 = vmax.f32 %v1269_v21, 0.0 }
 0x27c   : > { %v1271_v24 = vpop.f32.mrf.mxu0  ;;  %2537 = vmatmul.mubr.bf16.vlgmr.msra.gmra.mxu1 %v1412_v19 }
 0x27d   : > { %v1272_v25 = vadd.f32 %v3016_v4, %v1271_v24  ;;  %v1386_v26 = vmax.f32 %v1280_v22, 0.0 }
 0x27e   : > { %v2498_v27 = vpop.f32.mrf.mxu0 }
 0x27f   : > { %v1384_v29 = vmax.f32 %v1272_v25, 0.0  ;;  %v1414_v33 = vpack.c.bf16 %v1386_v26, %v1385_v30  ;;  %v1293_v37 = vadd.f32 %v2498_v27, %v3016_v4 }
 0x280   : > { %v1284_v31 = vpop.f32.mrf.mxu0 }
 0x281   : > { %v1413_v32 = vpack.c.bf16 %v1384_v29, %v1383_v28  ;;  %v1285_v35 = vadd.f32 %v3016_v4, %v1284_v31  ;;  %v1389_v44 = vmax.f32 %v1293_v37, 0.0 }
 0x282   : > { %v2499_v34 = vpop.f32.mrf.mxu0 }
 0x283   : > { %v1296_v36 = vadd.f32 %v2499_v34, %v3016_v4  ;;  %2540 = vmatprep.mubr.bf16.mxu1 %v1413_v32  ;;  %v1387_v42 = vmax.f32 %v1285_v35, 0.0 }
 0x284   : > { %v1287_v38 = vpop.f32.mrf.mxu0  ;;  %2541 = vmatmul.mubr.bf16.gmra.mxu1 %v1414_v33 }
 0x285   : > { %v1288_v39 = vadd.f32 %v3016_v4, %v1287_v38  ;;  %v1390_v40 = vmax.f32 %v1296_v36, 0.0 }
 0x286   : > { %v2502_v41 = vpop.f32.mrf.mxu0 }
 0x287   : > { %v1388_v43 = vmax.f32 %v1288_v39, 0.0  ;;  %v1416_v47 = vpack.c.bf16 %v1390_v40, %v1389_v44  ;;  %v1309_v51 = vadd.f32 %v2502_v41, %v3016_v4 }
 0x288   : > { %v1300_v45 = vpop.f32.mrf.mxu0 }
 0x289   : > { %v1415_v46 = vpack.c.bf16 %v1388_v43, %v1387_v42  ;;  %v1301_v49 = vadd.f32 %v3016_v4, %v1300_v45  ;;  %v1393_v58 = vmax.f32 %v1309_v51, 0.0 }
 0x28a   : > { %v2503_v48 = vpop.f32.mrf.mxu0 }
 0x28b   : > { %v1312_v50 = vadd.f32 %v2503_v48, %v3016_v4  ;;  %2544 = vmatprep.mubr.bf16.mxu1 %v1415_v46  ;;  %v1391_v56 = vmax.f32 %v1301_v49, 0.0 }
 0x28c   : > { %v1303_v52 = vpop.f32.mrf.mxu0  ;;  %2545 = vmatmul.mubr.bf16.gmra.mxu1 %v1416_v47 }
 0x28d   : > { %v1304_v53 = vadd.f32 %v3016_v4, %v1303_v52  ;;  %v1394_v54 = vmax.f32 %v1312_v50, 0.0 }
 0x28e   : > { %v2506_v55 = vpop.f32.mrf.mxu0 }
 0x28f   : > { %v1392_v57 = vmax.f32 %v1304_v53, 0.0  ;;  %v1418_v61 = vpack.c.bf16 %v1394_v54, %v1393_v58  ;;  %v1325_v1 = vadd.f32 %v2506_v55, %v3016_v4  ;;  %v3053_v53 = vld [vmem:[%s3204_s6] ss:$0 sm:$0xff] }
 0x290   : > { %v1316_v59 = vpop.f32.mrf.mxu0  ;;  %v3060_v58 = vld [vmem:[%s3205_s7] ss:$0 sm:$0xff] }
 0x291   : > { %v1417_v60 = vpack.c.bf16 %v1392_v57, %v1391_v56  ;;  %v1317_v63 = vadd.f32 %v3016_v4, %v1316_v59  ;;  %v1397_v9 = vmax.f32 %v1325_v1, 0.0 }
 0x292   : > { %v2507_v62 = vpop.f32.mrf.mxu0 }
 0x293   : > { %v1328_v0 = vadd.f32 %v2507_v62, %v3016_v4  ;;  %2548 = vmatprep.mubr.bf16.mxu1 %v1417_v60  ;;  %v1395_v6 = vmax.f32 %v1317_v63, 0.0 }
 0x294   : > { %v1319_v2 = vpop.f32.mrf.mxu0  ;;  %2549 = vmatmul.mubr.bf16.gmra.mxu1 %v1418_v61 }
 0x295   : > { %v1320_v8 = vadd.f32 %v3016_v4, %v1319_v2  ;;  %v1398_v3 = vmax.f32 %v1328_v0, 0.0  ;;  %v3068_v2 = vld [vmem:[%s3206_s8] ss:$0 sm:$0xff] }
 0x296   : > { %v2510_v5 = vpop.f32.mrf.mxu0 }
 0x297   : > { %v1396_v7 = vmax.f32 %v1320_v8, 0.0  ;;  %v1420_v12 = vpack.c.bf16 %v1398_v3, %v1397_v9  ;;  %v1341_v16 = vadd.f32 %v2510_v5, %v3016_v4 }
 0x298   : > { %v1332_v10 = vpop.f32.mrf.mxu0 }
 0x299   : > { %v1419_v11 = vpack.c.bf16 %v1396_v7, %v1395_v6  ;;  %v1333_v14 = vadd.f32 %v3016_v4, %v1332_v10  ;;  %v1401_v23 = vmax.f32 %v1341_v16, 0.0 }
 0x29a   : > { %v2511_v13 = vpop.f32.mrf.mxu0 }
 0x29b   : > { %v1344_v15 = vadd.f32 %v2511_v13, %v3016_v4  ;;  %2552 = vmatprep.mubr.bf16.mxu1 %v1419_v11  ;;  %v1399_v21 = vmax.f32 %v1333_v14, 0.0 }
 0x29c   : > { %v1335_v17 = vpop.f32.mrf.mxu0  ;;  %2553 = vmatmul.mubr.bf16.gmra.mxu1 %v1420_v12 }
 0x29d   : > { %v1336_v18 = vadd.f32 %v3016_v4, %v1335_v17  ;;  %v1402_v19 = vmax.f32 %v1344_v15, 0.0 }
 0x29e   : > { %v2514_v20 = vpop.f32.mrf.mxu0 }
 0x29f   : > { %v1400_v22 = vmax.f32 %v1336_v18, 0.0  ;;  %v1422_v26 = vpack.c.bf16 %v1402_v19, %v1401_v23  ;;  %v1357_v30 = vadd.f32 %v2514_v20, %v3016_v4 }
 0x2a0   : > { %v1348_v24 = vpop.f32.mrf.mxu0 }
 0x2a1   : > { %v1421_v25 = vpack.c.bf16 %v1400_v22, %v1399_v21  ;;  %v1349_v28 = vadd.f32 %v3016_v4, %v1348_v24  ;;  %v1405_v37 = vmax.f32 %v1357_v30, 0.0 }
 0x2a2   : > { %v2515_v27 = vpop.f32.mrf.mxu0 }
 0x2a3   : > { %v1360_v29 = vadd.f32 %v2515_v27, %v3016_v4  ;;  %2556 = vmatprep.mubr.bf16.mxu1 %v1421_v25  ;;  %v1403_v35 = vmax.f32 %v1349_v28, 0.0 }
 0x2a4   : > { %v1351_v31 = vpop.f32.mrf.mxu0  ;;  %2557 = vmatmul.mubr.bf16.gmra.mxu1 %v1422_v26 }
 0x2a5   : > { %v1352_v32 = vadd.f32 %v3016_v4, %v1351_v31  ;;  %v1406_v33 = vmax.f32 %v1360_v29, 0.0 }
 0x2a6   : > { %v2518_v34 = vpop.f32.mrf.mxu0 }
 0x2a7   : > { %v1404_v36 = vmax.f32 %v1352_v32, 0.0  ;;  %v1424_v40 = vpack.c.bf16 %v1406_v33, %v1405_v37  ;;  %v1373_v44 = vadd.f32 %v2518_v34, %v3016_v4 }
 0x2a8   : > { %v1364_v38 = vpop.f32.mrf.mxu0 }
 0x2a9   : > { %v1423_v39 = vpack.c.bf16 %v1404_v36, %v1403_v35  ;;  %v1365_v42 = vadd.f32 %v3016_v4, %v1364_v38  ;;  %v1409_v50 = vmax.f32 %v1373_v44, 0.0 }
 0x2aa   : > { %v2519_v41 = vpop.f32.mrf.mxu0 }
 0x2ab   : > { %v1376_v43 = vadd.f32 %v2519_v41, %v3016_v4  ;;  %2560 = vmatprep.mubr.bf16.mxu1 %v1423_v39  ;;  %v1407_v48 = vmax.f32 %v1365_v42, 0.0 }
 0x2ac   : > { %v1367_v45 = vpop.f32.mrf.mxu0  ;;  %2561 = vmatmul.mubr.bf16.gmra.mxu1 %v1424_v40 }
 0x2ad   : > { %v1368_v46 = vadd.f32 %v3016_v4, %v1367_v45  ;;  %v1410_v47 = vmax.f32 %v1376_v43, 0.0 }
 0x2af   : > { %v1408_v49 = vmax.f32 %v1368_v46, 0.0  ;;  %v1426_v52 = vpack.c.bf16 %v1410_v47, %v1409_v50 }
 0x2b1   : > { %v1425_v51 = vpack.c.bf16 %v1408_v49, %v1407_v48 }
 0x2b3   : > { %2564 = vmatprep.mubr.bf16.mxu1 %v1425_v51 }
 0x2b4   : > { %2565 = vmatmul.mubr.bf16.gmra.mxu1 %v1426_v52 }
 0x33c   : > { %v2538_v54 = vpop.f32.mrf.mxu1 }
 0x33d   : > { %v1541_v55 = vadd.f32 %v2538_v54, %v3053_v53 }
 0x33e   : > { %v1532_v56 = vpop.f32.mrf.mxu1 }
 0x33f   : > { %v1661_v57 = vmax.f32 %v1541_v55, 0.0  ;;  %v1533_v4 = vadd.f32 %v3053_v53, %v1532_v56 }
 0x340   : > { %v2539_v59 = vpop.f32.mrf.mxu1 }
 0x341   : > { %v1659_v60 = vmax.f32 %v1533_v4, 0.0  ;;  %v1544_v61 = vadd.f32 %v2539_v59, %v3053_v53  ;;  %v1700_v63 = vmul.f32 %v3060_v58, %v1661_v57 }
 0x342   : > { %v1535_v62 = vpop.f32.mrf.mxu1 }
 0x343   : > { %v1662_v0 = vmax.f32 %v1544_v61, 0.0  ;;  %v1536_v1 = vadd.f32 %v3053_v53, %v1535_v62  ;;  %v1698_v3 = vmul.f32 %v3060_v58, %v1659_v60  ;;  %v1739_v10 = vadd.f32 %v3068_v2, %v1700_v63 }
 0x344   : > { %v2542_v8 = vpop.f32.mrf.mxu1 }
 0x345   : > { %v1701_v5 = vmul.f32 %v3060_v58, %v1662_v0  ;;  %v1660_v6 = vmax.f32 %v1536_v1, 0.0  ;;  %v1557_v7 = vadd.f32 %v2542_v8, %v3053_v53  ;;  %v1737_v16 = vadd.f32 %v3068_v2, %v1698_v3 }
 0x346   : > { %v1548_v9 = vpop.f32.mrf.mxu1 }
 0x347   : > { %v1740_v11 = vadd.f32 %v3068_v2, %v1701_v5  ;;  %v1699_v12 = vmul.f32 %v3060_v58, %v1660_v6  ;;  %v1549_v13 = vadd.f32 %v3053_v53, %v1548_v9  ;;  %v1665_v14 = vmax.f32 %v1557_v7, 0.0 }
 0x348   : > { %v2543_v15 = vpop.f32.mrf.mxu1 }
 0x349   : > { %v2210_v17 = vpack.c.bf16 %v1740_v11, %v1739_v10  ;;  %v1738_v18 = vadd.f32 %v3068_v2, %v1699_v12  ;;  %v1663_v19 = vmax.f32 %v1549_v13, 0.0  ;;  %v1560_v20 = vadd.f32 %v2543_v15, %v3053_v53 }
 0x34a   : > { %v1551_v21 = vpop.f32.mrf.mxu1  ;;  %v1704_v24 = vmul.f32 %v3060_v58, %v1665_v14 }
 0x34b   : > { %2297 = vst [vmem:[%s2875_s20 + $0x8] sm:$0xff] %v2210_v17   ;;  %v2205_v22 = vpack.c.bf16 %v1738_v18, %v1737_v16  ;;  %v1552_v23 = vadd.f32 %v3053_v53, %v1551_v21  ;;  %v1666_v25 = vmax.f32 %v1560_v20, 0.0  ;;  %v1702_v27 = vmul.f32 %v3060_v58, %v1663_v19 }
 0x34c   : > { %v2546_v26 = vpop.f32.mrf.mxu1  ;;  %v1743_v35 = vadd.f32 %v3068_v2, %v1704_v24 }
 0x34d   : > { %2206 = vst [vmem:[%s2875_s20] sm:$0xff] %v2205_v22   ;;  %v1664_v28 = vmax.f32 %v1552_v23, 0.0  ;;  %v1573_v29 = vadd.f32 %v2546_v26, %v3053_v53  ;;  %v1705_v30 = vmul.f32 %v3060_v58, %v1666_v25  ;;  %v1741_v38 = vadd.f32 %v3068_v2, %v1702_v27 }
 0x34e   : > { %v1564_v31 = vpop.f32.mrf.mxu1 }
 0x34f   : > { %v1703_v32 = vmul.f32 %v3060_v58, %v1664_v28  ;;  %v1669_v33 = vmax.f32 %v1573_v29, 0.0  ;;  %v1565_v34 = vadd.f32 %v3053_v53, %v1564_v31  ;;  %v1744_v36 = vadd.f32 %v3068_v2, %v1705_v30 }
 0x350   : > { %v2547_v37 = vpop.f32.mrf.mxu1 }
 0x351   : > { %v1742_v39 = vadd.f32 %v3068_v2, %v1703_v32  ;;  %v1576_v40 = vadd.f32 %v2547_v37, %v3053_v53  ;;  %v2220_v41 = vpack.c.bf16 %v1744_v36, %v1743_v35  ;;  %v1667_v42 = vmax.f32 %v1565_v34, 0.0 }
 0x352   : > { %v1567_v43 = vpop.f32.mrf.mxu1  ;;  %v1708_v45 = vmul.f32 %v3060_v58, %v1669_v33 }
 0x353   : > { %v2215_v44 = vpack.c.bf16 %v1742_v39, %v1741_v38  ;;  %v1670_v46 = vmax.f32 %v1576_v40, 0.0  ;;  %2299 = vst [vmem:[%s2875_s20 + $0x18] sm:$0xff] %v2220_v41   ;;  %v1568_v47 = vadd.f32 %v3053_v53, %v1567_v43  ;;  %v1706_v51 = vmul.f32 %v3060_v58, %v1667_v42 }
 0x354   : > { %v2550_v48 = vpop.f32.mrf.mxu1  ;;  %v1747_v55 = vadd.f32 %v3068_v2, %v1708_v45 }
 0x355   : > { %2298 = vst [vmem:[%s2875_s20 + $0x10] sm:$0xff] %v2215_v44   ;;  %v1709_v49 = vmul.f32 %v3060_v58, %v1670_v46  ;;  %v1589_v50 = vadd.f32 %v2550_v48, %v3053_v53  ;;  %v1668_v52 = vmax.f32 %v1568_v47, 0.0  ;;  %v1745_v0 = vadd.f32 %v3068_v2, %v1706_v51 }
 0x356   : > { %v1580_v54 = vpop.f32.mrf.mxu1 }
 0x357   : > { %v1748_v56 = vadd.f32 %v3068_v2, %v1709_v49  ;;  %v1673_v57 = vmax.f32 %v1589_v50, 0.0  ;;  %v1581_v4 = vadd.f32 %v3053_v53, %v1580_v54  ;;  %v1707_v59 = vmul.f32 %v3060_v58, %v1668_v52 }
 0x358   : > { %v2551_v60 = vpop.f32.mrf.mxu1 }
 0x359   : > { %v2230_v61 = vpack.c.bf16 %v1748_v56, %v1747_v55  ;;  %v1671_v62 = vmax.f32 %v1581_v4, 0.0  ;;  %v1592_v63 = vadd.f32 %v2551_v60, %v3053_v53  ;;  %v1746_v1 = vadd.f32 %v3068_v2, %v1707_v59 }
 0x35a   : > { %v1583_v8 = vpop.f32.mrf.mxu1  ;;  %v1712_v3 = vmul.f32 %v3060_v58, %v1673_v57 }
 0x35b   : > { %2301 = vst [vmem:[%s2875_s20 + $0x28] sm:$0xff] %v2230_v61   ;;  %v1674_v5 = vmax.f32 %v1592_v63, 0.0  ;;  %v1584_v6 = vadd.f32 %v3053_v53, %v1583_v8  ;;  %v2225_v7 = vpack.c.bf16 %v1746_v1, %v1745_v0  ;;  %v1710_v10 = vmul.f32 %v3060_v58, %v1671_v62 }
 0x35c   : > { %v2554_v9 = vpop.f32.mrf.mxu1  ;;  %v1751_v15 = vadd.f32 %v3068_v2, %v1712_v3 }
 0x35d   : > { %v1713_v11 = vmul.f32 %v3060_v58, %v1674_v5  ;;  %v1672_v12 = vmax.f32 %v1584_v6, 0.0  ;;  %v1605_v13 = vadd.f32 %v2554_v9, %v3053_v53  ;;  %2300 = vst [vmem:[%s2875_s20 + $0x20] sm:$0xff] %v2225_v7   ;;  %v1749_v21 = vadd.f32 %v3068_v2, %v1710_v10 }
 0x35e   : > { %v1596_v14 = vpop.f32.mrf.mxu1 }
 0x35f   : > { %v1752_v16 = vadd.f32 %v3068_v2, %v1713_v11  ;;  %v1711_v17 = vmul.f32 %v3060_v58, %v1672_v12  ;;  %v1597_v18 = vadd.f32 %v3053_v53, %v1596_v14  ;;  %v1677_v19 = vmax.f32 %v1605_v13, 0.0 }
 0x360   : > { %v2555_v20 = vpop.f32.mrf.mxu1 }
 0x361   : > { %v2240_v22 = vpack.c.bf16 %v1752_v16, %v1751_v15  ;;  %v1750_v23 = vadd.f32 %v3068_v2, %v1711_v17  ;;  %v1675_v24 = vmax.f32 %v1597_v18, 0.0  ;;  %v1608_v25 = vadd.f32 %v2555_v20, %v3053_v53 }
 0x362   : > { %v1599_v26 = vpop.f32.mrf.mxu1  ;;  %v1716_v29 = vmul.f32 %v3060_v58, %v1677_v19 }
 0x363   : > { %2303 = vst [vmem:[%s2875_s20 + $0x38] sm:$0xff] %v2240_v22   ;;  %v2235_v27 = vpack.c.bf16 %v1750_v23, %v1749_v21  ;;  %v1600_v28 = vadd.f32 %v3053_v53, %v1599_v26  ;;  %v1678_v30 = vmax.f32 %v1608_v25, 0.0  ;;  %v1714_v32 = vmul.f32 %v3060_v58, %v1675_v24 }
 0x364   : > { %v2558_v31 = vpop.f32.mrf.mxu1  ;;  %v1755_v40 = vadd.f32 %v3068_v2, %v1716_v29 }
 0x365   : > { %2302 = vst [vmem:[%s2875_s20 + $0x30] sm:$0xff] %v2235_v27   ;;  %v1676_v33 = vmax.f32 %v1600_v28, 0.0  ;;  %v1621_v34 = vadd.f32 %v2558_v31, %v3053_v53  ;;  %v1717_v35 = vmul.f32 %v3060_v58, %v1678_v30  ;;  %v1753_v43 = vadd.f32 %v3068_v2, %v1714_v32 }
 0x366   : > { %v1612_v36 = vpop.f32.mrf.mxu1 }
 0x367   : > { %v1715_v37 = vmul.f32 %v3060_v58, %v1676_v33  ;;  %v1681_v38 = vmax.f32 %v1621_v34, 0.0  ;;  %v1613_v39 = vadd.f32 %v3053_v53, %v1612_v36  ;;  %v1756_v41 = vadd.f32 %v3068_v2, %v1717_v35 }
 0x368   : > { %v2559_v42 = vpop.f32.mrf.mxu1 }
 0x369   : > { %v1754_v44 = vadd.f32 %v3068_v2, %v1715_v37  ;;  %v1624_v45 = vadd.f32 %v2559_v42, %v3053_v53  ;;  %v2250_v46 = vpack.c.bf16 %v1756_v41, %v1755_v40  ;;  %v1679_v47 = vmax.f32 %v1613_v39, 0.0 }
 0x36a   : > { %v1615_v48 = vpop.f32.mrf.mxu1  ;;  %v1720_v50 = vmul.f32 %v3060_v58, %v1681_v38 }
 0x36b   : > { %v2245_v49 = vpack.c.bf16 %v1754_v44, %v1753_v43  ;;  %v1682_v51 = vmax.f32 %v1624_v45, 0.0  ;;  %2305 = vst [vmem:[%s2875_s20 + $0x48] sm:$0xff] %v2250_v46   ;;  %v1616_v52 = vadd.f32 %v3053_v53, %v1615_v48  ;;  %v1718_v57 = vmul.f32 %v3060_v58, %v1679_v47 }
 0x36c   : > { %v2562_v54 = vpop.f32.mrf.mxu1  ;;  %v1759_v60 = vadd.f32 %v3068_v2, %v1720_v50 }
 0x36d   : > { %2304 = vst [vmem:[%s2875_s20 + $0x40] sm:$0xff] %v2245_v49   ;;  %v1721_v55 = vmul.f32 %v3060_v58, %v1682_v51  ;;  %v1637_v56 = vadd.f32 %v2562_v54, %v3053_v53  ;;  %v1680_v4 = vmax.f32 %v1616_v52, 0.0  ;;  %v1757_v6 = vadd.f32 %v3068_v2, %v1718_v57 }
 0x36e   : > { %v1628_v59 = vpop.f32.mrf.mxu1 }
 0x36f   : > { %v1760_v61 = vadd.f32 %v3068_v2, %v1721_v55  ;;  %v1685_v62 = vmax.f32 %v1637_v56, 0.0  ;;  %v1629_v63 = vadd.f32 %v3053_v53, %v1628_v59  ;;  %v1719_v0 = vmul.f32 %v3060_v58, %v1680_v4 }
 0x370   : > { %v2563_v1 = vpop.f32.mrf.mxu1 }
 0x371   : > { %v2260_v8 = vpack.c.bf16 %v1760_v61, %v1759_v60  ;;  %v1683_v3 = vmax.f32 %v1629_v63, 0.0  ;;  %v1640_v5 = vadd.f32 %v2563_v1, %v3053_v53  ;;  %v1758_v7 = vadd.f32 %v3068_v2, %v1719_v0 }
 0x372   : > { %v1631_v9 = vpop.f32.mrf.mxu1  ;;  %v1724_v10 = vmul.f32 %v3060_v58, %v1685_v62 }
 0x373   : > { %2307 = vst [vmem:[%s2875_s20 + $0x58] sm:$0xff] %v2260_v8   ;;  %v1686_v11 = vmax.f32 %v1640_v5, 0.0  ;;  %v1632_v12 = vadd.f32 %v3053_v53, %v1631_v9  ;;  %v2255_v13 = vpack.c.bf16 %v1758_v7, %v1757_v6  ;;  %v1722_v15 = vmul.f32 %v3060_v58, %v1683_v3 }
 0x374   : > { %v2566_v14 = vpop.f32.mrf.mxu1  ;;  %v1763_v20 = vadd.f32 %v3068_v2, %v1724_v10 }
 0x375   : > { %v1725_v16 = vmul.f32 %v3060_v58, %v1686_v11  ;;  %v1684_v17 = vmax.f32 %v1632_v12, 0.0  ;;  %v1653_v18 = vadd.f32 %v2566_v14, %v3053_v53  ;;  %2306 = vst [vmem:[%s2875_s20 + $0x50] sm:$0xff] %v2255_v13   ;;  %v1761_v26 = vadd.f32 %v3068_v2, %v1722_v15 }
 0x376   : > { %v1644_v19 = vpop.f32.mrf.mxu1 }
 0x377   : > { %v1764_v21 = vadd.f32 %v3068_v2, %v1725_v16  ;;  %v1723_v22 = vmul.f32 %v3060_v58, %v1684_v17  ;;  %v1645_v23 = vadd.f32 %v3053_v53, %v1644_v19  ;;  %v1689_v24 = vmax.f32 %v1653_v18, 0.0 }
 0x378   : > { %v2567_v25 = vpop.f32.mrf.mxu1 }
 0x379   : > { %v2270_v27 = vpack.c.bf16 %v1764_v21, %v1763_v20  ;;  %v1762_v28 = vadd.f32 %v3068_v2, %v1723_v22  ;;  %v1687_v29 = vmax.f32 %v1645_v23, 0.0  ;;  %v1656_v30 = vadd.f32 %v2567_v25, %v3053_v53 }
 0x37a   : > { %v1647_v31 = vpop.f32.mrf.mxu1  ;;  %v1728_v34 = vmul.f32 %v3060_v58, %v1689_v24 }
 0x37b   : > { %2309 = vst [vmem:[%s2875_s20 + $0x68] sm:$0xff] %v2270_v27   ;;  %v2265_v32 = vpack.c.bf16 %v1762_v28, %v1761_v26  ;;  %v1648_v33 = vadd.f32 %v3053_v53, %v1647_v31  ;;  %v1690_v35 = vmax.f32 %v1656_v30, 0.0  ;;  %v1726_v36 = vmul.f32 %v3060_v58, %v1687_v29 }
 0x37c   : > { %v1767_v40 = vadd.f32 %v3068_v2, %v1728_v34 }
 0x37d   : > { %2308 = vst [vmem:[%s2875_s20 + $0x60] sm:$0xff] %v2265_v32   ;;  %v1688_v37 = vmax.f32 %v1648_v33, 0.0  ;;  %v1729_v38 = vmul.f32 %v3060_v58, %v1690_v35  ;;  %v1765_v42 = vadd.f32 %v3068_v2, %v1726_v36 }
 0x37f   : > { %v1727_v39 = vmul.f32 %v3060_v58, %v1688_v37  ;;  %v1768_v41 = vadd.f32 %v3068_v2, %v1729_v38 }
 0x381   : > { %v1766_v43 = vadd.f32 %v3068_v2, %v1727_v39  ;;  %v2280_v53 = vpack.c.bf16 %v1768_v41, %v1767_v40 }
 0x383   : > { %v2275_v44 = vpack.c.bf16 %v1766_v43, %v1765_v42  ;;  %2311 = vst [vmem:[%s2875_s20 + $0x78] sm:$0xff] %v2280_v53  }
 0x385   : > { %2310 = vst [vmem:[%s2875_s20 + $0x70] sm:$0xff] %v2275_v44  }
 0x386 PF: > { %s20_s17 = sadd.s32 1, %s2728_s17   ;;  %s3208_s11 = smov %s2708_s12 }
 0x387   : > { %p17_p1 = scmp.ge.s32.totalorder %s20_s17, 11   ;;  %s3209_s12 = smov %s2835_s23 }
 0x388   : > { %s3210_s13 = smov %s2720_s15  ;;  %s3211_s14 = smov %s2724_s16 }
 0x389   : > { %s3212_s15 = smov %s3215_s0  ;;  %s3213_s16 = smov %s3219_s18 }
 0x38a   :  { %19 = sbr.rel (!%p17_p1) target bundleno = 6 (0x6), region = 129 }

// kernel: gin_forward.4
= control target key start
LH: loop header
LB: loop body
LE: loop exit
PB: predicated region body
PF: predicated region fallthrough
CT: control target
= control target key end

     0   :  { %s3864_s0 = inlined_call_operand.<no memory space> [shape: f32[1], index: 0, kind: input, shape index: {}]   ;;  %s3865_s1 = inlined_call_operand.hbm [shape: s8[768,768], index: 1, kind: input, shape index: {}]   ;;  %s3866_s2 = inlined_call_operand.hbm [shape: bf16[768,128], index: 2, kind: input, shape index: {}]   ;;  %s3867_s3 = inlined_call_operand.hbm [shape: bf16[128,128], index: 3, kind: input, shape index: {}]   ;;  %s3868_s4 = inlined_call_operand.hbm [shape: f32[1,128], index: 4, kind: input, shape index: {}]   ;;  %s3869_s5 = inlined_call_operand.hbm [shape: bf16[128,128], index: 5, kind: input, shape index: {}]   ;;  %s3870_s6 = inlined_call_operand.hbm [shape: f32[1,128], index: 6, kind: input, shape index: {}]   ;;  %s3871_s7 = inlined_call_operand.hbm [shape: f32[1,128], index: 7, kind: input, shape index: {}]   ;;  %s3872_s8 = inlined_call_operand.hbm [shape: f32[1,128], index: 8, kind: input, shape index: {}]   ;;  %s3873_s9 = inlined_call_operand.vmem [shape: bf16[768,128], index: 9, kind: output, shape index: {}]  }
   0x1   :  { %3883 = sst [smem:[#allocation28_spill]] %s3867_s3 }
   0x2   :  { %3884 = sst [smem:[#allocation29_spill]] %s3868_s4 }
   0x3   :  { %3885 = sst [smem:[#allocation30_spill]] %s3869_s5 }
   0x4   :  { %3886 = sst [smem:[#allocation31_spill]] %s3870_s6 }
   0x5   :  { %3887 = sst [smem:[#allocation32_spill]] %s3871_s7 }
   0x6   :  { %3888 = sst [smem:[#allocation33_spill]] %s3872_s8 }
   0x7   :  { %3889 = sst [smem:[#allocation34_spill]] %s3873_s9 }
   0x8   :  { %14 = sst [smem:[#allocation3]] %s3864_s0 }
   0x9   :  { %15 = vsyncpa [#allocation5], 0 }
   0xa   :  { %17 = vsyncpa [#allocation5 + $0x1], 0 }
   0xb   :  { %18 = vsyncpa [#allocation7], 0 }
   0xc   :  { %20 = vsyncpa [#allocation7 + $0x1], 0 }
   0xd   :  { %21 = vsyncpa [#allocation10], 0 }
   0xe   :  { %22 = vsyncpa [#allocation13], 0 }
   0xf   :  { %23 = vsyncpa [#allocation16], 0  ;;  %s3331_s11 = smov 0   ;;  %s3333_s12 = smov 0  }
  0x10   :  { %s3335_s13 = smov 0   ;;  %s3337_s14 = smov 0  }
  0x11   :  { %s3339_s15 = smov 0   ;;  %s3341_s16 = smov 0  }
  0x12   :  { %s3343_s0 = smov 0   ;;  %s3345_s17 = smov 0  }
  0x13   :  { %s3347_s18 = smov 0   ;;  %s3349_s19 = smov 0  }
  0x14   :  { %s3351_s20 = smov 0  }
  0x15 LB: > { %3890 = sst [smem:[#allocation23_spill]] %s3246_s0  ;;  %s3874_s21 = sadd.s32 4294967295, %s3262_s20   ;;  %s3262_s20 = sphi %s3351_s20, %s29_s20   ;;  %s3258_s19 = sphi %s3349_s19, %s3934_s19   ;;  %s3254_s18 = sphi %s3347_s18, %s3933_s18   ;;  %s3250_s17 = sphi %s3345_s17, %s3932_s17   ;;  %s3246_s0 = sphi %s3343_s0, %s3931_s0   ;;  %s3242_s16 = sphi %s3341_s16, %s3930_s16   ;;  %s3238_s15 = sphi %s3339_s15, %s3929_s15   ;;  %s3234_s14 = sphi %s3337_s14, %s3928_s14   ;;  %s3230_s13 = sphi %s3335_s13, %s3927_s13   ;;  %s3226_s12 = sphi %s3333_s12, %s3926_s12   ;;  %s3222_s11 = sphi %s3331_s11, %s3925_s11  }
  0x16   : > { %3891 = sst [smem:[#allocation24_spill]] %s3250_s17  ;;  %p2161_p0 = scmp.ge.s32.totalorder %s3262_s20, 1 }
  0x17   : > { %p3390_p1 = scmp.eq.s32.totalorder %s3874_s21, 0  ;;  %p273_p2 = scmp.lt.s32.totalorder %s3262_s20, 10 }
  0x18   : > { %s3264_s24 = smov [#allocation8]   ;;  %s3265_s27 = smov [#allocation9]  }
  0x19   : > { %p3395_p3 = pnand %p2161_p0, %p273_p2  ;;  %s288_s25 = sshll.u32 %s3264_s24, 4  ;;  %s289_s25 = int_to_ptr.vmem [resolvable:$true] %s288_s25 }
  0x1a   : > { %s302_s28 = sshll.u32 %s3265_s27, 4  ;;  %s3266_s29 = smov [#allocation12]   ;;  %s303_s28 = int_to_ptr.vmem [resolvable:$true] %s302_s28 }
  0x1b   : > { %s3893_s23 = scalar_select %p3395_p3, 1, 0 }
  0x1c   : > { %p2769_p4 = pneg %p3395_p3  ;;  %s326_s30 = sshll.u32 %s3266_s29, 4  ;;  %s327_s30 = int_to_ptr.vmem [resolvable:$true] %s326_s30 }
  0x1d   : > { %3894 = sst [smem:[#allocation25_spill]] %s3893_s23  ;;  %s2951_s24 = scalar_lea.vmem %s289_s25, 1024 }
  0x1e   : > { %p3403_p5 = pnand %p2769_p4, %p3390_p1  ;;  %p2952_p7 = scmp.ne.s32.totalorder %s289_s25, %s2951_s24 }
  0x1f   : > { %p2959_p10 = scmp.lt.s32.totalorder %s289_s25, %s289_s25  ;;  %p2960_p11 = scmp.lt.s32.totalorder %s2951_s24, %s2951_s24 }
  0x20   : > { %p3409_p6 = pneg %p3403_p5 }
  0x21   : > { %p2961_p12 = por %p2960_p11, %p2959_p10 }
  0x22   : > { %p2954_p8 = pnand %p2952_p7, %p3409_p6 }
  0x24   : > { %p2955_p9 = pneg %p2954_p8 }
  0x26   : > { %p2962_p13 = pnand %p2961_p12, %p2955_p9 }
  0x28   : > { %2965 = shalt.err (!%p2962_p13)
}
  0x29   : > { %s3877_s27 = smov 64   ;;  %s3879_s29 = smov 4  }
  0x2a   : > { %s3897_s3 = sld [smem:[#allocation28_spill]]  ;;  %s2977_s9 = scalar_lea.vmem %s303_s28, 16 }
  0x2b   : > { %p2978_p0 = scmp.ne.s32.totalorder %s303_s28, %s2977_s9  ;;  %s2984_s24 = scalar_lea.vmem %s303_s28, 32 }
  0x2c   : > { %p2985_p7 = scmp.lt.s32.totalorder %s303_s28, %s303_s28  ;;  %p2986_p8 = scmp.lt.s32.totalorder %s2984_s24, %s2977_s9 }
  0x2d   : > { %p2980_p2 = pnand %p2978_p0, %p3409_p6 }
  0x2e   : > { %p2987_p9 = por %p2986_p8, %p2985_p7 }
  0x2f   : > { %p2981_p4 = pneg %p2980_p2 }
  0x30   : > { %2772 = dma.hbm_to_vmem [thread:$0]  (!%p3403_p5), %s3897_s3, 1024, %s289_s25, [#allocation7], %s3877_s27, %s3877_s27, %s3879_s29  }
  0x31   : > { %p2988_p10 = pnand %p2987_p9, %p2981_p4 }
  0x33   : > { %2991 = shalt.err (!%p2988_p10)
}
  0x34   : > { %s3898_s4 = sld [smem:[#allocation29_spill]]  ;;  %s3003_s0 = scalar_lea.vmem %s327_s30, 16 }
  0x35   : > { %p3004_p11 = scmp.ne.s32.totalorder %s327_s30, %s3003_s0  ;;  %s3010_s21 = scalar_lea.vmem %s327_s30, 32 }
  0x36   : > { %p3011_p0 = scmp.lt.s32.totalorder %s327_s30, %s327_s30  ;;  %p3012_p2 = scmp.lt.s32.totalorder %s3010_s21, %s3003_s0 }
  0x37   : > { %p3006_p12 = pnand %p3004_p11, %p3409_p6 }
  0x38   : > { %p3013_p3 = por %p3012_p2, %p3011_p0 }
  0x39   : > { %p3007_p13 = pneg %p3006_p12 }
  0x3a   : > { %2775 = dma.hbm_to_vmem [thread:$0]  (!%p3403_p5), %s3898_s4, 16, %s303_s28, [#allocation10]  }
  0x3b   : > { %p3014_p7 = pnand %p3013_p3, %p3007_p13 }
  0x3d   : > { %3017 = shalt.err (!%p3014_p7)
}
  0x3e   : > { %s3899_s6 = sld [smem:[#allocation31_spill]]  ;;  %s3269_s17 = smov [#allocation11]  }
  0x3f   : > { %s312_s23 = sshll.u32 %s3269_s17, 4  ;;  %s3270_s28 = smov [#allocation14]   ;;  %s313_s23 = int_to_ptr.vmem [resolvable:$true] %s312_s23 }
  0x40   : > { %s337_s24 = sshll.u32 %s3270_s28, 4  ;;  %s3029_s27 = scalar_lea.vmem %s313_s23, 1024  ;;  %s338_s24 = int_to_ptr.vmem [resolvable:$true] %s337_s24 }
  0x41   : > { %p3030_p4 = scmp.ne.s32.totalorder %s313_s23, %s3029_s27  ;;  %p3037_p10 = scmp.lt.s32.totalorder %s313_s23, %s313_s23 }
  0x42   : > { %p3038_p3 = scmp.lt.s32.totalorder %s3029_s27, %s3029_s27 }
  0x43   : > { %p3032_p8 = pnand %p3030_p4, %p3409_p6 }
  0x44   : > { %2781 = dma.hbm_to_vmem [thread:$0]  (!%p3403_p5), %s3899_s6, 16, %s327_s30, [#allocation13]  }
  0x45   : > { %p3033_p9 = pneg %p3032_p8  ;;  %p3039_p11 = por %p3038_p3, %p3037_p10 }
  0x47   : > { %p3040_p12 = pnand %p3039_p11, %p3033_p9 }
  0x49   : > { %3043 = shalt.err (!%p3040_p12)
}
  0x4a   : > { %s3900_s0 = smov 64   ;;  %s3901_s5 = sld [smem:[#allocation30_spill]] }
  0x4b   : > { %s3055_s9 = scalar_lea.vmem %s338_s24, 16  ;;  %s3062_s27 = scalar_lea.vmem %s338_s24, 32 }
  0x4c   : > { %p3056_p13 = scmp.ne.s32.totalorder %s338_s24, %s3055_s9  ;;  %p3063_p7 = scmp.lt.s32.totalorder %s338_s24, %s338_s24 }
  0x4d   : > { %p3064_p4 = scmp.lt.s32.totalorder %s3062_s27, %s3055_s9 }
  0x4e   : > { %p3058_p0 = pnand %p3056_p13, %p3409_p6 }
  0x4f   : > { %p3065_p8 = por %p3064_p4, %p3063_p7 }
  0x50   : > { %2778 = dma.hbm_to_vmem [thread:$0]  (!%p3403_p5), %s3901_s5, 1024, %s313_s23, [#allocation10], %s3900_s0, %s3900_s0, %s3879_s29  }
  0x51   : > { %p3059_p2 = pneg %p3058_p0 }
  0x53   : > { %p3066_p9 = pnand %p3065_p8, %p3059_p2 }
  0x55   : > { %3069 = shalt.err (!%p3066_p9)
}
  0x56   : > { %s3902_s7 = sld [smem:[#allocation32_spill]]  ;;  %s3271_s23 = smov [#allocation15]  }
  0x57   : > { %s348_s28 = sshll.u32 %s3271_s23, 4  ;;  %s349_s28 = int_to_ptr.vmem [resolvable:$true] %s348_s28 }
  0x58   : > { %s3081_s30 = scalar_lea.vmem %s349_s28, 16  ;;  %s3088_s21 = scalar_lea.vmem %s349_s28, 32 }
  0x59   : > { %p3082_p10 = scmp.ne.s32.totalorder %s349_s28, %s3081_s30  ;;  %p3089_p12 = scmp.lt.s32.totalorder %s349_s28, %s349_s28 }
  0x5a   : > { %p3090_p13 = scmp.lt.s32.totalorder %s3088_s21, %s3081_s30 }
  0x5b   : > { %p3084_p3 = pnand %p3082_p10, %p3409_p6 }
  0x5c   : > { %2784 = dma.hbm_to_vmem [thread:$0]  (!%p3403_p5), %s3902_s7, 16, %s338_s24, [#allocation13]  }
  0x5d   : > { %p3085_p11 = pneg %p3084_p3  ;;  %p3091_p0 = por %p3090_p13, %p3089_p12 }
  0x5f   : > { %p3092_p2 = pnand %p3091_p0, %p3085_p11 }
  0x61   : > { %3095 = shalt.err (!%p3092_p2)
}
  0x62   : > { %s3903_s8 = sld [smem:[#allocation33_spill]]  ;;  %s38_s10 = sadd.s32 1, %s3254_s18 }
  0x63   : > { %s41_s26 = sadd.s32 1, %s3258_s19  ;;  %p39_p6 = scmp.ge.s32.totalorder %s38_s10, 3 }
  0x64   : > { %s71_s24 = sadd.s32 1, %s3242_s16  ;;  %p78_p7 = scmp.ne.s32.totalorder %s3242_s16, %s3238_s15 }
  0x65   : > { %p3882_p4 = scmp.eq.s32.totalorder %s3262_s20, 0  ;;  %s3936_s10 = smov (%p39_p6, %s38_s10), 0 }
  0x66   : > { %3904 = sst [smem:[#allocation26_spill]] %s3936_s10  ;;  %s3938_s26 = smov (!%p39_p6, %s41_s26), %s3258_s19 }
  0x67   : > { %s3472_s25 = ssub.s32 %s3254_s18, %s3936_s10  ;;  %p43_p8 = scmp.ge.s32.totalorder %s3938_s26, 3 }
  0x68   : > { %2787 = dma.hbm_to_vmem [thread:$0]  (!%p3403_p5), %s3903_s8, 16, %s349_s28, [#allocation16]  }
  0x69   : > { %p3476_p5 = por %p3882_p4, %p78_p7  ;;  %p84_p9 = scmp.ne.s32.totalorder %s3238_s15, %s3234_s14 }
  0x6a   : > { %p95_p10 = scmp.eq.s32.totalorder %s3472_s25, 0  ;;  %p2801_p3 = scmp.lt.s32.totalorder %s3262_s20, 9 }
  0x6b   : > { %s3940_s26 = smov (%p43_p8, %s3938_s26), 0  ;;  %p3488_p11 = por %p3390_p1, %p84_p9 }
  0x6c   : > { %3906 = sst [smem:[#allocation27_spill]] %s3940_s26  ;;  %s359_s28 = sand.u32 1, %s3242_s16  }
  0x6d   : > { %s66_s30 = ssub.s32 %s3258_s19, %s3940_s26  ;;  %s2169_s9 = sshll.u32 %s359_s28, 7 }
  0x6e   : > { %s68_s21 = sor.u32 %s3472_s25, %s66_s30  ;;  %s2171_s27 = sshll.u32 %s3254_s18, 1 }
  0x6f   : > { %p69_p12 = scmp.eq.s32.totalorder %s68_s21, 0  ;;  %s2740_s29 = smul.u32 48, %s3258_s19 }
  0x70   : > { %s363_s4 = scalar_lea.vmem [#allocation4], %s2169_s9  ;;  %p3508_p13 = pnand %p2801_p3, %p3476_p5 }
  0x71   : > { %s3499_s14 = scalar_select %p69_p12, %s3242_s16, %s71_s24  }
  0x72   : > { %s370_s3 = sadd.s32 %s2740_s29, %s2171_s27  ;;  %s373_s5 = sshll.u32 %s363_s4, 4  ;;  %s374_s5 = int_to_ptr.vmem [resolvable:$true] %s373_s5 }
  0x73   : > { %s2173_s6 = sshll.u32 %s370_s3, 7  ;;  %s360_s30 = scalar_lea.sflag [#allocation5], %s359_s28 }
  0x74   : > { %s372_s10 = scalar_lea.hbm %s3865_s1, %s2173_s6  ;;  %p3098_p0 = pneg %p3508_p13 }
  0x75   : > { %s3109_s24 = scalar_lea.vmem %s374_s5, 2048  ;;  %s3272_s3 = smov [#allocation4]  }
  0x76   : > { %p3110_p2 = scmp.ne.s32.totalorder %s374_s5, %s3109_s24  ;;  %s3114_s4 = sshll.u32 %s3272_s3, 4  ;;  %s3115_s4 = int_to_ptr.vmem [resolvable:$false] %s3114_s4 }
  0x77   : > { %s3116_s29 = scalar_lea.vmem %s3115_s4, 4096  ;;  %p3117_p8 = scmp.lt.s32.totalorder %s374_s5, %s3115_s4 }
  0x78   : > { %p3112_p6 = pnand %p3110_p2, %p3098_p0  ;;  %p3118_p9 = scmp.lt.s32.totalorder %s3116_s29, %s3109_s24 }
  0x7a   : > { %p3113_p7 = pneg %p3112_p6  ;;  %p3119_p12 = por %p3118_p9, %p3117_p8 }
  0x7c   : > { %p3120_p4 = pnand %p3119_p12, %p3113_p7 }
  0x7e   : > { %3123 = shalt.err (!%p3120_p4)
}
  0x7f   : > { %s3273_s6 = smov 768   ;;  %s3274_s7 = smov 256  }
  0x80   : > { %s3275_s8 = smov 16   ;;  %s97_s17 = sadd.s32 1, %s3230_s13 }
  0x81   : > { %2791 = dma.hbm_to_vmem [thread:$0]  (!%p3508_p13), %s372_s10, 2048, %s374_s5, %s360_s30, %s3273_s6, %s3274_s7, %s3275_s8  }
  0x82   : > { %p104_p4 = scmp.ne.s32.totalorder %s3230_s13, %s3226_s12  ;;  %p3909_p5 = scmp.eq.s32.totalorder %s3262_s20, 0 }
  0x83   : > { %s3522_s28 = scalar_select %p95_p10, %s3230_s13, %s97_s17  }
  0x84   : > { %p106_p0 = por %p104_p4, %p3909_p5  ;;  %p110_p2 = scmp.ne.s32.totalorder %s3226_s12, %s3222_s11 }
  0x85   : > { %s383_s21 = sand.u32 1, %s3262_s20   ;;  %s385_s9 = sand.u32 1, %s3230_s13  }
  0x86   : > { %p3532_p6 = por %p110_p2, %p3390_p1  ;;  %s2174_s24 = sshll.u32 %s385_s9, 7 }
  0x87   : > { %s2261_s3 = sshll.u32 %s3254_s18, 11  ;;  %s387_s10 = scalar_lea.vmem [#allocation6], %s2174_s24 }
  0x88   : > { %s393_s5 = scalar_lea.hbm %s3866_s2, %s2261_s3  ;;  %s394_s25 = sshll.u32 %s387_s10, 4  ;;  %s395_s25 = int_to_ptr.vmem [resolvable:$true] %s394_s25 }
  0x89   : > { %p3542_p10 = pnand %p2801_p3, %p106_p0  ;;  %s384_s11 = scalar_lea.sflag [#allocation7], %s383_s21 }
  0x8a   : > { %s3137_s29 = scalar_lea.vmem %s395_s25, 2048  ;;  %s3276_s6 = smov [#allocation6]  }
  0x8b   : > { %p3126_p13 = pneg %p3542_p10  ;;  %p3138_p7 = scmp.ne.s32.totalorder %s395_s25, %s3137_s29 }
  0x8c   : > { %s3142_s7 = sshll.u32 %s3276_s6, 4  ;;  %s3143_s7 = int_to_ptr.vmem [resolvable:$false] %s3142_s7 }
  0x8d   : > { %p3140_p8 = pnand %p3138_p7, %p3126_p13  ;;  %s3144_s8 = scalar_lea.vmem %s3143_s7, 4096 }
  0x8e   : > { %p3145_p12 = scmp.lt.s32.totalorder %s395_s25, %s3143_s7  ;;  %p3146_p4 = scmp.lt.s32.totalorder %s3144_s8, %s3137_s29 }
  0x8f   : > { %p3141_p9 = pneg %p3140_p8 }
  0x90   : > { %p3147_p5 = por %p3146_p4, %p3145_p12 }
  0x92   : > { %p3148_p3 = pnand %p3147_p5, %p3141_p9 }
  0x94   : > { %3151 = shalt.err (!%p3148_p3)
}
  0x95   : > { %s3912_s17 = smov 4   ;;  %s3913_s21 = sld [smem:[#allocation25_spill]] }
  0x96   : > { %2794 = dma.hbm_to_vmem [thread:$0]  (!%p3542_p10), %s393_s5, 2048, %s395_s25, %s384_s11, %s3900_s0, %s3900_s0, %s3912_s17  }
  0x9b   : > { %p3914_p0 = scmp.ne.s32.totalorder %s3913_s21, 0 }
  0x9c   : > { %s408_s9 = sand.u32 (!%p3914_p0), 1, %s3238_s15  }
  0x9d   : > { %406 = sbr.rel (%p3914_p0) target bundleno = 1047 (0x417), region = 56  ;;  %s2178_s24 = sshll.u32 (!%p3914_p0), %s408_s9, 7 }
  0x9e   : > { %s409_s3 = scalar_lea.sflag (!%p3914_p0), [#allocation5], %s408_s9  ;;  %s3556_s4 = scalar_lea.vmem (!%p3914_p0), [#allocation4], %s2178_s24 }
  0xa2   : > { %3197 = dma.done.wait (%p3488_p11), %s409_s3, 2048  }
  0xa3   : > { %3199 = vsyncadd (%p3488_p11), %s409_s3, 4294965248  ;;  %s3915_s26 = sadd.s32 4294967295, %s3262_s20   ;;  %s419_s5 = sand.u32 1, %s3226_s12  }
  0xa4   : > { %s417_s0 = sand.u32 1, %s3915_s26   ;;  %s2179_s10 = sshll.u32 %s419_s5, 7 }
  0xa5   : > { %s418_s25 = scalar_lea.sflag [#allocation7], %s417_s0  ;;  %s3565_s30 = scalar_lea.vmem [#allocation6], %s2179_s10 }
  0xa6   : > { %3201 = dma.done.wait (%p3532_p6), %s418_s25, 2048  }
  0xa7   : > { %3203 = vsyncadd (%p3532_p6), %s418_s25, 4294965248 }
  0xa8   : > { %3205 = dma.done.wait (%p3390_p1), [#allocation7], 1024  }
  0xa9   : > { %3207 = vsyncadd (%p3390_p1), [#allocation7], 4294966272 }
  0xaa   : > { %3209 = dma.done.wait (%p3390_p1), [#allocation10], 1040  }
  0xab   : > { %3211 = vsyncadd (%p3390_p1), [#allocation10], 4294966256 }
  0xac   : > { %3213 = dma.done.wait (%p3390_p1), [#allocation13], 32  }
  0xad   : > { %3215 = vsyncadd (%p3390_p1), [#allocation13], 4294967264 }
  0xae   : > { %3217 = dma.done.wait (%p3390_p1), [#allocation16], 16  }
  0xaf   : > { %3219 = vsyncadd (%p3390_p1), [#allocation16], 4294967280  ;;  %s3916_s23 = sld [smem:[#allocation24_spill]] }
  0xb0   : > { %s3917_s7 = sld [smem:[#allocation34_spill]] }
  0xb1   : > { %s3918_s17 = sld [smem:[#allocation23_spill]] }
  0xb5   : > { %s2186_s27 = sshll.u32 %s3916_s23, 5 }
  0xb6   : > { %p489_p11 = scmp.lt.s32.totalorder %s2186_s27, 95 }
  0xb7   : > { %p2188_p2 = scmp.ne.s32.totalorder %s3918_s17, 0 }
  0xb8   : > { %s3942_s27 = smov (!%p489_p11, %s2186_s27), 95 }
  0xb9   : > { %s2187_s11 = sshll.u32 %s3942_s27, 2  ;;  %498 = sbr.rel (%p2188_p2) target bundleno = 207 (0xcf), region = 92 }
  0xba   : > { %s3591_s8 = scalar_lea.vmem %s3917_s7, %s2187_s11 }
  0xbe   : > { %v3277_v0 = vmov 0.0  }
  0xbf   : > { %499 = vst [vmem:[#allocation2 + $0xb0] sm:$0xff] %v3277_v0  ;;  %500 = vst [vmem:[#allocation2] sm:$0xff] %v3277_v0 }
  0xc0   : > { %501 = vst [vmem:[#allocation2 + $0xd8] sm:$0xff] %v3277_v0  ;;  %502 = vst [vmem:[#allocation2 + $0x18] sm:$0xff] %v3277_v0 }
  0xc1   : > { %503 = vst [vmem:[#allocation2 + $0x50] sm:$0xff] %v3277_v0  ;;  %504 = vst [vmem:[#allocation2 + $0x68] sm:$0xff] %v3277_v0 }
  0xc2   : > { %505 = vst [vmem:[#allocation2 + $0x30] sm:$0xff] %v3277_v0  ;;  %506 = vst [vmem:[#allocation2 + $0x48] sm:$0xff] %v3277_v0 }
  0xc3   : > { %507 = vst [vmem:[#allocation2 + $0x80] sm:$0xff] %v3277_v0  ;;  %508 = vst [vmem:[#allocation2 + $0x88] sm:$0xff] %v3277_v0 }
  0xc4   : > { %509 = vst [vmem:[#allocation2 + $0xe8] sm:$0xff] %v3277_v0  ;;  %510 = vst [vmem:[#allocation2 + $0xb8] sm:$0xff] %v3277_v0 }
  0xc5   : > { %511 = vst [vmem:[#allocation2 + $0x60] sm:$0xff] %v3277_v0  ;;  %512 = vst [vmem:[#allocation2 + $0xf0] sm:$0xff] %v3277_v0 }
  0xc6   : > { %513 = vst [vmem:[#allocation2 + $0x8] sm:$0xff] %v3277_v0  ;;  %514 = vst [vmem:[#allocation2 + $0x78] sm:$0xff] %v3277_v0 }
  0xc7   : > { %515 = vst [vmem:[#allocation2 + $0x38] sm:$0xff] %v3277_v0  ;;  %516 = vst [vmem:[#allocation2 + $0x58] sm:$0xff] %v3277_v0 }
  0xc8   : > { %517 = vst [vmem:[#allocation2 + $0x40] sm:$0xff] %v3277_v0  ;;  %518 = vst [vmem:[#allocation2 + $0xc8] sm:$0xff] %v3277_v0 }
  0xc9   : > { %519 = vst [vmem:[#allocation2 + $0xe0] sm:$0xff] %v3277_v0  ;;  %520 = vst [vmem:[#allocation2 + $0x90] sm:$0xff] %v3277_v0 }
  0xca   : > { %521 = vst [vmem:[#allocation2 + $0x70] sm:$0xff] %v3277_v0  ;;  %522 = vst [vmem:[#allocation2 + $0xc0] sm:$0xff] %v3277_v0 }
  0xcb   : > { %523 = vst [vmem:[#allocation2 + $0xa8] sm:$0xff] %v3277_v0  ;;  %524 = vst [vmem:[#allocation2 + $0xd0] sm:$0xff] %v3277_v0 }
  0xcc   : > { %525 = vst [vmem:[#allocation2 + $0x10] sm:$0xff] %v3277_v0  ;;  %526 = vst [vmem:[#allocation2 + $0x28] sm:$0xff] %v3277_v0 }
  0xcd   : > { %527 = vst [vmem:[#allocation2 + $0xa0] sm:$0xff] %v3277_v0  ;;  %528 = vst [vmem:[#allocation2 + $0xf8] sm:$0xff] %v3277_v0 }
  0xce   : > { %529 = vst [vmem:[#allocation2 + $0x20] sm:$0xff] %v3277_v0  ;;  %530 = vst [vmem:[#allocation2 + $0x98] sm:$0xff] %v3277_v0 }
  0xcf PF: > { %v2908_v1 = vld [vmem:[%s3565_s30 + $0x78] sm:$0xff]   ;;  %v2910_v3 = vld [vmem:[%s3565_s30 + $0x70] sm:$0xff]   ;;  %v2912_v5 = vld [vmem:[%s3565_s30 + $0x68] sm:$0xff]   ;;  %s3919_s22 = sld [smem:[#allocation24_spill]] }
  0xd0   : > { %v2909_v2 = vld [vmem:[%s3565_s30 + $0x38] sm:$0xff]   ;;  %2468 = vmatprep.subr.bf16.mxu0 %v2908_v1  ;;  %2724 = vmatprep.subr.bf16.mxu1 %v2908_v1  ;;  %v2911_v4 = vld [vmem:[%s3565_s30 + $0x30] sm:$0xff]   ;;  %v2913_v6 = vld [vmem:[%s3565_s30 + $0x28] sm:$0xff]   ;;  %s3920_s21 = sld [smem:[#allocation23_spill]] }
  0xd1   : > { %2469 = vmatpush3.bf16.msra.mxu0 %v2909_v2  ;;  %2732 = vmatpush3.bf16.msra.mxu1 %v2909_v2  ;;  %v2914_v7 = vld [vmem:[%s3565_s30 + $0x60] sm:$0xff]   ;;  %v2916_v9 = vld [vmem:[%s3565_s30 + $0x58] sm:$0xff]   ;;  %v2918_v11 = vld [vmem:[%s3565_s30 + $0x50] sm:$0xff]  }
  0xd2   : > { %2470 = vmatprep.subr.bf16.mxu0 %v2910_v3  ;;  %2725 = vmatprep.subr.bf16.mxu1 %v2910_v3  ;;  %v2915_v8 = vld [vmem:[%s3565_s30 + $0x20] sm:$0xff]   ;;  %v2917_v10 = vld [vmem:[%s3565_s30 + $0x18] sm:$0xff]   ;;  %v532_v12 = vld [vmem:[%s3556_s4 + $0x8] sm:$0xff] }
  0xd3   : > { %v540_v13 = vld [vmem:[%s3556_s4 + $0x48] sm:$0xff]  ;;  %v548_v14 = vunpack.c.l.s8.bf16 %v532_v12  ;;  %v2919_v16 = vld [vmem:[%s3565_s30 + $0x10] sm:$0xff]   ;;  %v2922_v19 = vld [vmem:[%s3565_s30 + $0x40] sm:$0xff]   ;;  %v550_v25 = vunpack.c.h.s8.bf16 %v532_v12 }
  0xd4   : > { %v564_v15 = vunpack.c.l.s8.bf16 %v540_v13  ;;  %v2920_v17 = vld [vmem:[%s3565_s30 + $0x48] sm:$0xff]   ;;  %v2923_v20 = vld [vmem:[%s3565_s30] sm:$0xff]   ;;  %v566_v26 = vunpack.c.h.s8.bf16 %v540_v13  ;;  %v534_v27 = vld [vmem:[%s3556_s4 + $0x18] sm:$0xff] }
  0xd5   : > { %2471 = vmatpush3.bf16.msra.mxu0 %v2911_v4  ;;  %2733 = vmatpush3.bf16.msra.mxu1 %v2911_v4  ;;  %v2921_v18 = vld [vmem:[%s3565_s30 + $0x8] sm:$0xff]   ;;  %v531_v21 = vld [vmem:[%s3556_s4] sm:$0xff]  ;;  %v542_v28 = vld [vmem:[%s3556_s4 + $0x58] sm:$0xff]  ;;  %v552_v31 = vunpack.c.l.s8.bf16 %v534_v27  ;;  %v554_v37 = vunpack.c.h.s8.bf16 %v534_v27 }
  0xd6   : > { %2472 = vmatprep.subr.bf16.mxu0 %v2912_v5  ;;  %2726 = vmatprep.subr.bf16.mxu1 %v2912_v5  ;;  %v539_v22 = vld [vmem:[%s3556_s4 + $0x40] sm:$0xff]  ;;  %v547_v23 = vunpack.c.l.s8.bf16 %v531_v21  ;;  %v549_v29 = vunpack.c.h.s8.bf16 %v531_v21  ;;  %v568_v32 = vunpack.c.l.s8.bf16 %v542_v28  ;;  %v533_v33 = vld [vmem:[%s3556_s4 + $0x10] sm:$0xff]  ;;  %v570_v38 = vunpack.c.h.s8.bf16 %v542_v28  ;;  %v536_v39 = vld [vmem:[%s3556_s4 + $0x28] sm:$0xff]  ;;  %p2205_p1 = scmp.ne.s32.totalorder %s3920_s21, %s3919_s22 }
  0xd7   : > { %771 = vmatprep.mubr.bf16.mxu0 %v548_v14  ;;  %835 = vmatprep.mubr.bf16.mxu1 %v564_v15  ;;  %v563_v24 = vunpack.c.l.s8.bf16 %v539_v22  ;;  %v565_v30 = vunpack.c.h.s8.bf16 %v539_v22  ;;  %v541_v34 = vld [vmem:[%s3556_s4 + $0x50] sm:$0xff]  ;;  %v551_v35 = vunpack.c.l.s8.bf16 %v533_v33  ;;  %v544_v40 = vld [vmem:[%s3556_s4 + $0x68] sm:$0xff]  ;;  %v553_v41 = vunpack.c.h.s8.bf16 %v533_v33  ;;  %v535_v45 = vld [vmem:[%s3556_s4 + $0x20] sm:$0xff]  ;;  %s1000_s9 = sld [smem:[#allocation3]] (!%p2205_p1) }
  0xd8   : > { %v567_v36 = vunpack.c.l.s8.bf16 %v541_v34  ;;  %v569_v42 = vunpack.c.h.s8.bf16 %v541_v34  ;;  %v556_v43 = vunpack.c.l.s8.bf16 %v536_v39  ;;  %v572_v44 = vunpack.c.l.s8.bf16 %v544_v40  ;;  %v543_v46 = vld [vmem:[%s3556_s4 + $0x60] sm:$0xff]  ;;  %v538_v51 = vld [vmem:[%s3556_s4 + $0x38] sm:$0xff]  ;;  %v537_v57 = vld [vmem:[%s3556_s4 + $0x30] sm:$0xff] }
  0xd9   : > { %2473 = vmatpush3.bf16.msra.mxu0 %v2913_v6  ;;  %2734 = vmatpush3.bf16.msra.mxu1 %v2913_v6  ;;  %v555_v47 = vunpack.c.l.s8.bf16 %v535_v45  ;;  %v571_v48 = vunpack.c.l.s8.bf16 %v543_v46  ;;  %v558_v49 = vunpack.c.h.s8.bf16 %v536_v39  ;;  %v574_v50 = vunpack.c.h.s8.bf16 %v544_v40  ;;  %v546_v52 = vld [vmem:[%s3556_s4 + $0x78] sm:$0xff]  ;;  %v545_v58 = vld [vmem:[%s3556_s4 + $0x70] sm:$0xff]  ;;  %v580_v13 = vld [vmem:[#allocation2] sm:$0xff] }
  0xda   : > { %2474 = vmatprep.subr.bf16.mxu0 %v2914_v7  ;;  %2727 = vmatprep.subr.bf16.mxu1 %v2914_v7  ;;  %v557_v53 = vunpack.c.h.s8.bf16 %v535_v45  ;;  %v573_v54 = vunpack.c.h.s8.bf16 %v543_v46  ;;  %v560_v55 = vunpack.c.l.s8.bf16 %v538_v51  ;;  %v576_v56 = vunpack.c.l.s8.bf16 %v546_v52  ;;  %v579_v3 = vld [vmem:[#allocation2 + $0xb0] sm:$0xff]  ;;  %v595_v5 = vld [vmem:[#allocation2 + $0x38] sm:$0xff]  ;;  %v599_v45 = vld [vmem:[#allocation2 + $0xe0] sm:$0xff] }
  0xdb   : > { %v559_v59 = vunpack.c.l.s8.bf16 %v537_v57  ;;  %v575_v60 = vunpack.c.l.s8.bf16 %v545_v58  ;;  %v562_v61 = vunpack.c.h.s8.bf16 %v538_v51  ;;  %v578_v62 = vunpack.c.h.s8.bf16 %v546_v52  ;;  %v596_v15 = vld [vmem:[#allocation2 + $0x58] sm:$0xff] }
  0xdc   : > { %v561_v63 = vunpack.c.h.s8.bf16 %v537_v57  ;;  %v577_v0 = vunpack.c.h.s8.bf16 %v545_v58  ;;  %v582_v33 = vld [vmem:[#allocation2 + $0x18] sm:$0xff] }
  0xdd   : > { %2475 = vmatpush3.bf16.msra.mxu0 %v2915_v8  ;;  %2735 = vmatpush3.bf16.msra.mxu1 %v2915_v8  ;;  %s1001_s24 = sadd.f32 (!%p2205_p1), 1.0, %s1000_s9 }
  0xde   : > { %2476 = vmatprep.subr.bf16.mxu0 %v2916_v9  ;;  %2728 = vmatprep.subr.bf16.mxu1 %v2916_v9 }
  0xe1   : > { %2477 = vmatpush3.bf16.msra.mxu0 %v2917_v10  ;;  %2736 = vmatpush3.bf16.msra.mxu1 %v2917_v10 }
  0xe2   : > { %2478 = vmatprep.subr.bf16.mxu0 %v2918_v11  ;;  %2729 = vmatprep.subr.bf16.mxu1 %v2918_v11 }
  0xe5   : > { %2479 = vmatpush3.bf16.msra.mxu0 %v2919_v16  ;;  %2737 = vmatpush3.bf16.msra.mxu1 %v2919_v16 }
  0xe6   : > { %2480 = vmatprep.subr.bf16.mxu0 %v2920_v17  ;;  %2730 = vmatprep.subr.bf16.mxu1 %v2920_v17 }
  0xe9   : > { %2481 = vmatpush3.bf16.msra.mxu0 %v2921_v18  ;;  %2738 = vmatpush3.bf16.msra.mxu1 %v2921_v18 }
  0xea   : > { %2482 = vmatprep.subr.bf16.mxu0 %v2922_v19  ;;  %2731 = vmatprep.subr.bf16.mxu1 %v2922_v19 }
  0xed   : > { %2483 = vmatpush3.bf16.msra.mxu0 %v2923_v20  ;;  %2739 = vmatpush3.bf16.msra.mxu1 %v2923_v20 }
  0xf0   : > { %772 = vmatmul.mubr.bf16.vlgmr.msra.gmra.mxu0 %v547_v23  ;;  %836 = vmatmul.mubr.bf16.vlgmr.msra.gmra.mxu1 %v563_v24  ;;  %v581_v23 = vld [vmem:[#allocation2 + $0xd8] sm:$0xff] }
  0xf1   : > { %779 = vmatprep.mubr.bf16.mxu0 %v550_v25  ;;  %843 = vmatprep.mubr.bf16.mxu1 %v566_v26  ;;  %v597_v25 = vld [vmem:[#allocation2 + $0x40] sm:$0xff] }
  0xf8   : > { %780 = vmatmul.mubr.bf16.gmra.mxu0 %v549_v29  ;;  %844 = vmatmul.mubr.bf16.gmra.mxu1 %v565_v30 }
  0xf9   : > { %787 = vmatprep.mubr.bf16.mxu0 %v552_v31  ;;  %851 = vmatprep.mubr.bf16.mxu1 %v568_v32 }
 0x100   : > { %788 = vmatmul.mubr.bf16.gmra.mxu0 %v551_v35  ;;  %852 = vmatmul.mubr.bf16.gmra.mxu1 %v567_v36  ;;  %v598_v35 = vld [vmem:[#allocation2 + $0xc8] sm:$0xff] }
 0x101   : > { %795 = vmatprep.mubr.bf16.mxu0 %v554_v37  ;;  %859 = vmatprep.mubr.bf16.mxu1 %v570_v38 }
 0x108   : > { %796 = vmatmul.mubr.bf16.gmra.mxu0 %v553_v41  ;;  %860 = vmatmul.mubr.bf16.gmra.mxu1 %v569_v42 }
 0x109   : > { %803 = vmatprep.mubr.bf16.mxu0 %v556_v43  ;;  %867 = vmatprep.mubr.bf16.mxu1 %v572_v44  ;;  %v583_v43 = vld [vmem:[#allocation2 + $0x50] sm:$0xff] }
 0x110   : > { %804 = vmatmul.mubr.bf16.gmra.mxu0 %v555_v47  ;;  %868 = vmatmul.mubr.bf16.gmra.mxu1 %v571_v48 }
 0x111   : > { %811 = vmatprep.mubr.bf16.mxu0 %v558_v49  ;;  %875 = vmatprep.mubr.bf16.mxu1 %v574_v50 }
 0x118   : > { %812 = vmatmul.mubr.bf16.gmra.mxu0 %v557_v53  ;;  %876 = vmatmul.mubr.bf16.gmra.mxu1 %v573_v54  ;;  %v584_v53 = vld [vmem:[#allocation2 + $0x68] sm:$0xff] }
 0x119   : > { %819 = vmatprep.mubr.bf16.mxu0 %v560_v55  ;;  %883 = vmatprep.mubr.bf16.mxu1 %v576_v56  ;;  %v600_v55 = vld [vmem:[#allocation2 + $0x90] sm:$0xff] }
 0x120   : > { %820 = vmatmul.mubr.bf16.gmra.mxu0 %v559_v59  ;;  %884 = vmatmul.mubr.bf16.gmra.mxu1 %v575_v60 }
 0x121   : > { %827 = vmatprep.mubr.bf16.mxu0 %v562_v61  ;;  %891 = vmatprep.mubr.bf16.mxu1 %v578_v62 }
 0x128   : > { %828 = vmatmul.mubr.bf16.gmra.mxu0 %v561_v63  ;;  %892 = vmatmul.mubr.bf16.gmra.mxu1 %v577_v0  ;;  %v585_v63 = vld [vmem:[#allocation2 + $0x30] sm:$0xff] }
 0x1b0   : > { %v2484_v1 = vpop.f32.mrf.mxu0  ;;  %v2532_v2 = vpop.f32.mrf.mxu1 }
 0x1b2   : > { %v2485_v4 = vpop.f32.mrf.mxu0  ;;  %v2533_v6 = vpop.f32.mrf.mxu1 }
 0x1b3   : > { %v2486_v7 = vadd.f32 %v2485_v4, %v2484_v1  ;;  %v2534_v8 = vadd.f32 %v2533_v6, %v2532_v2  ;;  %v601_v1 = vld [vmem:[#allocation2 + $0x70] sm:$0xff] }
 0x1b4   : > { %v2487_v9 = vpop.f32.mrf.mxu0  ;;  %v2535_v10 = vpop.f32.mrf.mxu1 }
 0x1b5   : > { %v900_v11 = vadd.f32 %v2486_v7, %v579_v3  ;;  %v916_v12 = vadd.f32 %v2534_v8, %v595_v5 }
 0x1b6   : > { %v2488_v14 = vpop.f32.mrf.mxu0  ;;  %v2536_v16 = vpop.f32.mrf.mxu1 }
 0x1b7   : > { %932 = vst [vmem:[#allocation2 + $0xb0] sm:$0xff] %v900_v11  ;;  %948 = vst [vmem:[#allocation2 + $0x38] sm:$0xff] %v916_v12  ;;  %v2489_v17 = vadd.f32 %v2488_v14, %v2487_v9  ;;  %v2537_v18 = vadd.f32 %v2536_v16, %v2535_v10  ;;  %v586_v9 = vld [vmem:[#allocation2 + $0x48] sm:$0xff]  ;;  %v602_v11 = vld [vmem:[#allocation2 + $0xc0] sm:$0xff] }
 0x1b8   : > { %v2490_v19 = vpop.f32.mrf.mxu0  ;;  %v2538_v20 = vpop.f32.mrf.mxu1 }
 0x1b9   : > { %v901_v21 = vadd.f32 %v2489_v17, %v580_v13  ;;  %v917_v22 = vadd.f32 %v2537_v18, %v596_v15 }
 0x1ba   : > { %v2491_v24 = vpop.f32.mrf.mxu0  ;;  %v2539_v26 = vpop.f32.mrf.mxu1 }
 0x1bb   : > { %933 = vst [vmem:[#allocation2] sm:$0xff] %v901_v21  ;;  %949 = vst [vmem:[#allocation2 + $0x58] sm:$0xff] %v917_v22  ;;  %v2492_v27 = vadd.f32 %v2491_v24, %v2490_v19  ;;  %v2540_v28 = vadd.f32 %v2539_v26, %v2538_v20  ;;  %v587_v19 = vld [vmem:[#allocation2 + $0x80] sm:$0xff]  ;;  %v603_v21 = vld [vmem:[#allocation2 + $0xa8] sm:$0xff] }
 0x1bc   : > { %v2493_v29 = vpop.f32.mrf.mxu0  ;;  %v2541_v30 = vpop.f32.mrf.mxu1 }
 0x1bd   : > { %v902_v31 = vadd.f32 %v2492_v27, %v581_v23  ;;  %v918_v32 = vadd.f32 %v2540_v28, %v597_v25 }
 0x1be   : > { %v2494_v34 = vpop.f32.mrf.mxu0  ;;  %v2542_v36 = vpop.f32.mrf.mxu1 }
 0x1bf   : > { %934 = vst [vmem:[#allocation2 + $0xd8] sm:$0xff] %v902_v31  ;;  %950 = vst [vmem:[#allocation2 + $0x40] sm:$0xff] %v918_v32  ;;  %v2495_v37 = vadd.f32 %v2494_v34, %v2493_v29  ;;  %v2543_v38 = vadd.f32 %v2542_v36, %v2541_v30  ;;  %v588_v29 = vld [vmem:[#allocation2 + $0x88] sm:$0xff]  ;;  %v604_v31 = vld [vmem:[#allocation2 + $0xd0] sm:$0xff] }
 0x1c0   : > { %v2496_v39 = vpop.f32.mrf.mxu0  ;;  %v2544_v40 = vpop.f32.mrf.mxu1 }
 0x1c1   : > { %v903_v41 = vadd.f32 %v2495_v37, %v582_v33  ;;  %v919_v42 = vadd.f32 %v2543_v38, %v598_v35 }
 0x1c2   : > { %v2497_v44 = vpop.f32.mrf.mxu0  ;;  %v2545_v46 = vpop.f32.mrf.mxu1 }
 0x1c3   : > { %935 = vst [vmem:[#allocation2 + $0x18] sm:$0xff] %v903_v41  ;;  %951 = vst [vmem:[#allocation2 + $0xc8] sm:$0xff] %v919_v42  ;;  %v2498_v47 = vadd.f32 %v2497_v44, %v2496_v39  ;;  %v2546_v48 = vadd.f32 %v2545_v46, %v2544_v40  ;;  %v589_v39 = vld [vmem:[#allocation2 + $0xe8] sm:$0xff]  ;;  %v605_v41 = vld [vmem:[#allocation2 + $0x10] sm:$0xff] }
 0x1c4   : > { %v2499_v49 = vpop.f32.mrf.mxu0  ;;  %v2547_v50 = vpop.f32.mrf.mxu1 }
 0x1c5   : > { %v904_v51 = vadd.f32 %v2498_v47, %v583_v43  ;;  %v920_v52 = vadd.f32 %v2546_v48, %v599_v45 }
 0x1c6   : > { %v2500_v54 = vpop.f32.mrf.mxu0  ;;  %v2548_v56 = vpop.f32.mrf.mxu1 }
 0x1c7   : > { %936 = vst [vmem:[#allocation2 + $0x50] sm:$0xff] %v904_v51  ;;  %952 = vst [vmem:[#allocation2 + $0xe0] sm:$0xff] %v920_v52  ;;  %v2501_v57 = vadd.f32 %v2500_v54, %v2499_v49  ;;  %v2549_v58 = vadd.f32 %v2548_v56, %v2547_v50  ;;  %v590_v49 = vld [vmem:[#allocation2 + $0xb8] sm:$0xff]  ;;  %v606_v51 = vld [vmem:[#allocation2 + $0x28] sm:$0xff] }
 0x1c8   : > { %v2502_v59 = vpop.f32.mrf.mxu0  ;;  %v2550_v60 = vpop.f32.mrf.mxu1 }
 0x1c9   : > { %v905_v61 = vadd.f32 %v2501_v57, %v584_v53  ;;  %v921_v62 = vadd.f32 %v2549_v58, %v600_v55 }
 0x1ca   : > { %v2503_v0 = vpop.f32.mrf.mxu0  ;;  %v2551_v2 = vpop.f32.mrf.mxu1 }
 0x1cb   : > { %937 = vst [vmem:[#allocation2 + $0x68] sm:$0xff] %v905_v61  ;;  %953 = vst [vmem:[#allocation2 + $0x90] sm:$0xff] %v921_v62  ;;  %v2504_v3 = vadd.f32 %v2503_v0, %v2502_v59  ;;  %v2552_v4 = vadd.f32 %v2551_v2, %v2550_v60  ;;  %v591_v59 = vld [vmem:[#allocation2 + $0x60] sm:$0xff] }
 0x1cc   : > { %v2505_v5 = vpop.f32.mrf.mxu0  ;;  %v2553_v6 = vpop.f32.mrf.mxu1  ;;  %v607_v61 = vld [vmem:[#allocation2 + $0xa0] sm:$0xff] }
 0x1cd   : > { %v906_v7 = vadd.f32 %v2504_v3, %v585_v63  ;;  %v922_v8 = vadd.f32 %v2552_v4, %v601_v1 }
 0x1ce   : > { %v2506_v10 = vpop.f32.mrf.mxu0  ;;  %v2554_v12 = vpop.f32.mrf.mxu1 }
 0x1cf   : > { %938 = vst [vmem:[#allocation2 + $0x30] sm:$0xff] %v906_v7  ;;  %954 = vst [vmem:[#allocation2 + $0x70] sm:$0xff] %v922_v8  ;;  %v2507_v13 = vadd.f32 %v2506_v10, %v2505_v5  ;;  %v2555_v14 = vadd.f32 %v2554_v12, %v2553_v6  ;;  %v592_v5 = vld [vmem:[#allocation2 + $0xf0] sm:$0xff]  ;;  %v608_v7 = vld [vmem:[#allocation2 + $0xf8] sm:$0xff] }
 0x1d0   : > { %v2508_v15 = vpop.f32.mrf.mxu0  ;;  %v2556_v16 = vpop.f32.mrf.mxu1 }
 0x1d1   : > { %v907_v17 = vadd.f32 %v2507_v13, %v586_v9  ;;  %v923_v18 = vadd.f32 %v2555_v14, %v602_v11 }
 0x1d2   : > { %v2509_v20 = vpop.f32.mrf.mxu0  ;;  %v2557_v22 = vpop.f32.mrf.mxu1 }
 0x1d3   : > { %939 = vst [vmem:[#allocation2 + $0x48] sm:$0xff] %v907_v17  ;;  %955 = vst [vmem:[#allocation2 + $0xc0] sm:$0xff] %v923_v18  ;;  %v2510_v23 = vadd.f32 %v2509_v20, %v2508_v15  ;;  %v2558_v24 = vadd.f32 %v2557_v22, %v2556_v16  ;;  %v593_v15 = vld [vmem:[#allocation2 + $0x8] sm:$0xff]  ;;  %v609_v17 = vld [vmem:[#allocation2 + $0x20] sm:$0xff] }
 0x1d4   : > { %v2511_v25 = vpop.f32.mrf.mxu0  ;;  %v2559_v26 = vpop.f32.mrf.mxu1 }
 0x1d5   : > { %v908_v27 = vadd.f32 %v2510_v23, %v587_v19  ;;  %v924_v28 = vadd.f32 %v2558_v24, %v603_v21 }
 0x1d6   : > { %v2512_v30 = vpop.f32.mrf.mxu0  ;;  %v2560_v32 = vpop.f32.mrf.mxu1 }
 0x1d7   : > { %940 = vst [vmem:[#allocation2 + $0x80] sm:$0xff] %v908_v27  ;;  %956 = vst [vmem:[#allocation2 + $0xa8] sm:$0xff] %v924_v28  ;;  %v2513_v33 = vadd.f32 %v2512_v30, %v2511_v25  ;;  %v2561_v34 = vadd.f32 %v2560_v32, %v2559_v26  ;;  %v594_v25 = vld [vmem:[#allocation2 + $0x78] sm:$0xff] }
 0x1d8   : > { %v2514_v35 = vpop.f32.mrf.mxu0  ;;  %v2562_v36 = vpop.f32.mrf.mxu1  ;;  %v610_v27 = vld [vmem:[#allocation2 + $0x98] sm:$0xff] }
 0x1d9   : > { %v909_v37 = vadd.f32 %v2513_v33, %v588_v29  ;;  %v925_v38 = vadd.f32 %v2561_v34, %v604_v31 }
 0x1da   : > { %v2515_v40 = vpop.f32.mrf.mxu0  ;;  %v2563_v42 = vpop.f32.mrf.mxu1 }
 0x1db   : > { %941 = vst [vmem:[#allocation2 + $0x88] sm:$0xff] %v909_v37  ;;  %957 = vst [vmem:[#allocation2 + $0xd0] sm:$0xff] %v925_v38  ;;  %v2516_v43 = vadd.f32 %v2515_v40, %v2514_v35  ;;  %v2564_v44 = vadd.f32 %v2563_v42, %v2562_v36 }
 0x1dc   : > { %v2517_v45 = vpop.f32.mrf.mxu0  ;;  %v2565_v46 = vpop.f32.mrf.mxu1 }
 0x1dd   : > { %v910_v47 = vadd.f32 %v2516_v43, %v589_v39  ;;  %v926_v48 = vadd.f32 %v2564_v44, %v605_v41 }
 0x1de   : > { %v2518_v50 = vpop.f32.mrf.mxu0  ;;  %v2566_v52 = vpop.f32.mrf.mxu1 }
 0x1df   : > { %942 = vst [vmem:[#allocation2 + $0xe8] sm:$0xff] %v910_v47  ;;  %958 = vst [vmem:[#allocation2 + $0x10] sm:$0xff] %v926_v48  ;;  %v2519_v53 = vadd.f32 %v2518_v50, %v2517_v45  ;;  %v2567_v54 = vadd.f32 %v2566_v52, %v2565_v46 }
 0x1e0   : > { %v2520_v55 = vpop.f32.mrf.mxu0  ;;  %v2568_v56 = vpop.f32.mrf.mxu1 }
 0x1e1   : > { %v911_v57 = vadd.f32 %v2519_v53, %v590_v49  ;;  %v927_v58 = vadd.f32 %v2567_v54, %v606_v51 }
 0x1e2   : > { %v2521_v60 = vpop.f32.mrf.mxu0  ;;  %v2569_v62 = vpop.f32.mrf.mxu1 }
 0x1e3   : > { %943 = vst [vmem:[#allocation2 + $0xb8] sm:$0xff] %v911_v57  ;;  %959 = vst [vmem:[#allocation2 + $0x28] sm:$0xff] %v927_v58  ;;  %v2522_v63 = vadd.f32 %v2521_v60, %v2520_v55  ;;  %v2570_v0 = vadd.f32 %v2569_v62, %v2568_v56 }
 0x1e4   : > { %v2523_v1 = vpop.f32.mrf.mxu0  ;;  %v2571_v2 = vpop.f32.mrf.mxu1 }
 0x1e5   : > { %v912_v3 = vadd.f32 %v2522_v63, %v591_v59  ;;  %v928_v4 = vadd.f32 %v2570_v0, %v607_v61 }
 0x1e6   : > { %v2524_v6 = vpop.f32.mrf.mxu0  ;;  %v2572_v8 = vpop.f32.mrf.mxu1 }
 0x1e7   : > { %944 = vst [vmem:[#allocation2 + $0x60] sm:$0xff] %v912_v3  ;;  %960 = vst [vmem:[#allocation2 + $0xa0] sm:$0xff] %v928_v4  ;;  %v2525_v9 = vadd.f32 %v2524_v6, %v2523_v1  ;;  %v2573_v10 = vadd.f32 %v2572_v8, %v2571_v2 }
 0x1e8   : > { %v2526_v11 = vpop.f32.mrf.mxu0  ;;  %v2574_v12 = vpop.f32.mrf.mxu1 }
 0x1e9   : > { %v913_v13 = vadd.f32 %v2525_v9, %v592_v5  ;;  %v929_v14 = vadd.f32 %v2573_v10, %v608_v7 }
 0x1ea   : > { %v2527_v16 = vpop.f32.mrf.mxu0  ;;  %v2575_v18 = vpop.f32.mrf.mxu1 }
 0x1eb   : > { %945 = vst [vmem:[#allocation2 + $0xf0] sm:$0xff] %v913_v13  ;;  %961 = vst [vmem:[#allocation2 + $0xf8] sm:$0xff] %v929_v14  ;;  %v2528_v19 = vadd.f32 %v2527_v16, %v2526_v11  ;;  %v2576_v20 = vadd.f32 %v2575_v18, %v2574_v12 }
 0x1ec   : > { %v2529_v21 = vpop.f32.mrf.mxu0  ;;  %v2577_v22 = vpop.f32.mrf.mxu1 }
 0x1ed   : > { %v914_v23 = vadd.f32 %v2528_v19, %v593_v15  ;;  %v930_v24 = vadd.f32 %v2576_v20, %v609_v17 }
 0x1ee   : > { %v2530_v26 = vpop.f32.mrf.mxu0  ;;  %v2578_v28 = vpop.f32.mrf.mxu1 }
 0x1ef   : > { %946 = vst [vmem:[#allocation2 + $0x8] sm:$0xff] %v914_v23  ;;  %962 = vst [vmem:[#allocation2 + $0x20] sm:$0xff] %v930_v24  ;;  %v2531_v29 = vadd.f32 %v2530_v26, %v2529_v21  ;;  %v2579_v30 = vadd.f32 %v2578_v28, %v2577_v22  ;;  %967 = sbr.rel (%p2205_p1) target bundleno = 529 (0x211), region = 96 }
 0x1f1   : > { %v915_v31 = vadd.f32 %v2531_v29, %v594_v25  ;;  %v931_v32 = vadd.f32 %v2579_v30, %v610_v27 }
 0x1f3   : > { %947 = vst [vmem:[#allocation2 + $0x78] sm:$0xff] %v915_v31  ;;  %963 = vst [vmem:[#allocation2 + $0x98] sm:$0xff] %v931_v32 }
 0x1f4   : > { %v2295_v33 = vld [vmem:[%s3565_s30] sm:$0xff]   ;;  %v2438_v34 = vld [vmem:[%s3565_s30 + $0x8] sm:$0xff]   ;;  %v2439_v35 = vld [vmem:[%s3565_s30 + $0x10] sm:$0xff]   ;;  %v3636_v56 = vstv %s1001_s24 }
 0x1f5   : > { %v2440_v36 = vld [vmem:[%s3565_s30 + $0x18] sm:$0xff]   ;;  %v2296_v37 = vunpack.c.l.bf16 %v2295_v33  ;;  %v2441_v38 = vld [vmem:[%s3565_s30 + $0x20] sm:$0xff]   ;;  %v2297_v39 = vunpack.c.h.bf16 %v2295_v33  ;;  %v2300_v40 = vunpack.c.l.bf16 %v2438_v34  ;;  %v2301_v41 = vunpack.c.h.bf16 %v2438_v34  ;;  %v2442_v43 = vld [vmem:[%s3565_s30 + $0x28] sm:$0xff]  }
 0x1f6   : > { %v2304_v42 = vunpack.c.l.bf16 %v2439_v35  ;;  %v2305_v44 = vunpack.c.h.bf16 %v2439_v35  ;;  %v2308_v45 = vunpack.c.l.bf16 %v2440_v36  ;;  %v2309_v46 = vunpack.c.h.bf16 %v2440_v36  ;;  %v2443_v48 = vld [vmem:[%s3565_s30 + $0x30] sm:$0xff]   ;;  %v969_v50 = vld [vmem:[#allocation2] sm:$0xff]  ;;  %v2444_v55 = vld [vmem:[%s3565_s30 + $0x38] sm:$0xff]  }
 0x1f7   : > { %v2312_v47 = vunpack.c.l.bf16 %v2441_v38  ;;  %v968_v49 = vld [vmem:[#allocation2 + $0xb0] sm:$0xff]  ;;  %v2313_v51 = vunpack.c.h.bf16 %v2441_v38  ;;  %v2316_v52 = vunpack.c.l.bf16 %v2442_v43  ;;  %v2317_v53 = vunpack.c.h.bf16 %v2442_v43  ;;  %v970_v57 = vld [vmem:[#allocation2 + $0xd8] sm:$0xff]  ;;  %v973_v3 = vld [vmem:[#allocation2 + $0x68] sm:$0xff] }
 0x1f8   : > { %v2320_v54 = vunpack.c.l.bf16 %v2443_v48  ;;  %v971_v58 = vld [vmem:[#allocation2 + $0x18] sm:$0xff]  ;;  %v972_v59 = vld [vmem:[#allocation2 + $0x50] sm:$0xff]  ;;  %v2321_v60 = vunpack.c.h.bf16 %v2443_v48  ;;  %v2324_v61 = vunpack.c.l.bf16 %v2444_v55  ;;  %v2325_v62 = vunpack.c.h.bf16 %v2444_v55  ;;  %v975_v5 = vld [vmem:[#allocation2 + $0x48] sm:$0xff] }
 0x1f9   : > { %v1067_v63 = vmul.f32 %v2296_v37, %v3636_v56  ;;  %v1068_v0 = vmul.f32 %v2297_v39, %v3636_v56  ;;  %v1069_v1 = vmul.f32 %v2300_v40, %v3636_v56  ;;  %v1070_v2 = vmul.f32 %v2301_v41, %v3636_v56  ;;  %v974_v4 = vld [vmem:[#allocation2 + $0x30] sm:$0xff]  ;;  %v976_v14 = vld [vmem:[#allocation2 + $0x80] sm:$0xff]  ;;  %v977_v15 = vld [vmem:[#allocation2 + $0x88] sm:$0xff] }
 0x1fa   : > { %v1071_v6 = vmul.f32 %v2304_v42, %v3636_v56  ;;  %v1072_v7 = vmul.f32 %v2305_v44, %v3636_v56  ;;  %v1073_v8 = vmul.f32 %v2308_v45, %v3636_v56  ;;  %v1074_v9 = vmul.f32 %v2309_v46, %v3636_v56  ;;  %v978_v20 = vld [vmem:[#allocation2 + $0xe8] sm:$0xff]  ;;  %v979_v21 = vld [vmem:[#allocation2 + $0xb8] sm:$0xff]  ;;  %v980_v22 = vld [vmem:[#allocation2 + $0x60] sm:$0xff] }
 0x1fb   : > { %v1099_v10 = vadd.f32 %v1067_v63, %v968_v49  ;;  %v1100_v11 = vadd.f32 %v1068_v0, %v969_v50  ;;  %v1101_v12 = vadd.f32 %v1069_v1, %v970_v57  ;;  %v1102_v13 = vadd.f32 %v1070_v2, %v971_v58  ;;  %v981_v27 = vld [vmem:[#allocation2 + $0xf0] sm:$0xff]  ;;  %v982_v28 = vld [vmem:[#allocation2 + $0x8] sm:$0xff]  ;;  %v983_v29 = vld [vmem:[#allocation2 + $0x78] sm:$0xff] }
 0x1fc   : > { %v1103_v16 = vadd.f32 %v1071_v6, %v972_v59  ;;  %v1104_v17 = vadd.f32 %v1072_v7, %v973_v3  ;;  %v1105_v18 = vadd.f32 %v1073_v8, %v974_v4  ;;  %v1106_v19 = vadd.f32 %v1074_v9, %v975_v5  ;;  %v2445_v34 = vld [vmem:[%s3565_s30 + $0x40] sm:$0xff]   ;;  %v2446_v35 = vld [vmem:[%s3565_s30 + $0x48] sm:$0xff]   ;;  %v2447_v40 = vld [vmem:[%s3565_s30 + $0x50] sm:$0xff]  }
 0x1fd   : > { %1131 = vst [vmem:[#allocation2 + $0xb0] sm:$0xff] %v1099_v10  ;;  %1132 = vst [vmem:[#allocation2] sm:$0xff] %v1100_v11  ;;  %v1075_v23 = vmul.f32 %v2312_v47, %v3636_v56  ;;  %v1076_v24 = vmul.f32 %v2313_v51, %v3636_v56  ;;  %v1077_v25 = vmul.f32 %v2316_v52, %v3636_v56  ;;  %v2448_v41 = vld [vmem:[%s3565_s30 + $0x58] sm:$0xff]   ;;  %v2328_v47 = vunpack.c.l.bf16 %v2445_v34  ;;  %v986_v52 = vld [vmem:[#allocation2 + $0x40] sm:$0xff] }
 0x1fe   : > { %1133 = vst [vmem:[#allocation2 + $0xd8] sm:$0xff] %v1101_v12  ;;  %1134 = vst [vmem:[#allocation2 + $0x18] sm:$0xff] %v1102_v13  ;;  %v1078_v26 = vmul.f32 %v2317_v53, %v3636_v56  ;;  %v1079_v30 = vmul.f32 %v2320_v54, %v3636_v56  ;;  %v1080_v31 = vmul.f32 %v2321_v60, %v3636_v56  ;;  %v984_v46 = vld [vmem:[#allocation2 + $0x38] sm:$0xff]  ;;  %v2329_v49 = vunpack.c.h.bf16 %v2445_v34  ;;  %v987_v53 = vld [vmem:[#allocation2 + $0xc8] sm:$0xff] }
 0x1ff   : > { %1135 = vst [vmem:[#allocation2 + $0x50] sm:$0xff] %v1103_v16  ;;  %1136 = vst [vmem:[#allocation2 + $0x68] sm:$0xff] %v1104_v17  ;;  %v1081_v32 = vmul.f32 %v2324_v61, %v3636_v56  ;;  %v1082_v33 = vmul.f32 %v2325_v62, %v3636_v56  ;;  %v1107_v36 = vadd.f32 %v1075_v23, %v976_v14  ;;  %v985_v48 = vld [vmem:[#allocation2 + $0x58] sm:$0xff]  ;;  %v2332_v50 = vunpack.c.l.bf16 %v2446_v35  ;;  %v988_v54 = vld [vmem:[#allocation2 + $0xe0] sm:$0xff] }
 0x200   : > { %1137 = vst [vmem:[#allocation2 + $0x30] sm:$0xff] %v1105_v18  ;;  %1138 = vst [vmem:[#allocation2 + $0x48] sm:$0xff] %v1106_v19  ;;  %v1108_v37 = vadd.f32 %v1076_v24, %v977_v15  ;;  %v1109_v38 = vadd.f32 %v1077_v25, %v978_v20  ;;  %v1110_v39 = vadd.f32 %v1078_v26, %v979_v21  ;;  %v2333_v51 = vunpack.c.h.bf16 %v2446_v35  ;;  %v989_v0 = vld [vmem:[#allocation2 + $0x90] sm:$0xff]  ;;  %v991_v2 = vld [vmem:[#allocation2 + $0xc0] sm:$0xff] }
 0x201   : > { %v1111_v42 = vadd.f32 %v1079_v30, %v980_v22  ;;  %v1112_v43 = vadd.f32 %v1080_v31, %v981_v27  ;;  %v1113_v44 = vadd.f32 %v1081_v32, %v982_v28  ;;  %v1114_v45 = vadd.f32 %v1082_v33, %v983_v29  ;;  %1139 = vst [vmem:[#allocation2 + $0x80] sm:$0xff] %v1107_v36  ;;  %v990_v1 = vld [vmem:[#allocation2 + $0x70] sm:$0xff]  ;;  %v2449_v7 = vld [vmem:[%s3565_s30 + $0x60] sm:$0xff]   ;;  %v2450_v8 = vld [vmem:[%s3565_s30 + $0x68] sm:$0xff]  }
 0x202   : > { %1140 = vst [vmem:[#allocation2 + $0x88] sm:$0xff] %v1108_v37  ;;  %1141 = vst [vmem:[#allocation2 + $0xe8] sm:$0xff] %v1109_v38  ;;  %v2336_v55 = vunpack.c.l.bf16 %v2447_v40  ;;  %v2337_v57 = vunpack.c.h.bf16 %v2447_v40  ;;  %v2340_v58 = vunpack.c.l.bf16 %v2448_v41  ;;  %v2341_v59 = vunpack.c.h.bf16 %v2448_v41  ;;  %v2451_v13 = vld [vmem:[%s3565_s30 + $0x70] sm:$0xff]   ;;  %v2452_v14 = vld [vmem:[%s3565_s30 + $0x78] sm:$0xff]  }
 0x203   : > { %1142 = vst [vmem:[#allocation2 + $0xb8] sm:$0xff] %v1110_v39  ;;  %1143 = vst [vmem:[#allocation2 + $0x60] sm:$0xff] %v1111_v42  ;;  %v1083_v60 = vmul.f32 %v2328_v47, %v3636_v56  ;;  %v1084_v61 = vmul.f32 %v2329_v49, %v3636_v56  ;;  %v1085_v62 = vmul.f32 %v2332_v50, %v3636_v56  ;;  %v992_v19 = vld [vmem:[#allocation2 + $0xa8] sm:$0xff]  ;;  %v2344_v20 = vunpack.c.l.bf16 %v2449_v7  ;;  %v993_v21 = vld [vmem:[#allocation2 + $0xd0] sm:$0xff] }
 0x204   : > { %1144 = vst [vmem:[#allocation2 + $0xf0] sm:$0xff] %v1112_v43  ;;  %1145 = vst [vmem:[#allocation2 + $0x8] sm:$0xff] %v1113_v44  ;;  %v1086_v63 = vmul.f32 %v2333_v51, %v3636_v56  ;;  %v1087_v3 = vmul.f32 %v2336_v55, %v3636_v56  ;;  %v1088_v4 = vmul.f32 %v2337_v57, %v3636_v56  ;;  %v2345_v22 = vunpack.c.h.bf16 %v2449_v7  ;;  %v994_v25 = vld [vmem:[#allocation2 + $0x10] sm:$0xff]  ;;  %v995_v26 = vld [vmem:[#allocation2 + $0x28] sm:$0xff] }
 0x205   : > { %1146 = vst [vmem:[#allocation2 + $0x78] sm:$0xff] %v1114_v45  ;;  %v1089_v5 = vmul.f32 %v2340_v58, %v3636_v56  ;;  %v1090_v6 = vmul.f32 %v2341_v59, %v3636_v56  ;;  %v1115_v9 = vadd.f32 %v1083_v60, %v984_v46  ;;  %v1116_v10 = vadd.f32 %v1084_v61, %v985_v48  ;;  %v996_v27 = vld [vmem:[#allocation2 + $0xa0] sm:$0xff]  ;;  %v997_v36 = vld [vmem:[#allocation2 + $0xf8] sm:$0xff] }
 0x206   : > { %v1117_v11 = vadd.f32 %v1085_v62, %v986_v52  ;;  %v1118_v12 = vadd.f32 %v1086_v63, %v987_v53  ;;  %v1119_v15 = vadd.f32 %v1087_v3, %v988_v54  ;;  %v1120_v16 = vadd.f32 %v1088_v4, %v989_v0  ;;  %v998_v37 = vld [vmem:[#allocation2 + $0x20] sm:$0xff]  ;;  %v999_v38 = vld [vmem:[#allocation2 + $0x98] sm:$0xff] }
 0x207   : > { %v1121_v17 = vadd.f32 %v1089_v5, %v990_v1  ;;  %v1122_v18 = vadd.f32 %v1090_v6, %v991_v2  ;;  %1147 = vst [vmem:[#allocation2 + $0x38] sm:$0xff] %v1115_v9  ;;  %1148 = vst [vmem:[#allocation2 + $0x58] sm:$0xff] %v1116_v10  ;;  %v2348_v23 = vunpack.c.l.bf16 %v2450_v8  ;;  %v2349_v24 = vunpack.c.h.bf16 %v2450_v8 }
 0x208   : > { %1149 = vst [vmem:[#allocation2 + $0x40] sm:$0xff] %v1117_v11  ;;  %1150 = vst [vmem:[#allocation2 + $0xc8] sm:$0xff] %v1118_v12  ;;  %v2352_v28 = vunpack.c.l.bf16 %v2451_v13  ;;  %v2353_v29 = vunpack.c.h.bf16 %v2451_v13  ;;  %v2356_v30 = vunpack.c.l.bf16 %v2452_v14  ;;  %v2357_v31 = vunpack.c.h.bf16 %v2452_v14 }
 0x209   : > { %1151 = vst [vmem:[#allocation2 + $0xe0] sm:$0xff] %v1119_v15  ;;  %1152 = vst [vmem:[#allocation2 + $0x90] sm:$0xff] %v1120_v16  ;;  %v1091_v32 = vmul.f32 %v2344_v20, %v3636_v56  ;;  %v1092_v33 = vmul.f32 %v2345_v22, %v3636_v56  ;;  %v1093_v34 = vmul.f32 %v2348_v23, %v3636_v56 }
 0x20a   : > { %1153 = vst [vmem:[#allocation2 + $0x70] sm:$0xff] %v1121_v17  ;;  %1154 = vst [vmem:[#allocation2 + $0xc0] sm:$0xff] %v1122_v18  ;;  %v1094_v35 = vmul.f32 %v2349_v24, %v3636_v56  ;;  %v1095_v39 = vmul.f32 %v2352_v28, %v3636_v56  ;;  %v1096_v40 = vmul.f32 %v2353_v29, %v3636_v56 }
 0x20b   : > { %v1097_v41 = vmul.f32 %v2356_v30, %v3636_v56  ;;  %v1098_v42 = vmul.f32 %v2357_v31, %v3636_v56  ;;  %v1123_v43 = vadd.f32 %v1091_v32, %v992_v19  ;;  %v1124_v44 = vadd.f32 %v1092_v33, %v993_v21 }
 0x20c   : > { %v1125_v45 = vadd.f32 %v1093_v34, %v994_v25  ;;  %v1126_v46 = vadd.f32 %v1094_v35, %v995_v26  ;;  %v1127_v47 = vadd.f32 %v1095_v39, %v996_v27  ;;  %v1128_v48 = vadd.f32 %v1096_v40, %v997_v36 }
 0x20d   : > { %v1129_v49 = vadd.f32 %v1097_v41, %v998_v37  ;;  %v1130_v50 = vadd.f32 %v1098_v42, %v999_v38  ;;  %1155 = vst [vmem:[#allocation2 + $0xa8] sm:$0xff] %v1123_v43  ;;  %1156 = vst [vmem:[#allocation2 + $0xd0] sm:$0xff] %v1124_v44 }
 0x20e   : > { %1157 = vst [vmem:[#allocation2 + $0x10] sm:$0xff] %v1125_v45  ;;  %1158 = vst [vmem:[#allocation2 + $0x28] sm:$0xff] %v1126_v46 }
 0x20f   : > { %1159 = vst [vmem:[#allocation2 + $0xa0] sm:$0xff] %v1127_v47  ;;  %1160 = vst [vmem:[#allocation2 + $0xf8] sm:$0xff] %v1128_v48 }
 0x210   : > { %1161 = vst [vmem:[#allocation2 + $0x20] sm:$0xff] %v1129_v49  ;;  %1162 = vst [vmem:[#allocation2 + $0x98] sm:$0xff] %v1130_v50 }
 0x211 PF: > { %s3921_s3 = sld [smem:[#allocation23_spill]] }
 0x217   : > { %p2206_p6 = scmp.ne.s32.totalorder %s3921_s3, 2 }
 0x219   : > { %1166 = sbr.rel (%p2206_p6) target bundleno = 1047 (0x417), region = 100 }
 0x21e   : > { %v2924_v56 = vld [vmem:[#allocation8 + $0x38] sm:$0xff]   ;;  %v2925_v51 = vld [vmem:[#allocation8 + $0x30] sm:$0xff]   ;;  %v2926_v52 = vld [vmem:[#allocation8 + $0x28] sm:$0xff]  }
 0x21f   : > { %2628 = vmatprep.subr.bf16.mxu0 %v2924_v56  ;;  %v2927_v53 = vld [vmem:[#allocation8 + $0x20] sm:$0xff]   ;;  %v1167_v54 = vld [vmem:[#allocation2 + $0xb0] sm:$0xff]  ;;  %v2928_v58 = vld [vmem:[#allocation8 + $0x18] sm:$0xff]  }
 0x220   : > { %2629 = vmatpush3.bf16.msra.mxu0 %v2924_v56  ;;  %v1168_v55 = vld [vmem:[#allocation2] sm:$0xff]  ;;  %v2929_v59 = vld [vmem:[#allocation8 + $0x10] sm:$0xff]   ;;  %v2930_v60 = vld [vmem:[#allocation8 + $0x8] sm:$0xff]  }
 0x221   : > { %2630 = vmatprep.subr.bf16.mxu0 %v2925_v51  ;;  %v1199_v57 = vpack.c.bf16 %v1168_v55, %v1167_v54  ;;  %v2932_v61 = vld [vmem:[#allocation11 + $0x38] sm:$0xff]   ;;  %v2933_v62 = vld [vmem:[#allocation11 + $0x30] sm:$0xff]   ;;  %v2934_v0 = vld [vmem:[#allocation11 + $0x28] sm:$0xff]  }
 0x222   : > { %2676 = vmatprep.subr.bf16.mxu1 %v2932_v61  ;;  %v2931_v63 = vld [vmem:[#allocation8] sm:$0xff]   ;;  %v1169_v1 = vld [vmem:[#allocation2 + $0xd8] sm:$0xff]  ;;  %v1171_v4 = vld [vmem:[#allocation2 + $0x50] sm:$0xff] }
 0x223   : > { %2644 = vmatprep.mubr.bf16.mxu0 %v1199_v57  ;;  %2677 = vmatpush3.bf16.msra.mxu1 %v2932_v61  ;;  %v1170_v2 = vld [vmem:[#allocation2 + $0x18] sm:$0xff]  ;;  %v2935_v3 = vld [vmem:[#allocation11 + $0x20] sm:$0xff]   ;;  %v1173_v9 = vld [vmem:[#allocation2 + $0x30] sm:$0xff] }
 0x224   : > { %2631 = vmatpush3.bf16.msra.mxu0 %v2925_v51  ;;  %2678 = vmatprep.subr.bf16.mxu1 %v2933_v62  ;;  %v1172_v5 = vld [vmem:[#allocation2 + $0x68] sm:$0xff]  ;;  %v1200_v6 = vpack.c.bf16 %v1170_v2, %v1169_v1  ;;  %v2936_v8 = vld [vmem:[#allocation11 + $0x18] sm:$0xff]   ;;  %v1180_v18 = vld [vmem:[#allocation2 + $0xf0] sm:$0xff] }
 0x225   : > { %2632 = vmatprep.subr.bf16.mxu0 %v2926_v52  ;;  %v1201_v7 = vpack.c.bf16 %v1172_v5, %v1171_v4  ;;  %v1174_v10 = vld [vmem:[#allocation2 + $0x48] sm:$0xff]  ;;  %v1175_v11 = vld [vmem:[#allocation2 + $0x80] sm:$0xff]  ;;  %v1178_v16 = vld [vmem:[#allocation2 + $0xb8] sm:$0xff] }
 0x226   : > { %v1176_v12 = vld [vmem:[#allocation2 + $0x88] sm:$0xff]  ;;  %v1202_v13 = vpack.c.bf16 %v1174_v10, %v1173_v9  ;;  %v1179_v17 = vld [vmem:[#allocation2 + $0x60] sm:$0xff]  ;;  %v1182_v22 = vld [vmem:[#allocation2 + $0x78] sm:$0xff] }
 0x227   : > { %2679 = vmatpush3.bf16.msra.mxu1 %v2933_v62  ;;  %v1203_v14 = vpack.c.bf16 %v1176_v12, %v1175_v11  ;;  %v1177_v15 = vld [vmem:[#allocation2 + $0xe8] sm:$0xff]  ;;  %v1205_v20 = vpack.c.bf16 %v1180_v18, %v1179_v17  ;;  %v1183_v23 = vld [vmem:[#allocation2 + $0x38] sm:$0xff]  ;;  %v1185_v27 = vld [vmem:[#allocation2 + $0x40] sm:$0xff] }
 0x228   : > { %2633 = vmatpush3.bf16.msra.mxu0 %v2926_v52  ;;  %2680 = vmatprep.subr.bf16.mxu1 %v2934_v0  ;;  %v1204_v19 = vpack.c.bf16 %v1178_v16, %v1177_v15  ;;  %v1181_v21 = vld [vmem:[#allocation2 + $0x8] sm:$0xff]  ;;  %v1184_v24 = vld [vmem:[#allocation2 + $0x58] sm:$0xff]  ;;  %v1187_v29 = vld [vmem:[#allocation2 + $0xe0] sm:$0xff] }
 0x229   : > { %2634 = vmatprep.subr.bf16.mxu0 %v2927_v53  ;;  %v1206_v25 = vpack.c.bf16 %v1182_v22, %v1181_v21  ;;  %v1207_v26 = vpack.c.bf16 %v1184_v24, %v1183_v23  ;;  %v1186_v28 = vld [vmem:[#allocation2 + $0xc8] sm:$0xff]  ;;  %v1188_v30 = vld [vmem:[#allocation2 + $0x90] sm:$0xff]  ;;  %v1190_v34 = vld [vmem:[#allocation2 + $0xc0] sm:$0xff] }
 0x22a   : > { %v1208_v31 = vpack.c.bf16 %v1186_v28, %v1185_v27  ;;  %v1209_v32 = vpack.c.bf16 %v1188_v30, %v1187_v29  ;;  %v1189_v33 = vld [vmem:[#allocation2 + $0x70] sm:$0xff]  ;;  %v1191_v35 = vld [vmem:[#allocation2 + $0xa8] sm:$0xff]  ;;  %v1195_v41 = vld [vmem:[#allocation2 + $0xa0] sm:$0xff] }
 0x22b   : > { %2681 = vmatpush3.bf16.msra.mxu1 %v2934_v0  ;;  %v1192_v36 = vld [vmem:[#allocation2 + $0xd0] sm:$0xff]  ;;  %v1210_v37 = vpack.c.bf16 %v1190_v34, %v1189_v33  ;;  %v1194_v40 = vld [vmem:[#allocation2 + $0x28] sm:$0xff]  ;;  %v1196_v42 = vld [vmem:[#allocation2 + $0xf8] sm:$0xff] }
 0x22c   : > { %2635 = vmatpush3.bf16.msra.mxu0 %v2927_v53  ;;  %2682 = vmatprep.subr.bf16.mxu1 %v2935_v3  ;;  %v1211_v38 = vpack.c.bf16 %v1192_v36, %v1191_v35  ;;  %v1193_v39 = vld [vmem:[#allocation2 + $0x10] sm:$0xff]  ;;  %v1213_v44 = vpack.c.bf16 %v1196_v42, %v1195_v41  ;;  %v1197_v45 = vld [vmem:[#allocation2 + $0x20] sm:$0xff]  ;;  %v1198_v46 = vld [vmem:[#allocation2 + $0x98] sm:$0xff] }
 0x22d   : > { %2636 = vmatprep.subr.bf16.mxu0 %v2928_v58  ;;  %v1212_v43 = vpack.c.bf16 %v1194_v40, %v1193_v39  ;;  %v1214_v47 = vpack.c.bf16 %v1198_v46, %v1197_v45  ;;  %v2937_v48 = vld [vmem:[#allocation11 + $0x10] sm:$0xff]   ;;  %v2938_v49 = vld [vmem:[#allocation11 + $0x8] sm:$0xff]   ;;  %v2939_v50 = vld [vmem:[#allocation11] sm:$0xff]  }
 0x22e   : > { %v3679_v52 = vld [vmem:[#allocation9] ss:$0 sm:$0xff] }
 0x22f   : > { %2683 = vmatpush3.bf16.msra.mxu1 %v2935_v3 }
 0x230   : > { %2637 = vmatpush3.bf16.msra.mxu0 %v2928_v58  ;;  %2684 = vmatprep.subr.bf16.mxu1 %v2936_v8 }
 0x231   : > { %2638 = vmatprep.subr.bf16.mxu0 %v2929_v59 }
 0x233   : > { %2685 = vmatpush3.bf16.msra.mxu1 %v2936_v8 }
 0x234   : > { %2639 = vmatpush3.bf16.msra.mxu0 %v2929_v59  ;;  %2686 = vmatprep.subr.bf16.mxu1 %v2937_v48 }
 0x235   : > { %2640 = vmatprep.subr.bf16.mxu0 %v2930_v60 }
 0x237   : > { %2687 = vmatpush3.bf16.msra.mxu1 %v2937_v48 }
 0x238   : > { %2641 = vmatpush3.bf16.msra.mxu0 %v2930_v60  ;;  %2688 = vmatprep.subr.bf16.mxu1 %v2938_v49 }
 0x239   : > { %2642 = vmatprep.subr.bf16.mxu0 %v2931_v63 }
 0x23b   : > { %2689 = vmatpush3.bf16.msra.mxu1 %v2938_v49 }
 0x23c   : > { %2643 = vmatpush3.bf16.msra.mxu0 %v2931_v63  ;;  %2690 = vmatprep.subr.bf16.mxu1 %v2939_v50 }
 0x23f   : > { %2645 = vmatmul.mubr.bf16.vlgmr.msra.gmra.mxu0 %v1200_v6  ;;  %2691 = vmatpush3.bf16.msra.mxu1 %v2939_v50 }
 0x240   : > { %2648 = vmatprep.mubr.bf16.mxu0 %v1201_v7 }
 0x247   : > { %2649 = vmatmul.mubr.bf16.gmra.mxu0 %v1202_v13 }
 0x248   : > { %2652 = vmatprep.mubr.bf16.mxu0 %v1203_v14 }
 0x24f   : > { %2653 = vmatmul.mubr.bf16.gmra.mxu0 %v1204_v19 }
 0x250   : > { %2656 = vmatprep.mubr.bf16.mxu0 %v1205_v20 }
 0x257   : > { %2657 = vmatmul.mubr.bf16.gmra.mxu0 %v1206_v25 }
 0x258   : > { %2660 = vmatprep.mubr.bf16.mxu0 %v1207_v26 }
 0x25f   : > { %2661 = vmatmul.mubr.bf16.gmra.mxu0 %v1208_v31 }
 0x260   : > { %2664 = vmatprep.mubr.bf16.mxu0 %v1209_v32 }
 0x267   : > { %2665 = vmatmul.mubr.bf16.gmra.mxu0 %v1210_v37 }
 0x268   : > { %2668 = vmatprep.mubr.bf16.mxu0 %v1211_v38 }
 0x26f   : > { %2669 = vmatmul.mubr.bf16.gmra.mxu0 %v1212_v43 }
 0x270   : > { %2672 = vmatprep.mubr.bf16.mxu0 %v1213_v44 }
 0x277   : > { %2673 = vmatmul.mubr.bf16.gmra.mxu0 %v1214_v47 }
 0x2ff   : > { %v2646_v56 = vpop.f32.mrf.mxu0 }
 0x300   : > { %v1329_v57 = vadd.f32 %v2646_v56, %v3679_v52 }
 0x301   : > { %v1320_v51 = vpop.f32.mrf.mxu0 }
 0x302   : > { %v1321_v54 = vadd.f32 %v3679_v52, %v1320_v51  ;;  %v1449_v0 = vmax.f32 %v1329_v57, 0.0 }
 0x303   : > { %v2647_v53 = vpop.f32.mrf.mxu0 }
 0x304   : > { %v1332_v55 = vadd.f32 %v2647_v53, %v3679_v52  ;;  %v1447_v62 = vmax.f32 %v1321_v54, 0.0 }
 0x305   : > { %v1323_v58 = vpop.f32.mrf.mxu0 }
 0x306   : > { %v1324_v59 = vadd.f32 %v3679_v52, %v1323_v58  ;;  %v1450_v60 = vmax.f32 %v1332_v55, 0.0 }
 0x307   : > { %v2650_v61 = vpop.f32.mrf.mxu0 }
 0x308   : > { %v1448_v63 = vmax.f32 %v1324_v59, 0.0  ;;  %v1480_v3 = vpack.c.bf16 %v1450_v60, %v1449_v0  ;;  %v1345_v7 = vadd.f32 %v2650_v61, %v3679_v52 }
 0x309   : > { %v1336_v1 = vpop.f32.mrf.mxu0 }
 0x30a   : > { %v1479_v2 = vpack.c.bf16 %v1448_v63, %v1447_v62  ;;  %v1337_v5 = vadd.f32 %v3679_v52, %v1336_v1  ;;  %v1453_v14 = vmax.f32 %v1345_v7, 0.0 }
 0x30b   : > { %v2651_v4 = vpop.f32.mrf.mxu0 }
 0x30c   : > { %v1348_v6 = vadd.f32 %v2651_v4, %v3679_v52  ;;  %2692 = vmatprep.mubr.bf16.mxu1 %v1479_v2  ;;  %v1451_v12 = vmax.f32 %v1337_v5, 0.0 }
 0x30d   : > { %v1339_v8 = vpop.f32.mrf.mxu0  ;;  %2693 = vmatmul.mubr.bf16.vlgmr.msra.gmra.mxu1 %v1480_v3 }
 0x30e   : > { %v1340_v9 = vadd.f32 %v3679_v52, %v1339_v8  ;;  %v1454_v10 = vmax.f32 %v1348_v6, 0.0 }
 0x30f   : > { %v2654_v11 = vpop.f32.mrf.mxu0 }
 0x310   : > { %v1452_v13 = vmax.f32 %v1340_v9, 0.0  ;;  %v1482_v17 = vpack.c.bf16 %v1454_v10, %v1453_v14  ;;  %v1361_v21 = vadd.f32 %v2654_v11, %v3679_v52 }
 0x311   : > { %v1352_v15 = vpop.f32.mrf.mxu0 }
 0x312   : > { %v1481_v16 = vpack.c.bf16 %v1452_v13, %v1451_v12  ;;  %v1353_v19 = vadd.f32 %v3679_v52, %v1352_v15  ;;  %v1457_v28 = vmax.f32 %v1361_v21, 0.0 }
 0x313   : > { %v2655_v18 = vpop.f32.mrf.mxu0 }
 0x314   : > { %v1364_v20 = vadd.f32 %v2655_v18, %v3679_v52  ;;  %2696 = vmatprep.mubr.bf16.mxu1 %v1481_v16  ;;  %v1455_v26 = vmax.f32 %v1353_v19, 0.0 }
 0x315   : > { %v1355_v22 = vpop.f32.mrf.mxu0  ;;  %2697 = vmatmul.mubr.bf16.gmra.mxu1 %v1482_v17 }
 0x316   : > { %v1356_v23 = vadd.f32 %v3679_v52, %v1355_v22  ;;  %v1458_v24 = vmax.f32 %v1364_v20, 0.0 }
 0x317   : > { %v2658_v25 = vpop.f32.mrf.mxu0 }
 0x318   : > { %v1456_v27 = vmax.f32 %v1356_v23, 0.0  ;;  %v1484_v31 = vpack.c.bf16 %v1458_v24, %v1457_v28  ;;  %v1377_v35 = vadd.f32 %v2658_v25, %v3679_v52 }
 0x319   : > { %v1368_v29 = vpop.f32.mrf.mxu0 }
 0x31a   : > { %v1483_v30 = vpack.c.bf16 %v1456_v27, %v1455_v26  ;;  %v1369_v33 = vadd.f32 %v3679_v52, %v1368_v29  ;;  %v1461_v42 = vmax.f32 %v1377_v35, 0.0 }
 0x31b   : > { %v2659_v32 = vpop.f32.mrf.mxu0 }
 0x31c   : > { %v1380_v34 = vadd.f32 %v2659_v32, %v3679_v52  ;;  %2700 = vmatprep.mubr.bf16.mxu1 %v1483_v30  ;;  %v1459_v40 = vmax.f32 %v1369_v33, 0.0 }
 0x31d   : > { %v1371_v36 = vpop.f32.mrf.mxu0  ;;  %2701 = vmatmul.mubr.bf16.gmra.mxu1 %v1484_v31 }
 0x31e   : > { %v1372_v37 = vadd.f32 %v3679_v52, %v1371_v36  ;;  %v1462_v38 = vmax.f32 %v1380_v34, 0.0 }
 0x31f   : > { %v2662_v39 = vpop.f32.mrf.mxu0 }
 0x320   : > { %v1460_v41 = vmax.f32 %v1372_v37, 0.0  ;;  %v1486_v45 = vpack.c.bf16 %v1462_v38, %v1461_v42  ;;  %v1393_v49 = vadd.f32 %v2662_v39, %v3679_v52  ;;  %v3713_v37 = vld [vmem:[#allocation12] ss:$0 sm:$0xff] }
 0x321   : > { %v1384_v43 = vpop.f32.mrf.mxu0 }
 0x322   : > { %v1485_v44 = vpack.c.bf16 %v1460_v41, %v1459_v40  ;;  %v1385_v47 = vadd.f32 %v3679_v52, %v1384_v43  ;;  %v1465_v57 = vmax.f32 %v1393_v49, 0.0  ;;  %v3717_v43 = vld [vmem:[#allocation14] ss:$0 sm:$0xff] }
 0x323   : > { %v2663_v46 = vpop.f32.mrf.mxu0 }
 0x324   : > { %v1396_v48 = vadd.f32 %v2663_v46, %v3679_v52  ;;  %2704 = vmatprep.mubr.bf16.mxu1 %v1485_v44  ;;  %v1463_v54 = vmax.f32 %v1385_v47, 0.0 }
 0x325   : > { %v1387_v50 = vpop.f32.mrf.mxu0  ;;  %2705 = vmatmul.mubr.bf16.gmra.mxu1 %v1486_v45 }
 0x326   : > { %v1388_v56 = vadd.f32 %v3679_v52, %v1387_v50  ;;  %v1466_v51 = vmax.f32 %v1396_v48, 0.0  ;;  %v3722_v50 = vld [vmem:[#allocation15] ss:$0 sm:$0xff] }
 0x327   : > { %v2666_v53 = vpop.f32.mrf.mxu0 }
 0x328   : > { %v1464_v55 = vmax.f32 %v1388_v56, 0.0  ;;  %v1488_v60 = vpack.c.bf16 %v1466_v51, %v1465_v57  ;;  %v1409_v0 = vadd.f32 %v2666_v53, %v3679_v52 }
 0x329   : > { %v1400_v58 = vpop.f32.mrf.mxu0 }
 0x32a   : > { %v1487_v59 = vpack.c.bf16 %v1464_v55, %v1463_v54  ;;  %v1401_v62 = vadd.f32 %v3679_v52, %v1400_v58  ;;  %v1469_v7 = vmax.f32 %v1409_v0, 0.0 }
 0x32b   : > { %v2667_v61 = vpop.f32.mrf.mxu0 }
 0x32c   : > { %v1412_v63 = vadd.f32 %v2667_v61, %v3679_v52  ;;  %2708 = vmatprep.mubr.bf16.mxu1 %v1487_v59  ;;  %v1467_v5 = vmax.f32 %v1401_v62, 0.0 }
 0x32d   : > { %v1403_v1 = vpop.f32.mrf.mxu0  ;;  %2709 = vmatmul.mubr.bf16.gmra.mxu1 %v1488_v60 }
 0x32e   : > { %v1404_v2 = vadd.f32 %v3679_v52, %v1403_v1  ;;  %v1470_v3 = vmax.f32 %v1412_v63, 0.0 }
 0x32f   : > { %v2670_v4 = vpop.f32.mrf.mxu0 }
 0x330   : > { %v1468_v6 = vmax.f32 %v1404_v2, 0.0  ;;  %v1490_v10 = vpack.c.bf16 %v1470_v3, %v1469_v7  ;;  %v1425_v14 = vadd.f32 %v2670_v4, %v3679_v52 }
 0x331   : > { %v1416_v8 = vpop.f32.mrf.mxu0 }
 0x332   : > { %v1489_v9 = vpack.c.bf16 %v1468_v6, %v1467_v5  ;;  %v1417_v12 = vadd.f32 %v3679_v52, %v1416_v8  ;;  %v1473_v21 = vmax.f32 %v1425_v14, 0.0 }
 0x333   : > { %v2671_v11 = vpop.f32.mrf.mxu0 }
 0x334   : > { %v1428_v13 = vadd.f32 %v2671_v11, %v3679_v52  ;;  %2712 = vmatprep.mubr.bf16.mxu1 %v1489_v9  ;;  %v1471_v19 = vmax.f32 %v1417_v12, 0.0 }
 0x335   : > { %v1419_v15 = vpop.f32.mrf.mxu0  ;;  %2713 = vmatmul.mubr.bf16.gmra.mxu1 %v1490_v10 }
 0x336   : > { %v1420_v16 = vadd.f32 %v3679_v52, %v1419_v15  ;;  %v1474_v17 = vmax.f32 %v1428_v13, 0.0 }
 0x337   : > { %v2674_v18 = vpop.f32.mrf.mxu0 }
 0x338   : > { %v1472_v20 = vmax.f32 %v1420_v16, 0.0  ;;  %v1492_v24 = vpack.c.bf16 %v1474_v17, %v1473_v21  ;;  %v1441_v28 = vadd.f32 %v2674_v18, %v3679_v52 }
 0x339   : > { %v1432_v22 = vpop.f32.mrf.mxu0 }
 0x33a   : > { %v1491_v23 = vpack.c.bf16 %v1472_v20, %v1471_v19  ;;  %v1433_v26 = vadd.f32 %v3679_v52, %v1432_v22  ;;  %v1477_v34 = vmax.f32 %v1441_v28, 0.0 }
 0x33b   : > { %v2675_v25 = vpop.f32.mrf.mxu0 }
 0x33c   : > { %v1444_v27 = vadd.f32 %v2675_v25, %v3679_v52  ;;  %2716 = vmatprep.mubr.bf16.mxu1 %v1491_v23  ;;  %v1475_v32 = vmax.f32 %v1433_v26, 0.0 }
 0x33d   : > { %v1435_v29 = vpop.f32.mrf.mxu0  ;;  %2717 = vmatmul.mubr.bf16.gmra.mxu1 %v1492_v24 }
 0x33e   : > { %v1436_v30 = vadd.f32 %v3679_v52, %v1435_v29  ;;  %v1478_v31 = vmax.f32 %v1444_v27, 0.0 }
 0x340   : > { %v1476_v33 = vmax.f32 %v1436_v30, 0.0  ;;  %v1494_v36 = vpack.c.bf16 %v1478_v31, %v1477_v34 }
 0x342   : > { %v1493_v35 = vpack.c.bf16 %v1476_v33, %v1475_v32 }
 0x344   : > { %2720 = vmatprep.mubr.bf16.mxu1 %v1493_v35 }
 0x345   : > { %2721 = vmatmul.mubr.bf16.gmra.mxu1 %v1494_v36 }
 0x3cd   : > { %v2694_v38 = vpop.f32.mrf.mxu1 }
 0x3ce   : > { %v1609_v39 = vadd.f32 %v2694_v38, %v3713_v37 }
 0x3cf   : > { %v1600_v40 = vpop.f32.mrf.mxu1 }
 0x3d0   : > { %v1729_v41 = vmax.f32 %v1609_v39, 0.0  ;;  %v1601_v42 = vadd.f32 %v3713_v37, %v1600_v40 }
 0x3d1   : > { %v2695_v52 = vpop.f32.mrf.mxu1 }
 0x3d2   : > { %v1727_v44 = vmax.f32 %v1601_v42, 0.0  ;;  %v1612_v45 = vadd.f32 %v2695_v52, %v3713_v37  ;;  %v1768_v47 = vmul.f32 %v3717_v43, %v1729_v41 }
 0x3d3   : > { %v1603_v46 = vpop.f32.mrf.mxu1 }
 0x3d4   : > { %v1730_v48 = vmax.f32 %v1612_v45, 0.0  ;;  %v1604_v49 = vadd.f32 %v3713_v37, %v1603_v46  ;;  %v1766_v51 = vmul.f32 %v3717_v43, %v1727_v44  ;;  %v1807_v58 = vadd.f32 %v3722_v50, %v1768_v47 }
 0x3d5   : > { %v2698_v56 = vpop.f32.mrf.mxu1 }
 0x3d6   : > { %v1769_v53 = vmul.f32 %v3717_v43, %v1730_v48  ;;  %v1728_v54 = vmax.f32 %v1604_v49, 0.0  ;;  %v1625_v55 = vadd.f32 %v2698_v56, %v3713_v37  ;;  %v1805_v0 = vadd.f32 %v3722_v50, %v1766_v51 }
 0x3d7   : > { %v1616_v57 = vpop.f32.mrf.mxu1 }
 0x3d8   : > { %v1808_v59 = vadd.f32 %v3722_v50, %v1769_v53  ;;  %v1767_v60 = vmul.f32 %v3717_v43, %v1728_v54  ;;  %v1617_v61 = vadd.f32 %v3713_v37, %v1616_v57  ;;  %v1733_v62 = vmax.f32 %v1625_v55, 0.0 }
 0x3d9   : > { %v2699_v63 = vpop.f32.mrf.mxu1 }
 0x3da   : > { %v2366_v1 = vpack.c.bf16 %v1808_v59, %v1807_v58  ;;  %v1806_v2 = vadd.f32 %v3722_v50, %v1767_v60  ;;  %v1731_v3 = vmax.f32 %v1617_v61, 0.0  ;;  %v1628_v4 = vadd.f32 %v2699_v63, %v3713_v37 }
 0x3db   : > { %v1619_v5 = vpop.f32.mrf.mxu1  ;;  %v1772_v8 = vmul.f32 %v3717_v43, %v1733_v62 }
 0x3dc   : > { %2453 = vst [vmem:[%s3591_s8 + $0x8] sm:$0xff] %v2366_v1   ;;  %v2361_v6 = vpack.c.bf16 %v1806_v2, %v1805_v0  ;;  %v1620_v7 = vadd.f32 %v3713_v37, %v1619_v5  ;;  %v1734_v9 = vmax.f32 %v1628_v4, 0.0  ;;  %v1770_v11 = vmul.f32 %v3717_v43, %v1731_v3 }
 0x3dd   : > { %v2702_v10 = vpop.f32.mrf.mxu1  ;;  %v1811_v19 = vadd.f32 %v3722_v50, %v1772_v8 }
 0x3de   : > { %2362 = vst [vmem:[%s3591_s8] sm:$0xff] %v2361_v6   ;;  %v1732_v12 = vmax.f32 %v1620_v7, 0.0  ;;  %v1641_v13 = vadd.f32 %v2702_v10, %v3713_v37  ;;  %v1773_v14 = vmul.f32 %v3717_v43, %v1734_v9  ;;  %v1809_v22 = vadd.f32 %v3722_v50, %v1770_v11 }
 0x3df   : > { %v1632_v15 = vpop.f32.mrf.mxu1 }
 0x3e0   : > { %v1771_v16 = vmul.f32 %v3717_v43, %v1732_v12  ;;  %v1737_v17 = vmax.f32 %v1641_v13, 0.0  ;;  %v1633_v18 = vadd.f32 %v3713_v37, %v1632_v15  ;;  %v1812_v20 = vadd.f32 %v3722_v50, %v1773_v14 }
 0x3e1   : > { %v2703_v21 = vpop.f32.mrf.mxu1 }
 0x3e2   : > { %v1810_v23 = vadd.f32 %v3722_v50, %v1771_v16  ;;  %v1644_v24 = vadd.f32 %v2703_v21, %v3713_v37  ;;  %v2376_v25 = vpack.c.bf16 %v1812_v20, %v1811_v19  ;;  %v1735_v26 = vmax.f32 %v1633_v18, 0.0 }
 0x3e3   : > { %v1635_v27 = vpop.f32.mrf.mxu1  ;;  %v1776_v29 = vmul.f32 %v3717_v43, %v1737_v17 }
 0x3e4   : > { %v2371_v28 = vpack.c.bf16 %v1810_v23, %v1809_v22  ;;  %v1738_v30 = vmax.f32 %v1644_v24, 0.0  ;;  %2455 = vst [vmem:[%s3591_s8 + $0x18] sm:$0xff] %v2376_v25   ;;  %v1636_v31 = vadd.f32 %v3713_v37, %v1635_v27  ;;  %v1774_v35 = vmul.f32 %v3717_v43, %v1735_v26 }
 0x3e5   : > { %v2706_v32 = vpop.f32.mrf.mxu1  ;;  %v1815_v39 = vadd.f32 %v3722_v50, %v1776_v29 }
 0x3e6   : > { %2454 = vst [vmem:[%s3591_s8 + $0x10] sm:$0xff] %v2371_v28   ;;  %v1777_v33 = vmul.f32 %v3717_v43, %v1738_v30  ;;  %v1657_v34 = vadd.f32 %v2706_v32, %v3713_v37  ;;  %v1736_v36 = vmax.f32 %v1636_v31, 0.0  ;;  %v1813_v48 = vadd.f32 %v3722_v50, %v1774_v35 }
 0x3e7   : > { %v1648_v38 = vpop.f32.mrf.mxu1 }
 0x3e8   : > { %v1816_v40 = vadd.f32 %v3722_v50, %v1777_v33  ;;  %v1741_v41 = vmax.f32 %v1657_v34, 0.0  ;;  %v1649_v42 = vadd.f32 %v3713_v37, %v1648_v38  ;;  %v1775_v52 = vmul.f32 %v3717_v43, %v1736_v36 }
 0x3e9   : > { %v2707_v44 = vpop.f32.mrf.mxu1 }
 0x3ea   : > { %v2386_v45 = vpack.c.bf16 %v1816_v40, %v1815_v39  ;;  %v1739_v46 = vmax.f32 %v1649_v42, 0.0  ;;  %v1660_v47 = vadd.f32 %v2707_v44, %v3713_v37  ;;  %v1814_v49 = vadd.f32 %v3722_v50, %v1775_v52 }
 0x3eb   : > { %v1651_v56 = vpop.f32.mrf.mxu1  ;;  %v1780_v51 = vmul.f32 %v3717_v43, %v1741_v41 }
 0x3ec   : > { %2457 = vst [vmem:[%s3591_s8 + $0x28] sm:$0xff] %v2386_v45   ;;  %v1742_v53 = vmax.f32 %v1660_v47, 0.0  ;;  %v1652_v54 = vadd.f32 %v3713_v37, %v1651_v56  ;;  %v2381_v55 = vpack.c.bf16 %v1814_v49, %v1813_v48  ;;  %v1778_v58 = vmul.f32 %v3717_v43, %v1739_v46 }
 0x3ed   : > { %v2710_v57 = vpop.f32.mrf.mxu1  ;;  %v1819_v63 = vadd.f32 %v3722_v50, %v1780_v51 }
 0x3ee   : > { %v1781_v59 = vmul.f32 %v3717_v43, %v1742_v53  ;;  %v1740_v60 = vmax.f32 %v1652_v54, 0.0  ;;  %v1673_v61 = vadd.f32 %v2710_v57, %v3713_v37  ;;  %2456 = vst [vmem:[%s3591_s8 + $0x20] sm:$0xff] %v2381_v55   ;;  %v1817_v5 = vadd.f32 %v3722_v50, %v1778_v58 }
 0x3ef   : > { %v1664_v62 = vpop.f32.mrf.mxu1 }
 0x3f0   : > { %v1820_v0 = vadd.f32 %v3722_v50, %v1781_v59  ;;  %v1779_v1 = vmul.f32 %v3717_v43, %v1740_v60  ;;  %v1665_v2 = vadd.f32 %v3713_v37, %v1664_v62  ;;  %v1745_v3 = vmax.f32 %v1673_v61, 0.0 }
 0x3f1   : > { %v2711_v4 = vpop.f32.mrf.mxu1 }
 0x3f2   : > { %v2396_v6 = vpack.c.bf16 %v1820_v0, %v1819_v63  ;;  %v1818_v7 = vadd.f32 %v3722_v50, %v1779_v1  ;;  %v1743_v8 = vmax.f32 %v1665_v2, 0.0  ;;  %v1676_v9 = vadd.f32 %v2711_v4, %v3713_v37 }
 0x3f3   : > { %v1667_v10 = vpop.f32.mrf.mxu1  ;;  %v1784_v13 = vmul.f32 %v3717_v43, %v1745_v3 }
 0x3f4   : > { %2459 = vst [vmem:[%s3591_s8 + $0x38] sm:$0xff] %v2396_v6   ;;  %v2391_v11 = vpack.c.bf16 %v1818_v7, %v1817_v5  ;;  %v1668_v12 = vadd.f32 %v3713_v37, %v1667_v10  ;;  %v1746_v14 = vmax.f32 %v1676_v9, 0.0  ;;  %v1782_v16 = vmul.f32 %v3717_v43, %v1743_v8 }
 0x3f5   : > { %v2714_v15 = vpop.f32.mrf.mxu1  ;;  %v1823_v24 = vadd.f32 %v3722_v50, %v1784_v13 }
 0x3f6   : > { %2458 = vst [vmem:[%s3591_s8 + $0x30] sm:$0xff] %v2391_v11   ;;  %v1744_v17 = vmax.f32 %v1668_v12, 0.0  ;;  %v1689_v18 = vadd.f32 %v2714_v15, %v3713_v37  ;;  %v1785_v19 = vmul.f32 %v3717_v43, %v1746_v14  ;;  %v1821_v27 = vadd.f32 %v3722_v50, %v1782_v16 }
 0x3f7   : > { %v1680_v20 = vpop.f32.mrf.mxu1 }
 0x3f8   : > { %v1783_v21 = vmul.f32 %v3717_v43, %v1744_v17  ;;  %v1749_v22 = vmax.f32 %v1689_v18, 0.0  ;;  %v1681_v23 = vadd.f32 %v3713_v37, %v1680_v20  ;;  %v1824_v25 = vadd.f32 %v3722_v50, %v1785_v19 }
 0x3f9   : > { %v2715_v26 = vpop.f32.mrf.mxu1 }
 0x3fa   : > { %v1822_v28 = vadd.f32 %v3722_v50, %v1783_v21  ;;  %v1692_v29 = vadd.f32 %v2715_v26, %v3713_v37  ;;  %v2406_v30 = vpack.c.bf16 %v1824_v25, %v1823_v24  ;;  %v1747_v31 = vmax.f32 %v1681_v23, 0.0 }
 0x3fb   : > { %v1683_v32 = vpop.f32.mrf.mxu1  ;;  %v1788_v34 = vmul.f32 %v3717_v43, %v1749_v22 }
 0x3fc   : > { %v2401_v33 = vpack.c.bf16 %v1822_v28, %v1821_v27  ;;  %v1750_v35 = vmax.f32 %v1692_v29, 0.0  ;;  %2461 = vst [vmem:[%s3591_s8 + $0x48] sm:$0xff] %v2406_v30   ;;  %v1684_v36 = vadd.f32 %v3713_v37, %v1683_v32  ;;  %v1786_v41 = vmul.f32 %v3717_v43, %v1747_v31 }
 0x3fd   : > { %v2718_v38 = vpop.f32.mrf.mxu1  ;;  %v1827_v44 = vadd.f32 %v3722_v50, %v1788_v34 }
 0x3fe   : > { %2460 = vst [vmem:[%s3591_s8 + $0x40] sm:$0xff] %v2401_v33   ;;  %v1789_v39 = vmul.f32 %v3717_v43, %v1750_v35  ;;  %v1705_v40 = vadd.f32 %v2718_v38, %v3713_v37  ;;  %v1748_v42 = vmax.f32 %v1684_v36, 0.0  ;;  %v1825_v54 = vadd.f32 %v3722_v50, %v1786_v41 }
 0x3ff   : > { %v1696_v52 = vpop.f32.mrf.mxu1 }
 0x400   : > { %v1828_v45 = vadd.f32 %v3722_v50, %v1789_v39  ;;  %v1753_v46 = vmax.f32 %v1705_v40, 0.0  ;;  %v1697_v47 = vadd.f32 %v3713_v37, %v1696_v52  ;;  %v1787_v48 = vmul.f32 %v3717_v43, %v1748_v42 }
 0x401   : > { %v2719_v49 = vpop.f32.mrf.mxu1 }
 0x402   : > { %v2416_v56 = vpack.c.bf16 %v1828_v45, %v1827_v44  ;;  %v1751_v51 = vmax.f32 %v1697_v47, 0.0  ;;  %v1708_v53 = vadd.f32 %v2719_v49, %v3713_v37  ;;  %v1826_v55 = vadd.f32 %v3722_v50, %v1787_v48 }
 0x403   : > { %v1699_v57 = vpop.f32.mrf.mxu1  ;;  %v1792_v58 = vmul.f32 %v3717_v43, %v1753_v46 }
 0x404   : > { %2463 = vst [vmem:[%s3591_s8 + $0x58] sm:$0xff] %v2416_v56   ;;  %v1754_v59 = vmax.f32 %v1708_v53, 0.0  ;;  %v1700_v60 = vadd.f32 %v3713_v37, %v1699_v57  ;;  %v2411_v61 = vpack.c.bf16 %v1826_v55, %v1825_v54  ;;  %v1790_v63 = vmul.f32 %v3717_v43, %v1751_v51 }
 0x405   : > { %v2722_v62 = vpop.f32.mrf.mxu1  ;;  %v1831_v4 = vadd.f32 %v3722_v50, %v1792_v58 }
 0x406   : > { %v1793_v0 = vmul.f32 %v3717_v43, %v1754_v59  ;;  %v1752_v1 = vmax.f32 %v1700_v60, 0.0  ;;  %v1721_v2 = vadd.f32 %v2722_v62, %v3713_v37  ;;  %2462 = vst [vmem:[%s3591_s8 + $0x50] sm:$0xff] %v2411_v61   ;;  %v1829_v10 = vadd.f32 %v3722_v50, %v1790_v63 }
 0x407   : > { %v1712_v3 = vpop.f32.mrf.mxu1 }
 0x408   : > { %v1832_v5 = vadd.f32 %v3722_v50, %v1793_v0  ;;  %v1791_v6 = vmul.f32 %v3717_v43, %v1752_v1  ;;  %v1713_v7 = vadd.f32 %v3713_v37, %v1712_v3  ;;  %v1757_v8 = vmax.f32 %v1721_v2, 0.0 }
 0x409   : > { %v2723_v9 = vpop.f32.mrf.mxu1 }
 0x40a   : > { %v2426_v11 = vpack.c.bf16 %v1832_v5, %v1831_v4  ;;  %v1830_v12 = vadd.f32 %v3722_v50, %v1791_v6  ;;  %v1755_v13 = vmax.f32 %v1713_v7, 0.0  ;;  %v1724_v14 = vadd.f32 %v2723_v9, %v3713_v37 }
 0x40b   : > { %v1715_v15 = vpop.f32.mrf.mxu1  ;;  %v1796_v18 = vmul.f32 %v3717_v43, %v1757_v8 }
 0x40c   : > { %2465 = vst [vmem:[%s3591_s8 + $0x68] sm:$0xff] %v2426_v11   ;;  %v2421_v16 = vpack.c.bf16 %v1830_v12, %v1829_v10  ;;  %v1716_v17 = vadd.f32 %v3713_v37, %v1715_v15  ;;  %v1758_v19 = vmax.f32 %v1724_v14, 0.0  ;;  %v1794_v20 = vmul.f32 %v3717_v43, %v1755_v13 }
 0x40d   : > { %v1835_v24 = vadd.f32 %v3722_v50, %v1796_v18 }
 0x40e   : > { %2464 = vst [vmem:[%s3591_s8 + $0x60] sm:$0xff] %v2421_v16   ;;  %v1756_v21 = vmax.f32 %v1716_v17, 0.0  ;;  %v1797_v22 = vmul.f32 %v3717_v43, %v1758_v19  ;;  %v1833_v26 = vadd.f32 %v3722_v50, %v1794_v20 }
 0x410   : > { %v1795_v23 = vmul.f32 %v3717_v43, %v1756_v21  ;;  %v1836_v25 = vadd.f32 %v3722_v50, %v1797_v22 }
 0x412   : > { %v1834_v27 = vadd.f32 %v3722_v50, %v1795_v23  ;;  %v2436_v37 = vpack.c.bf16 %v1836_v25, %v1835_v24 }
 0x414   : > { %v2431_v28 = vpack.c.bf16 %v1834_v27, %v1833_v26  ;;  %2467 = vst [vmem:[%s3591_s8 + $0x78] sm:$0xff] %v2436_v37  }
 0x416   : > { %2466 = vst [vmem:[%s3591_s8 + $0x70] sm:$0xff] %v2431_v28  }
 0x417 PF: > { %s29_s20 = sadd.s32 1, %s3262_s20   ;;  %s3922_s4 = smov %s3499_s14 }
 0x418   : > { %p26_p10 = scmp.ge.s32.totalorder %s29_s20, 11   ;;  %s3923_s26 = sld [smem:[#allocation26_spill]] }
 0x419   : > { %s3924_s5 = sld [smem:[#allocation27_spill]]  ;;  %s3925_s11 = smov %s3226_s12 }
 0x41a   : > { %s3926_s12 = smov %s3230_s13  ;;  %s3927_s13 = smov %s3522_s28 }
 0x41b   : > { %s3928_s14 = smov %s3238_s15  ;;  %s3929_s15 = smov %s3242_s16 }
 0x41c   : > { %s3930_s16 = smov %s3922_s4  ;;  %s3931_s0 = smov %s3254_s18 }
 0x41d   : > { %s3932_s17 = smov %s3258_s19  ;;  %28 = sbr.rel (!%p26_p10) target bundleno = 21 (0x15), region = 145 }
 0x41e   : > { %s3933_s18 = smov %s3923_s26 }
 0x41f   : > { %s3934_s19 = smov %s3924_s5 }
 0x422   :  { %2019 = vsyncpa [#allocation5], 1 }
 0x423   :  { %2021 = vsyncpa [#allocation5 + $0x1], 1 }
 0x424   :  { %2022 = vsyncpa [#allocation7], 1 }
 0x425   :  { %2024 = vsyncpa [#allocation7 + $0x1], 1 }
 0x426   :  { %2025 = vsyncpa [#allocation10], 1 }
 0x427   :  { %2026 = vsyncpa [#allocation13], 1 }
 0x428   :  { %2027 = vsyncpa [#allocation16], 1 }

</bundles_post_ra>
